<compile_context>
chip_gen: v7x
topology: tpu7x:2x2x1
jax: 0.10.0
libtpu: 0.0.40
codegen_flags: <defaults>
</compile_context>

<pallas_src>
import functools

import jax
import jax.numpy as jnp
import numpy as np
from jax import lax
from jax.experimental import pallas as pl
from jax.experimental.pallas import tpu as pltpu

EPS = 1e-5


def _vmem_limit_bytes():
    """~3/4 of physical VMEM (64 MiB on v7x, 128 MiB on v5e/v6e)."""
    cap = 64 * 1024 * 1024
    try:
        cap = int(getattr(pltpu.get_tpu_info(), "vmem_capacity_bytes", cap))
    except Exception:  # query unavailable -> conservative default
        pass
    return int(cap * 3 // 4)


# ---------------------------------------------------------------------------
# Kernels
# ---------------------------------------------------------------------------
def _xstats_kernel(x_ref, sum_ref, gram_ref):
    """Per-tile column sum + Gram (x^T x) of the input.  Enough to reconstruct
    the BN statistics of ANY 1x1 conv of x (bn1 and shortcut bn), so neither
    y1 nor the shortcut activation is ever written to HBM for stats."""
    x = x_ref[...]
    sum_ref[...] = jnp.sum(x, axis=0, keepdims=True)[None]
    gram_ref[...] = lax.dot_general(
        x, x, (((0,), (0,)), ((), ())),
        preferred_element_type=jnp.float32)[None]


def _conv12_kernel(H, W, x_ref, w1_ref, sc1_ref, sh1_ref, w2_ref,
                   y2_ref, st_ref, pad_ref):
    """Fused conv1(1x1) + bn1 + relu + conv2(3x3, pad=1) for one image, plus
    per-image sum / sum-of-squares partials for bn2.  The 3x3 conv accumulates
    9 shifted (H*W,P)x(P,P) matmuls read from a zero-bordered VMEM scratch
    (no functional pad, no 9P-wide im2col concatenate)."""
    P = w1_ref.shape[1]
    xb = x_ref[...].astype(jnp.bfloat16)
    y1 = jnp.dot(xb, w1_ref[...], preferred_element_type=jnp.float32)
    a1 = jnp.maximum(y1 * sc1_ref[...] + sh1_ref[...], 0.0)       # (H*W, P) f32

    pad_ref[...] = jnp.zeros_like(pad_ref)        # tiny; safe under megacore
    pad_ref[1:H + 1, 1:W + 1, :] = a1.reshape(H, W, P)

    acc = jnp.zeros((H * W, P), jnp.float32)
    for ky in range(3):
        for kx in range(3):
            tap = pad_ref[ky:ky + H, kx:kx + W, :].reshape(H * W, P)
            acc = acc + jnp.dot(tap.astype(jnp.bfloat16), w2_ref[ky * 3 + kx],
                                preferred_element_type=jnp.float32)

    y2_ref[...] = acc.astype(y2_ref.dtype)                         # bf16 to HBM
    st_ref[...] = jnp.concatenate(
        [jnp.sum(acc, axis=0, keepdims=True),
         jnp.sum(acc * acc, axis=0, keepdims=True)], axis=0)[None]


def _a2stats_kernel(y2_ref, sc2_ref, sh2_ref, sum_ref, gram_ref):
    """bn2 + relu, then column sum + (P x P) Gram of a2.  bn3's statistics are
    reconstructed from these in the wrapper (conv3 is linear), so the full
    conv3 / shortcut matmuls are NOT recomputed just for statistics."""
    a2 = jnp.maximum(
        y2_ref[...].astype(jnp.float32) * sc2_ref[...] + sh2_ref[...], 0.0)
    sum_ref[...] = jnp.sum(a2, axis=0, keepdims=True)[None]
    gram_ref[...] = lax.dot_general(
        a2, a2, (((0,), (0,)), ((), ())),
        preferred_element_type=jnp.float32)[None]


def _final_kernel(y2_ref, x_ref, sc2_ref, sh2_ref, w3f_ref, wsf_ref, b_ref,
                  o_ref):
    """bn2 + relu, conv3 and shortcut conv (bn3 / bn_s folded into the bf16
    weights and a single bias), residual add + final relu.  Two matmuls
    instead of a lane-shifting concat; output is lane-dense (C3 = 128)."""
    a2 = jnp.maximum(
        y2_ref[...].astype(jnp.float32) * sc2_ref[...] + sh2_ref[...], 0.0)
    z = jnp.dot(a2.astype(jnp.bfloat16), w3f_ref[...],
                preferred_element_type=jnp.float32)
    z = z + jnp.dot(x_ref[...].astype(jnp.bfloat16), wsf_ref[...],
                    preferred_element_type=jnp.float32)
    o_ref[...] = jnp.maximum(z + b_ref[...], 0.0).astype(o_ref.dtype)


# ---------------------------------------------------------------------------
# Tiny JAX combines (BN folding)
# ---------------------------------------------------------------------------
def _bn_fold_from_moments(ssum, ssq, gamma, beta, count):
    mean = ssum / count
    var = jnp.maximum(ssq / count - mean * mean, 0.0)   # clamp one-pass var
    scale = gamma.reshape(1, -1) * lax.rsqrt(var + EPS)
    shift = beta.reshape(1, -1) - mean * scale
    return scale.astype(jnp.float32), shift.astype(jnp.float32)


def _bn_fold_from_gram(colsum, gram, w, gamma, beta, count):
    """Folded BN scale/shift of y = x @ w from column sums and Gram of x."""
    s1 = colsum.reshape(1, -1) @ w                         # (1, C)  sum(y)
    s2 = jnp.sum((gram @ w) * w, axis=0, keepdims=True)    # (1, C)  sum(y^2)
    return _bn_fold_from_moments(s1, s2, gamma, beta, count)


# ---------------------------------------------------------------------------
# Wrapper
# ---------------------------------------------------------------------------
def bottleneck_pallas(x_nchw, params, stride=1, row_tile=4096):
    assert stride == 1, "kernel implements stride=1 (see TODO at top)"
    # TODO(synk): drop these transposes if the caller can supply/accept NHWC.
    x = jnp.transpose(x_nchw, (0, 2, 3, 1)).astype(jnp.float32)    # NCHW->NHWC
    N, H, W, Cin = x.shape
    P = params["w1"].shape[1]
    C3 = params["w3"].shape[1]
    R = N * H * W
    HW = H * W
    x_flat = x.reshape(R, Cin)

    vmem_limit = _vmem_limit_bytes()
    # Row tile for the flat stages: largest divisor of R that fits the
    # per-generation VMEM budget (double-buffered in/out of the widest stage).
    bytes_per_row = 2 * (Cin * 4 + P * 2 + C3 * 4)
    max_rows = max(8, (vmem_limit // 4) // bytes_per_row)
    assert R % 8 == 0
    TR = min(R, row_tile, max_rows)
    TR = max(8, (TR // 8) * 8)
    while R % TR:
        TR -= 8
    G = R // TR

    # Weights pre-cast to bf16 (MXU-friendly, halves weight DMA).
    w1 = params["w1"].astype(jnp.bfloat16)                 # (Cin, P)
    w2 = params["w2"].astype(jnp.bfloat16)                 # (9, P, P)

    cp = pltpu.CompilerParams(dimension_semantics=("parallel",),
                              vmem_limit_bytes=vmem_limit)

    # ---- stage 1: column sums + Gram of x (bn1 and bn_s statistics) --------
    sx_p, gx_p = pl.pallas_call(
        _xstats_kernel,
        grid=(G,),
        in_specs=[pl.BlockSpec((TR, Cin), lambda i: (i, 0))],
        out_specs=(pl.BlockSpec((1, 1, Cin), lambda i: (i, 0, 0)),
                   pl.BlockSpec((1, Cin, Cin), lambda i: (i, 0, 0))),
        out_shape=(jax.ShapeDtypeStruct((G, 1, Cin), jnp.float32),
                   jax.ShapeDtypeStruct((G, Cin, Cin), jnp.float32)),
        compiler_params=cp,
        cost_estimate=pl.CostEstimate(
            flops=2 * R * Cin * Cin, transcendentals=0,
            bytes_accessed=R * Cin * 4 + G * (Cin + Cin * Cin) * 4),
    )(x_flat)
    sx = jnp.sum(sx_p, axis=0)[0]                          # (Cin,)
    gx = jnp.sum(gx_p, axis=0)                             # (Cin, Cin)
    scale1, shift1 = _bn_fold_from_gram(sx, gx, params["w1"],
                                        params["g1"], params["b1"], R)
    scale_s, shift_s = _bn_fold_from_gram(sx, gx, params["ws"],
                                          params["gs"], params["bs"], R)

    # ---- stage 2: fused conv1 + bn1 + relu + 3x3 conv, bn2 partials --------
    y2_flat, st2 = pl.pallas_call(
        functools.partial(_conv12_kernel, H, W),
        grid=(N,),
        in_specs=[
            pl.BlockSpec((HW, Cin), lambda n: (n, 0)),
            pl.BlockSpec((Cin, P), lambda n: (0, 0)),
            pl.BlockSpec((1, P), lambda n: (0, 0)),
            pl.BlockSpec((1, P), lambda n: (0, 0)),
            pl.BlockSpec((9, P, P), lambda n: (0, 0, 0)),
        ],
        out_specs=(pl.BlockSpec((HW, P), lambda n: (n, 0)),
                   pl.BlockSpec((1, 2, P), lambda n: (n, 0, 0))),
        out_shape=(jax.ShapeDtypeStruct((R, P), jnp.bfloat16),   # bf16 in HBM
                   jax.ShapeDtypeStruct((N, 2, P), jnp.float32)),
        scratch_shapes=[pltpu.VMEM((H + 2, W + 2, P), jnp.float32)],
        compiler_params=cp,
        cost_estimate=pl.CostEstimate(
            flops=2 * R * Cin * P + 2 * R * 9 * P * P, transcendentals=0,
            bytes_accessed=R * Cin * 4 + R * P * 2
                           + (Cin * P + 9 * P * P) * 2 + N * 2 * P * 4),
    )(x_flat, w1, scale1, shift1, w2)
    s2m = jnp.sum(st2, axis=0)                             # (2, P)
    scale2, shift2 = _bn_fold_from_moments(s2m[0:1], s2m[1:2],
                                           params["g2"], params["b2"], R)

    # ---- stage 3: column sums + Gram of a2 (bn3 statistics only) -----------
    sa_p, ga_p = pl.pallas_call(
        _a2stats_kernel,
        grid=(G,),
        in_specs=[
            pl.BlockSpec((TR, P), lambda i: (i, 0)),
            pl.BlockSpec((1, P), lambda i: (0, 0)),
            pl.BlockSpec((1, P), lambda i: (0, 0)),
        ],
        out_specs=(pl.BlockSpec((1, 1, P), lambda i: (i, 0, 0)),
                   pl.BlockSpec((1, P, P), lambda i: (i, 0, 0))),
        out_shape=(jax.ShapeDtypeStruct((G, 1, P), jnp.float32),
                   jax.ShapeDtypeStruct((G, P, P), jnp.float32)),
        compiler_params=cp,
        cost_estimate=pl.CostEstimate(
            flops=2 * R * P * P, transcendentals=0,
            bytes_accessed=R * P * 2 + G * (P + P * P) * 4),
    )(y2_flat, scale2, shift2)
    sa = jnp.sum(sa_p, axis=0)[0]                          # (P,)
    ga = jnp.sum(ga_p, axis=0)                             # (P, P)
    scale3, shift3 = _bn_fold_from_gram(sa, ga, params["w3"],
                                        params["g3"], params["b3"], R)

    # Fold bn3 / bn_s into the final-stage weights and a single bias.
    w3f = (params["w3"] * scale3).astype(jnp.bfloat16)     # (P, C3)
    wsf = (params["ws"] * scale_s).astype(jnp.bfloat16)    # (Cin, C3)
    bias = (shift3 + shift_s).astype(jnp.float32)          # (1, C3)

    # ---- stage 4: fused conv3 + shortcut + residual add + relu -------------
    out_flat = pl.pallas_call(
        _final_kernel,
        grid=(G,),
        in_specs=[
            pl.BlockSpec((TR, P), lambda i: (i, 0)),
            pl.BlockSpec((TR, Cin), lambda i: (i, 0)),
            pl.BlockSpec((1, P), lambda i: (0, 0)),
            pl.BlockSpec((1, P), lambda i: (0, 0)),
            pl.BlockSpec((P, C3), lambda i: (0, 0)),
            pl.BlockSpec((Cin, C3), lambda i: (0, 0)),
            pl.BlockSpec((1, C3), lambda i: (0, 0)),
        ],
        out_specs=pl.BlockSpec((TR, C3), lambda i: (i, 0)),
        out_shape=jax.ShapeDtypeStruct((R, C3), jnp.float32),
        compiler_params=cp,
        cost_estimate=pl.CostEstimate(
            flops=2 * R * (P + Cin) * C3, transcendentals=0,
            bytes_accessed=R * P * 2 + R * Cin * 4 + R * C3 * 4
                           + (P + Cin) * C3 * 2),
    )(y2_flat, x_flat, scale2, shift2, w3f, wsf, bias)

    out = out_flat.reshape(N, H, W, C3)
    return jnp.transpose(out, (0, 3, 1, 2))                # NHWC -> NCHW


# ---------------------------------------------------------------------------
# Pure-JAX reference (f32), NHWC / HWIO convs, training-mode BatchNorm.
# ---------------------------------------------------------------------------
def _bn_ref(y, g, b, relu):
    mean = y.mean(axis=(0, 1, 2), keepdims=True)
    var = ((y - mean) ** 2).mean(axis=(0, 1, 2), keepdims=True)
    out = (y - mean) / jnp.sqrt(var + EPS) * g.reshape(1, 1, 1, -1) \
          + b.reshape(1, 1, 1, -1)
    return jnp.maximum(out, 0.0) if relu else out


def _conv_ref(x, w_hwio, pad):
    return lax.conv_general_dilated(
        x, w_hwio, window_strides=(1, 1), padding=pad,
        dimension_numbers=("NHWC", "HWIO", "NHWC"))


def bottleneck_reference(x_nchw, params):
    x = jnp.transpose(x_nchw, (0, 2, 3, 1))
    Cin = x.shape[-1]
    P = params["w1"].shape[1]
    C3 = params["w3"].shape[1]
    w1 = params["w1"].reshape(1, 1, Cin, P)
    w2 = params["w2"].reshape(3, 3, P, P)
    w3 = params["w3"].reshape(1, 1, P, C3)
    ws = params["ws"].reshape(1, 1, Cin, C3)

    o = _bn_ref(_conv_ref(x, w1, "VALID"), params["g1"], params["b1"], True)
    o = _bn_ref(_conv_ref(o, w2, [(1, 1), (1, 1)]), params["g2"], params["b2"], True)
    o = _bn_ref(_conv_ref(o, w3, "VALID"), params["g3"], params["b3"], False)
    sc = _bn_ref(_conv_ref(x, ws, "VALID"), params["gs"], params["bs"], False)
    o = jnp.maximum(o + sc, 0.0)
    return jnp.transpose(o, (0, 3, 1, 2))


def make_params(key, in_planes, planes, expansion=4):
    c3 = expansion * planes
    k1, k2, k3, k4 = jax.random.split(key, 4)
    # Conv weights in (cin, cout) layout (taps ky*3+kx for w2);
    # BatchNorm default init: gamma=1, beta=0.
    return {
        "w1": 0.1 * jax.random.normal(k1, (in_planes, planes), jnp.float32),
        "w2": 0.1 * jax.random.normal(k2, (9, planes, planes), jnp.float32),
        "w3": 0.1 * jax.random.normal(k3, (planes, c3), jnp.float32),
        "ws": 0.1 * jax.random.normal(k4, (in_planes, c3), jnp.float32),
        "g1": jnp.ones((1, planes), jnp.float32),
        "b1": jnp.zeros((1, planes), jnp.float32),
        "g2": jnp.ones((1, planes), jnp.float32),
        "b2": jnp.zeros((1, planes), jnp.float32),
        "g3": jnp.ones((1, c3), jnp.float32),
        "b3": jnp.zeros((1, c3), jnp.float32),
        "gs": jnp.ones((1, c3), jnp.float32),
        "bs": jnp.zeros((1, c3), jnp.float32),
    }


if __name__ == "__main__":
    # Small but MXU/lane-friendly shapes: C3 = 4*planes = 128 (lane-dense out).
    N, in_planes, H, W = 2, 64, 16, 16
    planes = 32

    key = jax.random.PRNGKey(0)
    kx, kp = jax.random.split(key)
    x = jax.random.normal(kx, (N, in_planes, H, W), jnp.float32)   # NCHW input
    params = make_params(kp, in_planes, planes)

    fn = jax.jit(lambda xx, pp: bottleneck_pallas(xx, pp))
    out = jax.block_until_ready(fn(x, params))

    ref = jax.block_until_ready(bottleneck_reference(x, params))
    # Tolerance accounts for bf16 matmul inputs / bf16 y2 storage
    # (f32 accumulation and f32 BN statistics throughout).
    np.testing.assert_allclose(np.asarray(out), np.asarray(ref),
                               rtol=5e-2, atol=5e-2)
    assert out.shape == (N, 4 * planes, H, W)
    print("KERNEL_OK")
</pallas_src>

<mosaic_0001>
module attributes {stable_mosaic.version = 11 : i64} {
  func.func @_xstats_kernel(%arg0: i32, %arg1: memref<512x64xf32, #tpu.memory_space<vmem>>, %arg2: memref<1x1x64xf32, #tpu.memory_space<vmem>>, %arg3: memref<1x64x64xf32, #tpu.memory_space<vmem>>) attributes {dimension_semantics = [#tpu.dimension_semantics<parallel>], iteration_bounds = array<i64: 1>, scalar_prefetch = 0 : i64, scratch_operands = 0 : i64, tpu.core_type = #tpu.core_type<tc>, window_params = [{transform_indices = @transform_0, window_bounds = array<i64: 512, 64>}, {transform_indices = @transform_1, window_bounds = array<i64: 1, 1, 64>}, {transform_indices = @transform_2, window_bounds = array<i64: 1, 64, 64>}]} {
    %c0 = arith.constant 0 : index
    %c0_0 = arith.constant 0 : index
    %0 = vector.load %arg1[%c0, %c0_0] : memref<512x64xf32, #tpu.memory_space<vmem>>, vector<512x64xf32>
    %cst = arith.constant dense<0.000000e+00> : vector<64xf32>
    %1 = vector.multi_reduction <add>, %0, %cst [0] : vector<512x64xf32> to vector<64xf32>
    %2 = vector.shape_cast %1 : vector<64xf32> to vector<1x64xf32>
    %3 = vector.shape_cast %2 : vector<1x64xf32> to vector<1x1x64xf32>
    %c0_1 = arith.constant 0 : index
    %c0_2 = arith.constant 0 : index
    %c0_3 = arith.constant 0 : index
    %4 = vector.load %arg2[%c0_1, %c0_2, %c0_3] : memref<1x1x64xf32, #tpu.memory_space<vmem>>, vector<1x1x64xf32>
    tpu.vector_store %arg2[%c0_1, %c0_2, %c0_3], %3 {strides = array<i32>} : memref<1x1x64xf32, #tpu.memory_space<vmem>>, vector<1x1x64xf32>,
    %cst_4 = arith.constant dense<0.000000e+00> : vector<64x64xf32>
    %5 = tpu.matmul %0, %0, %cst_4 {dimension_numbers = #tpu.dot_dimension_numbers<[0], [0], [1], [1], [0, 1, 1, 1], [], []>} : vector<512x64xf32>, vector<512x64xf32>, vector<64x64xf32> -> vector<64x64xf32>
    %6 = vector.shape_cast %5 : vector<64x64xf32> to vector<1x64x64xf32>
    %c0_5 = arith.constant 0 : index
    %c0_6 = arith.constant 0 : index
    %c0_7 = arith.constant 0 : index
    %7 = vector.load %arg3[%c0_5, %c0_6, %c0_7] : memref<1x64x64xf32, #tpu.memory_space<vmem>>, vector<1x64x64xf32>
    tpu.vector_store %arg3[%c0_5, %c0_6, %c0_7], %6 {strides = array<i32>} : memref<1x64x64xf32, #tpu.memory_space<vmem>>, vector<1x64x64xf32>,
    return
  }
  func.func @transform_0(%arg0: i32) -> (i32, i32) {
    %c0_i32 = arith.constant 0 : i32
    %c0_i32_0 = arith.constant 0 : i32
    return %arg0, %c0_i32 : i32, i32
  }
  func.func @transform_1(%arg0: i32) -> (i32, i32, i32) {
    %c0_i32 = arith.constant 0 : i32
    %c0_i32_0 = arith.constant 0 : i32
    %c0_i32_1 = arith.constant 0 : i32
    return %arg0, %c0_i32, %c0_i32_0 : i32, i32, i32
  }
  func.func @transform_2(%arg0: i32) -> (i32, i32, i32) {
    %c0_i32 = arith.constant 0 : i32
    %c0_i32_0 = arith.constant 0 : i32
    %c0_i32_1 = arith.constant 0 : i32
    return %arg0, %c0_i32, %c0_i32_0 : i32, i32, i32
  }
}

module attributes {stable_mosaic.version = 11 : i64} {
  func.func @_conv12_kernel(%arg0: i32, %arg1: memref<256x64xf32, #tpu.memory_space<vmem>>, %arg2: memref<64x32xbf16, #tpu.memory_space<vmem>>, %arg3: memref<1x32xf32, #tpu.memory_space<vmem>>, %arg4: memref<1x32xf32, #tpu.memory_space<vmem>>, %arg5: memref<9x32x32xbf16, #tpu.memory_space<vmem>>, %arg6: memref<256x32xbf16, #tpu.memory_space<vmem>>, %arg7: memref<1x2x32xf32, #tpu.memory_space<vmem>>, %arg8: memref<18x18x32xf32, #tpu.memory_space<vmem>>) attributes {dimension_semantics = [#tpu.dimension_semantics<parallel>], iteration_bounds = array<i64: 2>, scalar_prefetch = 0 : i64, scratch_operands = 1 : i64, tpu.core_type = #tpu.core_type<tc>, window_params = [{transform_indices = @transform_0, window_bounds = array<i64: 256, 64>}, {pipeline_mode = #tpu.pipeline_mode<synchronous>, transform_indices = @transform_1, window_bounds = array<i64: 64, 32>}, {pipeline_mode = #tpu.pipeline_mode<synchronous>, transform_indices = @transform_2, window_bounds = array<i64: 1, 32>}, {pipeline_mode = #tpu.pipeline_mode<synchronous>, transform_indices = @transform_3, window_bounds = array<i64: 1, 32>}, {pipeline_mode = #tpu.pipeline_mode<synchronous>, transform_indices = @transform_4, window_bounds = array<i64: 9, 32, 32>}, {transform_indices = @transform_5, window_bounds = array<i64: 256, 32>}, {transform_indices = @transform_6, window_bounds = array<i64: 1, 2, 32>}]} {
    %c0 = arith.constant 0 : index
    %c0_0 = arith.constant 0 : index
    %0 = vector.load %arg1[%c0, %c0_0] : memref<256x64xf32, #tpu.memory_space<vmem>>, vector<256x64xf32>
    %1 = arith.truncf %0 : vector<256x64xf32> to vector<256x64xbf16>
    %c0_1 = arith.constant 0 : index
    %c0_2 = arith.constant 0 : index
    %2 = vector.load %arg2[%c0_1, %c0_2] : memref<64x32xbf16, #tpu.memory_space<vmem>>, vector<64x32xbf16>
    %cst = arith.constant dense<0.000000e+00> : vector<256x32xf32>
    %3 = tpu.matmul %1, %2, %cst {dimension_numbers = #tpu.dot_dimension_numbers<[1], [0], [0], [1], [0, 0, 1, 1], [], []>} : vector<256x64xbf16>, vector<64x32xbf16>, vector<256x32xf32> -> vector<256x32xf32>
    %c0_3 = arith.constant 0 : index
    %c0_4 = arith.constant 0 : index
    %4 = vector.load %arg3[%c0_3, %c0_4] : memref<1x32xf32, #tpu.memory_space<vmem>>, vector<1x32xf32>
    %5 = vector.broadcast %4 : vector<1x32xf32> to vector<256x32xf32>
    %6 = arith.mulf %3, %5 : vector<256x32xf32>
    %c0_5 = arith.constant 0 : index
    %c0_6 = arith.constant 0 : index
    %7 = vector.load %arg4[%c0_5, %c0_6] : memref<1x32xf32, #tpu.memory_space<vmem>>, vector<1x32xf32>
    %8 = vector.broadcast %7 : vector<1x32xf32> to vector<256x32xf32>
    %9 = arith.addf %6, %8 : vector<256x32xf32>
    %cst_7 = arith.constant 0.000000e+00 : f32
    %10 = vector.broadcast %cst_7 : f32 to vector<256x32xf32>
    %11 = arith.maximumf %9, %10 : vector<256x32xf32>
    %cst_8 = arith.constant 0.000000e+00 : f32
    %12 = vector.broadcast %cst_8 : f32 to vector<18x18x32xf32>
    %c0_9 = arith.constant 0 : index
    %c0_10 = arith.constant 0 : index
    %c0_11 = arith.constant 0 : index
    %13 = vector.load %arg8[%c0_9, %c0_10, %c0_11] : memref<18x18x32xf32, #tpu.memory_space<vmem>>, vector<18x18x32xf32>
    tpu.vector_store %arg8[%c0_9, %c0_10, %c0_11], %12 {strides = array<i32>} : memref<18x18x32xf32, #tpu.memory_space<vmem>>, vector<18x18x32xf32>,
    %14 = vector.shape_cast %11 : vector<256x32xf32> to vector<16x16x32xf32>
    %c1 = arith.constant 1 : index
    %c1_12 = arith.constant 1 : index
    %c0_13 = arith.constant 0 : index
    %15 = vector.load %arg8[%c1, %c1_12, %c0_13] : memref<18x18x32xf32, #tpu.memory_space<vmem>>, vector<16x16x32xf32>
    tpu.vector_store %arg8[%c1, %c1_12, %c0_13], %14 {strides = array<i32>} : memref<18x18x32xf32, #tpu.memory_space<vmem>>, vector<16x16x32xf32>,
    %cst_14 = arith.constant 0.000000e+00 : f32
    %16 = vector.broadcast %cst_14 : f32 to vector<256x32xf32>
    %c0_15 = arith.constant 0 : index
    %c0_16 = arith.constant 0 : index
    %c0_17 = arith.constant 0 : index
    %17 = vector.load %arg8[%c0_15, %c0_16, %c0_17] : memref<18x18x32xf32, #tpu.memory_space<vmem>>, vector<16x16x32xf32>
    %18 = vector.shape_cast %17 : vector<16x16x32xf32> to vector<256x32xf32>
    %19 = arith.truncf %18 : vector<256x32xf32> to vector<256x32xbf16>
    %c0_18 = arith.constant 0 : index
    %c0_19 = arith.constant 0 : index
    %c0_20 = arith.constant 0 : index
    %20 = vector.load %arg5[%c0_18, %c0_19, %c0_20] : memref<9x32x32xbf16, #tpu.memory_space<vmem>>, vector<1x32x32xbf16>
    %21 = vector.shape_cast %20 : vector<1x32x32xbf16> to vector<32x32xbf16>
    %cst_21 = arith.constant dense<0.000000e+00> : vector<256x32xf32>
    %22 = tpu.matmul %19, %21, %cst_21 {dimension_numbers = #tpu.dot_dimension_numbers<[1], [0], [0], [1], [0, 0, 1, 1], [], []>} : vector<256x32xbf16>, vector<32x32xbf16>, vector<256x32xf32> -> vector<256x32xf32>
    %23 = arith.addf %16, %22 : vector<256x32xf32>
    %c0_22 = arith.constant 0 : index
    %c1_23 = arith.constant 1 : index
    %c0_24 = arith.constant 0 : index
    %24 = vector.load %arg8[%c0_22, %c1_23, %c0_24] : memref<18x18x32xf32, #tpu.memory_space<vmem>>, vector<16x16x32xf32>
    %25 = vector.shape_cast %24 : vector<16x16x32xf32> to vector<256x32xf32>
    %26 = arith.truncf %25 : vector<256x32xf32> to vector<256x32xbf16>
    %c1_25 = arith.constant 1 : index
    %c0_26 = arith.constant 0 : index
    %c0_27 = arith.constant 0 : index
    %27 = vector.load %arg5[%c1_25, %c0_26, %c0_27] : memref<9x32x32xbf16, #tpu.memory_space<vmem>>, vector<1x32x32xbf16>
    %28 = vector.shape_cast %27 : vector<1x32x32xbf16> to vector<32x32xbf16>
    %cst_28 = arith.constant dense<0.000000e+00> : vector<256x32xf32>
    %29 = tpu.matmul %26, %28, %cst_28 {dimension_numbers = #tpu.dot_dimension_numbers<[1], [0], [0], [1], [0, 0, 1, 1], [], []>} : vector<256x32xbf16>, vector<32x32xbf16>, vector<256x32xf32> -> vector<256x32xf32>
    %30 = arith.addf %23, %29 : vector<256x32xf32>
    %c0_29 = arith.constant 0 : index
    %c2 = arith.constant 2 : index
    %c0_30 = arith.constant 0 : index
    %31 = vector.load %arg8[%c0_29, %c2, %c0_30] : memref<18x18x32xf32, #tpu.memory_space<vmem>>, vector<16x16x32xf32>
    %32 = vector.shape_cast %31 : vector<16x16x32xf32> to vector<256x32xf32>
    %33 = arith.truncf %32 : vector<256x32xf32> to vector<256x32xbf16>
    %c2_31 = arith.constant 2 : index
    %c0_32 = arith.constant 0 : index
    %c0_33 = arith.constant 0 : index
    %34 = vector.load %arg5[%c2_31, %c0_32, %c0_33] : memref<9x32x32xbf16, #tpu.memory_space<vmem>>, vector<1x32x32xbf16>
    %35 = vector.shape_cast %34 : vector<1x32x32xbf16> to vector<32x32xbf16>
    %cst_34 = arith.constant dense<0.000000e+00> : vector<256x32xf32>
    %36 = tpu.matmul %33, %35, %cst_34 {dimension_numbers = #tpu.dot_dimension_numbers<[1], [0], [0], [1], [0, 0, 1, 1], [], []>} : vector<256x32xbf16>, vector<32x32xbf16>, vector<256x32xf32> -> vector<256x32xf32>
    %37 = arith.addf %30, %36 : vector<256x32xf32>
    %c1_35 = arith.constant 1 : index
    %c0_36 = arith.constant 0 : index
    %c0_37 = arith.constant 0 : index
    %38 = vector.load %arg8[%c1_35, %c0_36, %c0_37] : memref<18x18x32xf32, #tpu.memory_space<vmem>>, vector<16x16x32xf32>
    %39 = vector.shape_cast %38 : vector<16x16x32xf32> to vector<256x32xf32>
    %40 = arith.truncf %39 : vector<256x32xf32> to vector<256x32xbf16>
    %c3 = arith.constant 3 : index
    %c0_38 = arith.constant 0 : index
    %c0_39 = arith.constant 0 : index
    %41 = vector.load %arg5[%c3, %c0_38, %c0_39] : memref<9x32x32xbf16, #tpu.memory_space<vmem>>, vector<1x32x32xbf16>
    %42 = vector.shape_cast %41 : vector<1x32x32xbf16> to vector<32x32xbf16>
    %cst_40 = arith.constant dense<0.000000e+00> : vector<256x32xf32>
    %43 = tpu.matmul %40, %42, %cst_40 {dimension_numbers = #tpu.dot_dimension_numbers<[1], [0], [0], [1], [0, 0, 1, 1], [], []>} : vector<256x32xbf16>, vector<32x32xbf16>, vector<256x32xf32> -> vector<256x32xf32>
    %44 = arith.addf %37, %43 : vector<256x32xf32>
    %c1_41 = arith.constant 1 : index
    %c1_42 = arith.constant 1 : index
    %c0_43 = arith.constant 0 : index
    %45 = vector.load %arg8[%c1_41, %c1_42, %c0_43] : memref<18x18x32xf32, #tpu.memory_space<vmem>>, vector<16x16x32xf32>
    %46 = vector.shape_cast %45 : vector<16x16x32xf32> to vector<256x32xf32>
    %47 = arith.truncf %46 : vector<256x32xf32> to vector<256x32xbf16>
    %c4 = arith.constant 4 : index
    %c0_44 = arith.constant 0 : index
    %c0_45 = arith.constant 0 : index
    %48 = vector.load %arg5[%c4, %c0_44, %c0_45] : memref<9x32x32xbf16, #tpu.memory_space<vmem>>, vector<1x32x32xbf16>
    %49 = vector.shape_cast %48 : vector<1x32x32xbf16> to vector<32x32xbf16>
    %cst_46 = arith.constant dense<0.000000e+00> : vector<256x32xf32>
    %50 = tpu.matmul %47, %49, %cst_46 {dimension_numbers = #tpu.dot_dimension_numbers<[1], [0], [0], [1], [0, 0, 1, 1], [], []>} : vector<256x32xbf16>, vector<32x32xbf16>, vector<256x32xf32> -> vector<256x32xf32>
    %51 = arith.addf %44, %50 : vector<256x32xf32>
    %c1_47 = arith.constant 1 : index
    %c2_48 = arith.constant 2 : index
    %c0_49 = arith.constant 0 : index
    %52 = vector.load %arg8[%c1_47, %c2_48, %c0_49] : memref<18x18x32xf32, #tpu.memory_space<vmem>>, vector<16x16x32xf32>
    %53 = vector.shape_cast %52 : vector<16x16x32xf32> to vector<256x32xf32>
    %54 = arith.truncf %53 : vector<256x32xf32> to vector<256x32xbf16>
    %c5 = arith.constant 5 : index
    %c0_50 = arith.constant 0 : index
    %c0_51 = arith.constant 0 : index
    %55 = vector.load %arg5[%c5, %c0_50, %c0_51] : memref<9x32x32xbf16, #tpu.memory_space<vmem>>, vector<1x32x32xbf16>
    %56 = vector.shape_cast %55 : vector<1x32x32xbf16> to vector<32x32xbf16>
    %cst_52 = arith.constant dense<0.000000e+00> : vector<256x32xf32>
    %57 = tpu.matmul %54, %56, %cst_52 {dimension_numbers = #tpu.dot_dimension_numbers<[1], [0], [0], [1], [0, 0, 1, 1], [], []>} : vector<256x32xbf16>, vector<32x32xbf16>, vector<256x32xf32> -> vector<256x32xf32>
    %58 = arith.addf %51, %57 : vector<256x32xf32>
    %c2_53 = arith.constant 2 : index
    %c0_54 = arith.constant 0 : index
    %c0_55 = arith.constant 0 : index
    %59 = vector.load %arg8[%c2_53, %c0_54, %c0_55] : memref<18x18x32xf32, #tpu.memory_space<vmem>>, vector<16x16x32xf32>
    %60 = vector.shape_cast %59 : vector<16x16x32xf32> to vector<256x32xf32>
    %61 = arith.truncf %60 : vector<256x32xf32> to vector<256x32xbf16>
    %c6 = arith.constant 6 : index
    %c0_56 = arith.constant 0 : index
    %c0_57 = arith.constant 0 : index
    %62 = vector.load %arg5[%c6, %c0_56, %c0_57] : memref<9x32x32xbf16, #tpu.memory_space<vmem>>, vector<1x32x32xbf16>
    %63 = vector.shape_cast %62 : vector<1x32x32xbf16> to vector<32x32xbf16>
    %cst_58 = arith.constant dense<0.000000e+00> : vector<256x32xf32>
    %64 = tpu.matmul %61, %63, %cst_58 {dimension_numbers = #tpu.dot_dimension_numbers<[1], [0], [0], [1], [0, 0, 1, 1], [], []>} : vector<256x32xbf16>, vector<32x32xbf16>, vector<256x32xf32> -> vector<256x32xf32>
    %65 = arith.addf %58, %64 : vector<256x32xf32>
    %c2_59 = arith.constant 2 : index
    %c1_60 = arith.constant 1 : index
    %c0_61 = arith.constant 0 : index
    %66 = vector.load %arg8[%c2_59, %c1_60, %c0_61] : memref<18x18x32xf32, #tpu.memory_space<vmem>>, vector<16x16x32xf32>
    %67 = vector.shape_cast %66 : vector<16x16x32xf32> to vector<256x32xf32>
    %68 = arith.truncf %67 : vector<256x32xf32> to vector<256x32xbf16>
    %c7 = arith.constant 7 : index
    %c0_62 = arith.constant 0 : index
    %c0_63 = arith.constant 0 : index
    %69 = vector.load %arg5[%c7, %c0_62, %c0_63] : memref<9x32x32xbf16, #tpu.memory_space<vmem>>, vector<1x32x32xbf16>
    %70 = vector.shape_cast %69 : vector<1x32x32xbf16> to vector<32x32xbf16>
    %cst_64 = arith.constant dense<0.000000e+00> : vector<256x32xf32>
    %71 = tpu.matmul %68, %70, %cst_64 {dimension_numbers = #tpu.dot_dimension_numbers<[1], [0], [0], [1], [0, 0, 1, 1], [], []>} : vector<256x32xbf16>, vector<32x32xbf16>, vector<256x32xf32> -> vector<256x32xf32>
    %72 = arith.addf %65, %71 : vector<256x32xf32>
    %c2_65 = arith.constant 2 : index
    %c2_66 = arith.constant 2 : index
    %c0_67 = arith.constant 0 : index
    %73 = vector.load %arg8[%c2_65, %c2_66, %c0_67] : memref<18x18x32xf32, #tpu.memory_space<vmem>>, vector<16x16x32xf32>
    %74 = vector.shape_cast %73 : vector<16x16x32xf32> to vector<256x32xf32>
    %75 = arith.truncf %74 : vector<256x32xf32> to vector<256x32xbf16>
    %c8 = arith.constant 8 : index
    %c0_68 = arith.constant 0 : index
    %c0_69 = arith.constant 0 : index
    %76 = vector.load %arg5[%c8, %c0_68, %c0_69] : memref<9x32x32xbf16, #tpu.memory_space<vmem>>, vector<1x32x32xbf16>
    %77 = vector.shape_cast %76 : vector<1x32x32xbf16> to vector<32x32xbf16>
    %cst_70 = arith.constant dense<0.000000e+00> : vector<256x32xf32>
    %78 = tpu.matmul %75, %77, %cst_70 {dimension_numbers = #tpu.dot_dimension_numbers<[1], [0], [0], [1], [0, 0, 1, 1], [], []>} : vector<256x32xbf16>, vector<32x32xbf16>, vector<256x32xf32> -> vector<256x32xf32>
    %79 = arith.addf %72, %78 : vector<256x32xf32>
    %80 = arith.truncf %79 : vector<256x32xf32> to vector<256x32xbf16>
    %c0_71 = arith.constant 0 : index
    %c0_72 = arith.constant 0 : index
    %81 = vector.load %arg6[%c0_71, %c0_72] : memref<256x32xbf16, #tpu.memory_space<vmem>>, vector<256x32xbf16>
    tpu.vector_store %arg6[%c0_71, %c0_72], %80 {strides = array<i32>} : memref<256x32xbf16, #tpu.memory_space<vmem>>, vector<256x32xbf16>,
    %cst_73 = arith.constant dense<0.000000e+00> : vector<32xf32>
    %82 = vector.multi_reduction <add>, %79, %cst_73 [0] : vector<256x32xf32> to vector<32xf32>
    %83 = vector.shape_cast %82 : vector<32xf32> to vector<1x32xf32>
    %84 = arith.mulf %79, %79 : vector<256x32xf32>
    %cst_74 = arith.constant dense<0.000000e+00> : vector<32xf32>
    %85 = vector.multi_reduction <add>, %84, %cst_74 [0] : vector<256x32xf32> to vector<32xf32>
    %86 = vector.shape_cast %85 : vector<32xf32> to vector<1x32xf32>
    %87 = tpu.concatenate %83, %86 in 0 : vector<1x32xf32>, vector<1x32xf32> -> vector<2x32xf32>
    %88 = vector.shape_cast %87 : vector<2x32xf32> to vector<1x2x32xf32>
    %c0_75 = arith.constant 0 : index
    %c0_76 = arith.constant 0 : index
    %c0_77 = arith.constant 0 : index
    %89 = vector.load %arg7[%c0_75, %c0_76, %c0_77] : memref<1x2x32xf32, #tpu.memory_space<vmem>>, vector<1x2x32xf32>
    tpu.vector_store %arg7[%c0_75, %c0_76, %c0_77], %88 {strides = array<i32>} : memref<1x2x32xf32, #tpu.memory_space<vmem>>, vector<1x2x32xf32>,
    return
  }
  func.func @transform_0(%arg0: i32) -> (i32, i32) {
    %c0_i32 = arith.constant 0 : i32
    %c0_i32_0 = arith.constant 0 : i32
    return %arg0, %c0_i32 : i32, i32
  }
  func.func @transform_1(%arg0: i32) -> (i32, i32) {
    %c0_i32 = arith.constant 0 : i32
    %c0_i32_0 = arith.constant 0 : i32
    %c0_i32_1 = arith.constant 0 : i32
    return %c0_i32, %c0_i32_0 : i32, i32
  }
  func.func @transform_2(%arg0: i32) -> (i32, i32) {
    %c0_i32 = arith.constant 0 : i32
    %c0_i32_0 = arith.constant 0 : i32
    %c0_i32_1 = arith.constant 0 : i32
    return %c0_i32, %c0_i32_0 : i32, i32
  }
  func.func @transform_3(%arg0: i32) -> (i32, i32) {
    %c0_i32 = arith.constant 0 : i32
    %c0_i32_0 = arith.constant 0 : i32
    %c0_i32_1 = arith.constant 0 : i32
    return %c0_i32, %c0_i32_0 : i32, i32
  }
  func.func @transform_4(%arg0: i32) -> (i32, i32, i32) {
    %c0_i32 = arith.constant 0 : i32
    %c0_i32_0 = arith.constant 0 : i32
    %c0_i32_1 = arith.constant 0 : i32
    %c0_i32_2 = arith.constant 0 : i32
    return %c0_i32, %c0_i32_0, %c0_i32_1 : i32, i32, i32
  }
  func.func @transform_5(%arg0: i32) -> (i32, i32) {
    %c0_i32 = arith.constant 0 : i32
    %c0_i32_0 = arith.constant 0 : i32
    return %arg0, %c0_i32 : i32, i32
  }
  func.func @transform_6(%arg0: i32) -> (i32, i32, i32) {
    %c0_i32 = arith.constant 0 : i32
    %c0_i32_0 = arith.constant 0 : i32
    %c0_i32_1 = arith.constant 0 : i32
    return %arg0, %c0_i32, %c0_i32_0 : i32, i32, i32
  }
}

module attributes {stable_mosaic.version = 11 : i64} {
  func.func @_a2stats_kernel(%arg0: i32, %arg1: memref<512x32xbf16, #tpu.memory_space<vmem>>, %arg2: memref<1x32xf32, #tpu.memory_space<vmem>>, %arg3: memref<1x32xf32, #tpu.memory_space<vmem>>, %arg4: memref<1x1x32xf32, #tpu.memory_space<vmem>>, %arg5: memref<1x32x32xf32, #tpu.memory_space<vmem>>) attributes {dimension_semantics = [#tpu.dimension_semantics<parallel>], iteration_bounds = array<i64: 1>, scalar_prefetch = 0 : i64, scratch_operands = 0 : i64, tpu.core_type = #tpu.core_type<tc>, window_params = [{transform_indices = @transform_0, window_bounds = array<i64: 512, 32>}, {pipeline_mode = #tpu.pipeline_mode<synchronous>, transform_indices = @transform_1, window_bounds = array<i64: 1, 32>}, {pipeline_mode = #tpu.pipeline_mode<synchronous>, transform_indices = @transform_2, window_bounds = array<i64: 1, 32>}, {transform_indices = @transform_3, window_bounds = array<i64: 1, 1, 32>}, {transform_indices = @transform_4, window_bounds = array<i64: 1, 32, 32>}]} {
    %c0 = arith.constant 0 : index
    %c0_0 = arith.constant 0 : index
    %0 = vector.load %arg1[%c0, %c0_0] : memref<512x32xbf16, #tpu.memory_space<vmem>>, vector<512x32xbf16>
    %1 = arith.extf %0 : vector<512x32xbf16> to vector<512x32xf32>
    %c0_1 = arith.constant 0 : index
    %c0_2 = arith.constant 0 : index
    %2 = vector.load %arg2[%c0_1, %c0_2] : memref<1x32xf32, #tpu.memory_space<vmem>>, vector<1x32xf32>
    %3 = vector.broadcast %2 : vector<1x32xf32> to vector<512x32xf32>
    %4 = arith.mulf %1, %3 : vector<512x32xf32>
    %c0_3 = arith.constant 0 : index
    %c0_4 = arith.constant 0 : index
    %5 = vector.load %arg3[%c0_3, %c0_4] : memref<1x32xf32, #tpu.memory_space<vmem>>, vector<1x32xf32>
    %6 = vector.broadcast %5 : vector<1x32xf32> to vector<512x32xf32>
    %7 = arith.addf %4, %6 : vector<512x32xf32>
    %cst = arith.constant 0.000000e+00 : f32
    %8 = vector.broadcast %cst : f32 to vector<512x32xf32>
    %9 = arith.maximumf %7, %8 : vector<512x32xf32>
    %cst_5 = arith.constant dense<0.000000e+00> : vector<32xf32>
    %10 = vector.multi_reduction <add>, %9, %cst_5 [0] : vector<512x32xf32> to vector<32xf32>
    %11 = vector.shape_cast %10 : vector<32xf32> to vector<1x32xf32>
    %12 = vector.shape_cast %11 : vector<1x32xf32> to vector<1x1x32xf32>
    %c0_6 = arith.constant 0 : index
    %c0_7 = arith.constant 0 : index
    %c0_8 = arith.constant 0 : index
    %13 = vector.load %arg4[%c0_6, %c0_7, %c0_8] : memref<1x1x32xf32, #tpu.memory_space<vmem>>, vector<1x1x32xf32>
    tpu.vector_store %arg4[%c0_6, %c0_7, %c0_8], %12 {strides = array<i32>} : memref<1x1x32xf32, #tpu.memory_space<vmem>>, vector<1x1x32xf32>,
    %cst_9 = arith.constant dense<0.000000e+00> : vector<32x32xf32>
    %14 = tpu.matmul %9, %9, %cst_9 {dimension_numbers = #tpu.dot_dimension_numbers<[0], [0], [1], [1], [0, 1, 1, 1], [], []>} : vector<512x32xf32>, vector<512x32xf32>, vector<32x32xf32> -> vector<32x32xf32>
    %15 = vector.shape_cast %14 : vector<32x32xf32> to vector<1x32x32xf32>
    %c0_10 = arith.constant 0 : index
    %c0_11 = arith.constant 0 : index
    %c0_12 = arith.constant 0 : index
    %16 = vector.load %arg5[%c0_10, %c0_11, %c0_12] : memref<1x32x32xf32, #tpu.memory_space<vmem>>, vector<1x32x32xf32>
    tpu.vector_store %arg5[%c0_10, %c0_11, %c0_12], %15 {strides = array<i32>} : memref<1x32x32xf32, #tpu.memory_space<vmem>>, vector<1x32x32xf32>,
    return
  }
  func.func @transform_0(%arg0: i32) -> (i32, i32) {
    %c0_i32 = arith.constant 0 : i32
    %c0_i32_0 = arith.constant 0 : i32
    return %arg0, %c0_i32 : i32, i32
  }
  func.func @transform_1(%arg0: i32) -> (i32, i32) {
    %c0_i32 = arith.constant 0 : i32
    %c0_i32_0 = arith.constant 0 : i32
    %c0_i32_1 = arith.constant 0 : i32
    return %c0_i32, %c0_i32_0 : i32, i32
  }
  func.func @transform_2(%arg0: i32) -> (i32, i32) {
    %c0_i32 = arith.constant 0 : i32
    %c0_i32_0 = arith.constant 0 : i32
    %c0_i32_1 = arith.constant 0 : i32
    return %c0_i32, %c0_i32_0 : i32, i32
  }
  func.func @transform_3(%arg0: i32) -> (i32, i32, i32) {
    %c0_i32 = arith.constant 0 : i32
    %c0_i32_0 = arith.constant 0 : i32
    %c0_i32_1 = arith.constant 0 : i32
    return %arg0, %c0_i32, %c0_i32_0 : i32, i32, i32
  }
  func.func @transform_4(%arg0: i32) -> (i32, i32, i32) {
    %c0_i32 = arith.constant 0 : i32
    %c0_i32_0 = arith.constant 0 : i32
    %c0_i32_1 = arith.constant 0 : i32
    return %arg0, %c0_i32, %c0_i32_0 : i32, i32, i32
  }
}

module attributes {stable_mosaic.version = 11 : i64} {
  func.func @_final_kernel(%arg0: i32, %arg1: memref<512x32xbf16, #tpu.memory_space<vmem>>, %arg2: memref<512x64xf32, #tpu.memory_space<vmem>>, %arg3: memref<1x32xf32, #tpu.memory_space<vmem>>, %arg4: memref<1x32xf32, #tpu.memory_space<vmem>>, %arg5: memref<32x128xbf16, #tpu.memory_space<vmem>>, %arg6: memref<64x128xbf16, #tpu.memory_space<vmem>>, %arg7: memref<1x128xf32, #tpu.memory_space<vmem>>, %arg8: memref<512x128xf32, #tpu.memory_space<vmem>>) attributes {dimension_semantics = [#tpu.dimension_semantics<parallel>], iteration_bounds = array<i64: 1>, scalar_prefetch = 0 : i64, scratch_operands = 0 : i64, tpu.core_type = #tpu.core_type<tc>, window_params = [{transform_indices = @transform_0, window_bounds = array<i64: 512, 32>}, {transform_indices = @transform_1, window_bounds = array<i64: 512, 64>}, {pipeline_mode = #tpu.pipeline_mode<synchronous>, transform_indices = @transform_2, window_bounds = array<i64: 1, 32>}, {pipeline_mode = #tpu.pipeline_mode<synchronous>, transform_indices = @transform_3, window_bounds = array<i64: 1, 32>}, {pipeline_mode = #tpu.pipeline_mode<synchronous>, transform_indices = @transform_4, window_bounds = array<i64: 32, 128>}, {pipeline_mode = #tpu.pipeline_mode<synchronous>, transform_indices = @transform_5, window_bounds = array<i64: 64, 128>}, {pipeline_mode = #tpu.pipeline_mode<synchronous>, transform_indices = @transform_6, window_bounds = array<i64: 1, 128>}, {transform_indices = @transform_7, window_bounds = array<i64: 512, 128>}]} {
    %c0 = arith.constant 0 : index
    %c0_0 = arith.constant 0 : index
    %0 = vector.load %arg1[%c0, %c0_0] : memref<512x32xbf16, #tpu.memory_space<vmem>>, vector<512x32xbf16>
    %1 = arith.extf %0 : vector<512x32xbf16> to vector<512x32xf32>
    %c0_1 = arith.constant 0 : index
    %c0_2 = arith.constant 0 : index
    %2 = vector.load %arg3[%c0_1, %c0_2] : memref<1x32xf32, #tpu.memory_space<vmem>>, vector<1x32xf32>
    %3 = vector.broadcast %2 : vector<1x32xf32> to vector<512x32xf32>
    %4 = arith.mulf %1, %3 : vector<512x32xf32>
    %c0_3 = arith.constant 0 : index
    %c0_4 = arith.constant 0 : index
    %5 = vector.load %arg4[%c0_3, %c0_4] : memref<1x32xf32, #tpu.memory_space<vmem>>, vector<1x32xf32>
    %6 = vector.broadcast %5 : vector<1x32xf32> to vector<512x32xf32>
    %7 = arith.addf %4, %6 : vector<512x32xf32>
    %cst = arith.constant 0.000000e+00 : f32
    %8 = vector.broadcast %cst : f32 to vector<512x32xf32>
    %9 = arith.maximumf %7, %8 : vector<512x32xf32>
    %10 = arith.truncf %9 : vector<512x32xf32> to vector<512x32xbf16>
    %c0_5 = arith.constant 0 : index
    %c0_6 = arith.constant 0 : index
    %11 = vector.load %arg5[%c0_5, %c0_6] : memref<32x128xbf16, #tpu.memory_space<vmem>>, vector<32x128xbf16>
    %cst_7 = arith.constant dense<0.000000e+00> : vector<512x128xf32>
    %12 = tpu.matmul %10, %11, %cst_7 {dimension_numbers = #tpu.dot_dimension_numbers<[1], [0], [0], [1], [0, 0, 1, 1], [], []>} : vector<512x32xbf16>, vector<32x128xbf16>, vector<512x128xf32> -> vector<512x128xf32>
    %c0_8 = arith.constant 0 : index
    %c0_9 = arith.constant 0 : index
    %13 = vector.load %arg2[%c0_8, %c0_9] : memref<512x64xf32, #tpu.memory_space<vmem>>, vector<512x64xf32>
    %14 = arith.truncf %13 : vector<512x64xf32> to vector<512x64xbf16>
    %c0_10 = arith.constant 0 : index
    %c0_11 = arith.constant 0 : index
    %15 = vector.load %arg6[%c0_10, %c0_11] : memref<64x128xbf16, #tpu.memory_space<vmem>>, vector<64x128xbf16>
    %cst_12 = arith.constant dense<0.000000e+00> : vector<512x128xf32>
    %16 = tpu.matmul %14, %15, %cst_12 {dimension_numbers = #tpu.dot_dimension_numbers<[1], [0], [0], [1], [0, 0, 1, 1], [], []>} : vector<512x64xbf16>, vector<64x128xbf16>, vector<512x128xf32> -> vector<512x128xf32>
    %17 = arith.addf %12, %16 : vector<512x128xf32>
    %c0_13 = arith.constant 0 : index
    %c0_14 = arith.constant 0 : index
    %18 = vector.load %arg7[%c0_13, %c0_14] : memref<1x128xf32, #tpu.memory_space<vmem>>, vector<1x128xf32>
    %19 = vector.broadcast %18 : vector<1x128xf32> to vector<512x128xf32>
    %20 = arith.addf %17, %19 : vector<512x128xf32>
    %cst_15 = arith.constant 0.000000e+00 : f32
    %21 = vector.broadcast %cst_15 : f32 to vector<512x128xf32>
    %22 = arith.maximumf %20, %21 : vector<512x128xf32>
    %c0_16 = arith.constant 0 : index
    %c0_17 = arith.constant 0 : index
    %23 = vector.load %arg8[%c0_16, %c0_17] : memref<512x128xf32, #tpu.memory_space<vmem>>, vector<512x128xf32>
    tpu.vector_store %arg8[%c0_16, %c0_17], %22 {strides = array<i32>} : memref<512x128xf32, #tpu.memory_space<vmem>>, vector<512x128xf32>,
    return
  }
  func.func @transform_0(%arg0: i32) -> (i32, i32) {
    %c0_i32 = arith.constant 0 : i32
    %c0_i32_0 = arith.constant 0 : i32
    return %arg0, %c0_i32 : i32, i32
  }
  func.func @transform_1(%arg0: i32) -> (i32, i32) {
    %c0_i32 = arith.constant 0 : i32
    %c0_i32_0 = arith.constant 0 : i32
    return %arg0, %c0_i32 : i32, i32
  }
  func.func @transform_2(%arg0: i32) -> (i32, i32) {
    %c0_i32 = arith.constant 0 : i32
    %c0_i32_0 = arith.constant 0 : i32
    %c0_i32_1 = arith.constant 0 : i32
    return %c0_i32, %c0_i32_0 : i32, i32
  }
  func.func @transform_3(%arg0: i32) -> (i32, i32) {
    %c0_i32 = arith.constant 0 : i32
    %c0_i32_0 = arith.constant 0 : i32
    %c0_i32_1 = arith.constant 0 : i32
    return %c0_i32, %c0_i32_0 : i32, i32
  }
  func.func @transform_4(%arg0: i32) -> (i32, i32) {
    %c0_i32 = arith.constant 0 : i32
    %c0_i32_0 = arith.constant 0 : i32
    %c0_i32_1 = arith.constant 0 : i32
    return %c0_i32, %c0_i32_0 : i32, i32
  }
  func.func @transform_5(%arg0: i32) -> (i32, i32) {
    %c0_i32 = arith.constant 0 : i32
    %c0_i32_0 = arith.constant 0 : i32
    %c0_i32_1 = arith.constant 0 : i32
    return %c0_i32, %c0_i32_0 : i32, i32
  }
  func.func @transform_6(%arg0: i32) -> (i32, i32) {
    %c0_i32 = arith.constant 0 : i32
    %c0_i32_0 = arith.constant 0 : i32
    %c0_i32_1 = arith.constant 0 : i32
    return %c0_i32, %c0_i32_0 : i32, i32
  }
  func.func @transform_7(%arg0: i32) -> (i32, i32) {
    %c0_i32 = arith.constant 0 : i32
    %c0_i32_0 = arith.constant 0 : i32
    return %arg0, %c0_i32 : i32, i32
  }
}

</mosaic_0001>

<bundles_post_ra>
// kernel: _lambda_.4
= control target key start
LH: loop header
LB: loop body
LE: loop exit
PB: predicated region body
PF: predicated region fallthrough
CT: control target
= control target key end

     0   :  { %8 = vsyncpa [#allocation3], 0  ;;  %s926_s9 = smov [#allocation2]   ;;  %s1345_s0 = inlined_call_operand.hbm [shape: f32[512,64], index: 0, kind: input, shape index: {}]   ;;  %s1346_s1 = inlined_call_operand.vmem [shape: f32[1,1,64], index: 1, kind: output, shape index: {0}]   ;;  %s1347_s2 = inlined_call_operand.vmem [shape: f32[1,64,64], index: 2, kind: output, shape index: {1}]  }
   0x1   :  { %s14_s10 = sshll.u32 %s926_s9, 4  ;;  %s902_s13 = scalar_lea.hbm %s1345_s0, 8192  ;;  %s15_s10 = int_to_ptr.vmem [resolvable:$true] %s14_s10 }
   0x2   :  { %p903_p0 = scmp.ne.s32.totalorder %s1345_s0, %s902_s13  ;;  %p906_p1 = scmp.lt.u32.totalorder %s902_s13, %s1345_s0 }
   0x4   :  { %p908_p2 = pnand %p906_p1, %p903_p0 }
   0x6   :  { %911 = shalt.err (!%p908_p2)
}
   0x7   :  { %s912_s18 = scalar_lea.vmem %s15_s10, 8192  ;;  %p917_p4 = scmp.lt.s32.totalorder %s15_s10, %s15_s10 }
   0x8   :  { %p913_p3 = scmp.ne.s32.totalorder %s15_s10, %s912_s18  ;;  %p918_p5 = scmp.lt.s32.totalorder %s912_s18, %s912_s18 }
   0xa   :  { %p919_p6 = por %p918_p5, %p917_p4 }
   0xc   :  { %p920_p7 = pnand %p919_p6, %p913_p3 }
   0xe   :  { %923 = shalt.err (!%p920_p7)
}
   0xf   :  { %s927_s19 = smov 128   ;;  %s928_s20 = smov 8  }
  0x10   :  { %20 = dma.hbm_to_vmem [thread:$0]  %s1345_s0, 8192, %s15_s10, [#allocation3], %s927_s19, %s927_s19, %s928_s20  }
  0x11   :  { %924 = dma.done.wait [#allocation3], 8192  }
  0x12   :  { %925 = vsyncadd [#allocation3], 4294959104  ;;  %vm88_vm0 = vcmask 523264   ;;  %v956_v0 = vld [vmem:[#allocation2 + $0x80] sm:$0xff]  ;;  %v968_v6 = vld [vmem:[#allocation2 + $0x88] sm:$0xff]  ;;  %vm222_vm1 = vcmask 516096  }
  0x13   :  { %v958_v1 = vld [vmem:[#allocation2 + $0x180] sm:$0xff]  ;;  %v970_v7 = vld [vmem:[#allocation2 + $0x188] sm:$0xff]  ;;  %v984_v15 = vld [vmem:[#allocation2 + $0x90] sm:$0xff] }
  0x14   :  { %v960_v2 = vld [vmem:[#allocation2] sm:$0xff]  ;;  %v758_v3 = vpack.i.bf16 %v958_v1, %v956_v0  ;;  %v974_v9 = vld [vmem:[#allocation2 + $0x8] sm:$0xff]  ;;  %v760_v11 = vpack.i.bf16 %v970_v7, %v968_v6  ;;  %v986_v16 = vld [vmem:[#allocation2 + $0x190] sm:$0xff] }
  0x15   :  { %v964_v4 = vld [vmem:[#allocation2 + $0x100] sm:$0xff]  ;;  %v89_v5 = vsel %vm88_vm0, %v960_v2, 0.0  ;;  %v976_v10 = vld [vmem:[#allocation2 + $0x108] sm:$0xff]  ;;  %v90_v12 = vsel %vm88_vm0, %v974_v9, 0.0  ;;  %v988_v17 = vld [vmem:[#allocation2 + $0x10] sm:$0xff]  ;;  %v762_v22 = vpack.i.bf16 %v986_v16, %v984_v15 }
  0x16   :  { %v830_v8 = vpack.i.bf16 %v964_v4, %v960_v2  ;;  %759 = vxpose.xlu0.b32.start [1/16] (narrow) %v758_v3, 64  ;;  %v832_v13 = vpack.i.bf16 %v976_v10, %v974_v9  ;;  %v91_v14 = vadd.f32 %v90_v12, %v89_v5  ;;  %v990_v18 = vld [vmem:[#allocation2 + $0x110] sm:$0xff]  ;;  %v92_v19 = vsel %vm88_vm0, %v988_v17, 0.0  ;;  %v994_v21 = vld [vmem:[#allocation2 + $0x18] sm:$0xff]  ;;  %v1006_v28 = vld [vmem:[#allocation2 + $0x20] sm:$0xff] }
  0x17   :  { %v94_v23 = vsel %vm88_vm0, %v994_v21, 0.0  ;;  %v834_v24 = vpack.i.bf16 %v990_v18, %v988_v17  ;;  %v1002_v25 = vld [vmem:[#allocation2 + $0x98] sm:$0xff]  ;;  %v96_v30 = vsel %vm88_vm0, %v1006_v28, 0.0  ;;  %v1012_v31 = vld [vmem:[#allocation2 + $0x28] sm:$0xff]  ;;  %v1018_v35 = vld [vmem:[#allocation2 + $0x30] sm:$0xff] }
  0x18   :  { %831 = vxpose.xlu1.b32.start [1/16] (narrow) %v830_v8, 64  ;;  %v93_v20 = vadd.f32 %v92_v19, %v91_v14  ;;  %v1004_v26 = vld [vmem:[#allocation2 + $0x198] sm:$0xff]  ;;  %v98_v33 = vsel %vm88_vm0, %v1012_v31, 0.0  ;;  %v1022_v37 = vld [vmem:[#allocation2 + $0xa0] sm:$0xff]  ;;  %v100_v40 = vsel %vm88_vm0, %v1018_v35, 0.0  ;;  %v1042_v49 = vld [vmem:[#allocation2 + $0xa8] sm:$0xff] }
  0x19   :  { %v1008_v29 = vld [vmem:[#allocation2 + $0x118] sm:$0xff]  ;;  %v764_v34 = vpack.i.bf16 %v1004_v26, %v1002_v25  ;;  %v1024_v38 = vld [vmem:[#allocation2 + $0x1a0] sm:$0xff]  ;;  %v1044_v50 = vld [vmem:[#allocation2 + $0x1a8] sm:$0xff] }
  0x1a   :  { %761 = vxpose.xlu0.b32.cont [2/16] (narrow) %v760_v11, 64  ;;  %v95_v27 = vadd.f32 %v94_v23, %v93_v20  ;;  %v836_v36 = vpack.i.bf16 %v1008_v29, %v994_v21  ;;  %v1028_v41 = vld [vmem:[#allocation2 + $0x120] sm:$0xff]  ;;  %v1030_v42 = vld [vmem:[#allocation2 + $0x38] sm:$0xff]  ;;  %v766_v46 = vpack.i.bf16 %v1024_v38, %v1022_v37  ;;  %v1046_v52 = vld [vmem:[#allocation2 + $0x48] sm:$0xff]  ;;  %v768_v57 = vpack.i.bf16 %v1044_v50, %v1042_v49 }
  0x1b   :  { %v102_v44 = vsel %vm88_vm0, %v1030_v42, 0.0  ;;  %v1034_v45 = vld [vmem:[#allocation2 + $0x40] sm:$0xff]  ;;  %v838_v48 = vpack.i.bf16 %v1028_v41, %v1006_v28  ;;  %v1048_v53 = vld [vmem:[#allocation2 + $0x128] sm:$0xff]  ;;  %v106_v54 = vsel %vm88_vm0, %v1046_v52, 0.0  ;;  %v1052_v56 = vld [vmem:[#allocation2 + $0x50] sm:$0xff] }
  0x1c   :  { %833 = vxpose.xlu1.b32.cont [2/16] (narrow) %v832_v13, 64  ;;  %v97_v32 = vadd.f32 %v96_v30, %v95_v27  ;;  %v104_v47 = vsel %vm88_vm0, %v1034_v45, 0.0  ;;  %v108_v58 = vsel %vm88_vm0, %v1052_v56, 0.0  ;;  %v840_v59 = vpack.i.bf16 %v1048_v53, %v1012_v31  ;;  %v1060_v60 = vld [vmem:[#allocation2 + $0xb0] sm:$0xff]  ;;  %v1064_v63 = vld [vmem:[#allocation2 + $0x58] sm:$0xff]  ;;  %v1070_v11 = vld [vmem:[#allocation2 + $0x60] sm:$0xff] }
  0x1d   :  { %v1062_v61 = vld [vmem:[#allocation2 + $0x1b0] sm:$0xff]  ;;  %v110_v5 = vsel %vm88_vm0, %v1064_v63, 0.0  ;;  %v1074_v13 = vld [vmem:[#allocation2 + $0xb8] sm:$0xff]  ;;  %v112_v14 = vsel %vm88_vm0, %v1070_v11, 0.0 }
  0x1e   :  { %763 = vxpose.xlu0.b32.cont [3/16] (narrow) %v762_v22, 64  ;;  %v99_v39 = vadd.f32 %v98_v33, %v97_v32  ;;  %v1066_v3 = vld [vmem:[#allocation2 + $0x130] sm:$0xff]  ;;  %v770_v12 = vpack.i.bf16 %v1062_v61, %v1060_v60  ;;  %v1080_v20 = vld [vmem:[#allocation2 + $0x1b8] sm:$0xff] }
  0x1f   :  { %v842_v19 = vpack.i.bf16 %v1066_v3, %v1018_v35  ;;  %v1082_v22 = vld [vmem:[#allocation2 + $0x138] sm:$0xff]  ;;  %v1088_v32 = vld [vmem:[#allocation2 + $0x70] sm:$0xff]  ;;  %v772_v33 = vpack.i.bf16 %v1080_v20, %v1074_v13 }
  0x20   :  { %835 = vxpose.xlu1.b32.cont [3/16] (narrow) %v834_v24, 64  ;;  %v101_v43 = vadd.f32 %v100_v40, %v99_v39  ;;  %v1084_v24 = vld [vmem:[#allocation2 + $0x68] sm:$0xff]  ;;  %v1096_v39 = vld [vmem:[#allocation2 + $0xc0] sm:$0xff] }
  0x21   :  { %v114_v27 = vsel %vm88_vm0, %v1084_v24, 0.0  ;;  %v1098_v40 = vld [vmem:[#allocation2 + $0x1c0] sm:$0xff] }
  0x22   :  { %765 = vxpose.xlu0.b32.cont [4/16] (narrow) %v764_v34, 64  ;;  %v103_v51 = vadd.f32 %v102_v44, %v101_v43  ;;  %v844_v34 = vpack.i.bf16 %v1082_v22, %v1030_v42  ;;  %v1100_v44 = vld [vmem:[#allocation2 + $0x78] sm:$0xff] }
  0x24   :  { %837 = vxpose.xlu1.b32.cont [4/16] (narrow) %v836_v36, 64  ;;  %v105_v55 = vadd.f32 %v104_v47, %v103_v51  ;;  %v116_v36 = vsel %vm88_vm0, %v1088_v32, 0.0  ;;  %v723_v47 = vpack.c.bf16 %v970_v7, %v958_v1  ;;  %v1108_v51 = vld [vmem:[#allocation2 + $0x140] sm:$0xff] }
  0x26   :  { %767 = vxpose.xlu0.b32.cont [5/16] (narrow) %v766_v46, 64  ;;  %v107_v62 = vadd.f32 %v106_v54, %v105_v55  ;;  %v691_v46 = vpack.c.bf16 %v968_v6, %v956_v0  ;;  %v118_v54 = vsel %vm88_vm0, %v1100_v44, 0.0  ;;  %v725_v55 = vpack.c.bf16 %v976_v10, %v964_v4  ;;  %724 = vmatprep.subr.bf16.mxu1 %v723_v47 }
  0x27   :  { %v126_v47 = vsel %vm88_vm0, %v1002_v25, 0.0 }
  0x28   :  { %839 = vxpose.xlu1.b32.cont [5/16] (narrow) %v838_v48, 64  ;;  %v109_v8 = vadd.f32 %v108_v58, %v107_v62  ;;  %v693_v48 = vpack.c.bf16 %v974_v9, %v960_v2  ;;  %v727_v58 = vpack.c.bf16 %v1004_v26, %v986_v16  ;;  %692 = vmatprep.subr.bf16.mxu0 %v691_v46  ;;  %v120_v2 = vsel %vm88_vm0, %v956_v0, 0.0 }
  0x29   :  { %v774_v9 = vpack.i.bf16 %v1098_v40, %v1096_v39  ;;  %v697_v62 = vpack.c.bf16 %v994_v21, %v988_v17  ;;  %726 = vmatpush3.bf16.msra.mxu1 %v725_v55  ;;  %v729_v0 = vpack.c.bf16 %v1008_v29, %v990_v18  ;;  %v699_v17 = vpack.c.bf16 %v1042_v49, %v1022_v37 }
  0x2a   :  { %769 = vxpose.xlu0.b32.cont [6/16] (narrow) %v768_v57, 64  ;;  %v111_v23 = vadd.f32 %v110_v5, %v109_v8  ;;  %v695_v57 = vpack.c.bf16 %v1002_v25, %v984_v15  ;;  %694 = vmatpush3.bf16.msra.mxu0 %v693_v48  ;;  %v846_v5 = vpack.i.bf16 %v1108_v51, %v1034_v45  ;;  %v1126_v8 = vld [vmem:[#allocation2 + $0xc8] sm:$0xff]  ;;  %v1156_v48 = vld [vmem:[#allocation2 + $0x150] sm:$0xff]  ;;  %v128_v55 = vsel %vm88_vm0, %v1022_v37, 0.0 }
  0x2b   :  { %728 = vmatprep.subr.bf16.mxu1 %v727_v58  ;;  %v731_v21 = vpack.c.bf16 %v1044_v50, %v1024_v38  ;;  %v705_v25 = vpack.c.bf16 %v1030_v42, %v1018_v35  ;;  %v850_v58 = vpack.i.bf16 %v1156_v48, %v1052_v56  ;;  %v737_v37 = vpack.c.bf16 %v1082_v22, %v1066_v3 }
  0x2c   :  { %841 = vxpose.xlu1.b32.cont [6/16] (narrow) %v840_v59, 64  ;;  %v113_v30 = vadd.f32 %v112_v14, %v111_v23  ;;  %v1134_v23 = vld [vmem:[#allocation2 + $0x148] sm:$0xff]  ;;  %696 = vmatprep.subr.bf16.mxu0 %v695_v57  ;;  %v707_v35 = vpack.c.bf16 %v1126_v8, %v1096_v39 }
  0x2d   :  { %730 = vmatpush3.bf16.msra.mxu1 %v729_v0  ;;  %v132_v0 = vsel %vm88_vm0, %v1060_v60, 0.0 }
  0x2e   :  { %771 = vxpose.xlu0.b32.cont [7/16] (narrow) %v770_v12, 64  ;;  %v115_v43 = vadd.f32 %v114_v27, %v113_v30  ;;  %v1128_v12 = vld [vmem:[#allocation2 + $0x1c8] sm:$0xff]  ;;  %v124_v30 = vsel %vm88_vm0, %v984_v15, 0.0  ;;  %698 = vmatpush3.bf16.msra.mxu0 %v697_v62  ;;  %v733_v15 = vpack.c.bf16 %v1048_v53, %v1028_v41  ;;  %v130_v62 = vsel %vm88_vm0, %v1042_v49, 0.0 }
  0x2f   :  { %700 = vmatprep.subr.bf16.mxu0 %v699_v17  ;;  %732 = vmatprep.subr.bf16.mxu1 %v731_v21  ;;  %v739_v42 = vpack.c.bf16 %v1128_v12, %v1098_v40  ;;  %v709_v49 = vpack.c.bf16 %v1046_v52, %v1034_v45  ;;  %v52_v21 = vld [vmem:[#allocation2 + $0xe0] sm:$0xff] }
  0x30   :  { %843 = vxpose.xlu1.b32.cont [7/16] (narrow) %v842_v19, 64  ;;  %v117_v59 = vadd.f32 %v116_v36, %v115_v43  ;;  %v122_v19 = vsel %vm88_vm0, %v968_v6, 0.0  ;;  %v701_v6 = vpack.c.bf16 %v1012_v31, %v1006_v28  ;;  %v1148_v36 = vld [vmem:[#allocation2 + $0xd0] sm:$0xff]  ;;  %v703_v28 = vpack.c.bf16 %v1074_v13, %v1060_v60 }
  0x31   :  { %v1150_v43 = vld [vmem:[#allocation2 + $0x1d0] sm:$0xff]  ;;  %v735_v31 = vpack.c.bf16 %v1080_v20, %v1062_v61  ;;  %734 = vmatpush3.bf16.msra.mxu1 %v733_v15  ;;  %v741_v60 = vpack.c.bf16 %v1134_v23, %v1108_v51 }
  0x32   :  { %773 = vxpose.xlu0.b32.cont [8/16] (narrow) %v772_v33, 64  ;;  %v119_v14 = vadd.f32 %v118_v54, %v117_v59  ;;  %v776_v33 = vpack.i.bf16 %v1128_v12, %v1126_v8  ;;  %v778_v57 = vpack.i.bf16 %v1150_v43, %v1148_v36  ;;  %702 = vmatpush3.bf16.msra.mxu0 %v701_v6  ;;  %v1170_v59 = vld [vmem:[#allocation2 + $0xd8] sm:$0xff]  ;;  %v1198_v6 = vld [vmem:[#allocation2 + $0x160] sm:$0xff] }
  0x33   :  { %704 = vmatprep.subr.bf16.mxu0 %v703_v28  ;;  %736 = vmatprep.subr.bf16.mxu1 %v735_v31  ;;  %v711_v45 = vpack.c.bf16 %v1170_v59, %v1148_v36  ;;  %v53_v28 = vld [vmem:[#allocation2 + $0xe8] sm:$0xff] }
  0x34   :  { %845 = vxpose.xlu1.b32.cont [8/16] (narrow) %v844_v34, 64  ;;  %v121_v27 = vadd.f32 %v120_v2, %v119_v14  ;;  %v848_v34 = vpack.i.bf16 %v1134_v23, %v1046_v52  ;;  %v1172_v2 = vld [vmem:[#allocation2 + $0x1d8] sm:$0xff]  ;;  %v1211_v31 = vld [vmem:[#allocation2 + $0x1e8] sm:$0xff] }
  0x35   :  { %738 = vmatpush3.bf16.msra.mxu1 %v737_v37  ;;  %v743_v52 = vpack.c.bf16 %v1172_v2, %v1150_v43  ;;  %v54_v37 = vld [vmem:[#allocation2 + $0xf0] sm:$0xff] }
  0x36   :  { %775 = vxpose.xlu0.b32.cont [9/16] (narrow) %v774_v9, 64  ;;  %v123_v46 = vadd.f32 %v122_v19, %v121_v27  ;;  %v780_v19 = vpack.i.bf16 %v1172_v2, %v1170_v59  ;;  %706 = vmatpush3.bf16.msra.mxu0 %v705_v25  ;;  %v1192_v27 = vld [vmem:[#allocation2 + $0x1e0] sm:$0xff] }
  0x37   :  { %708 = vmatprep.subr.bf16.mxu0 %v707_v35  ;;  %740 = vmatprep.subr.bf16.mxu1 %v739_v42  ;;  %v782_v15 = vpack.i.bf16 %v1192_v27, %v52_v21  ;;  %v1228_v35 = vld [vmem:[#allocation2 + $0x1f0] sm:$0xff]  ;;  %v55_v42 = vld [vmem:[#allocation2 + $0xf8] sm:$0xff] }
  0x38   :  { %847 = vxpose.xlu1.b32.cont [9/16] (narrow) %v846_v5, 64  ;;  %v125_v54 = vadd.f32 %v124_v30, %v123_v46  ;;  %v1178_v5 = vld [vmem:[#allocation2 + $0x158] sm:$0xff]  ;;  %v136_v46 = vsel %vm88_vm0, %v1096_v39, 0.0  ;;  %v138_v39 = vsel %vm88_vm0, %v1126_v8, 0.0  ;;  %v717_v8 = vpack.c.bf16 %v1084_v24, %v1070_v11 }
  0x39   :  { %v852_v17 = vpack.i.bf16 %v1178_v5, %v1064_v63  ;;  %742 = vmatpush3.bf16.msra.mxu1 %v741_v60  ;;  %v786_v60 = vpack.i.bf16 %v1228_v35, %v54_v37 }
  0x3a   :  { %777 = vxpose.xlu0.b32.cont [10/16] (narrow) %v776_v33, 64  ;;  %v127_v9 = vadd.f32 %v126_v47, %v125_v54  ;;  %v134_v33 = vsel %vm88_vm0, %v1074_v13, 0.0  ;;  %710 = vmatpush3.bf16.msra.mxu0 %v709_v49  ;;  %v713_v13 = vpack.c.bf16 %v1064_v63, %v1052_v56  ;;  %v854_v47 = vpack.i.bf16 %v1198_v6, %v1070_v11  ;;  %v70_v49 = vld [vmem:[#allocation2 + $0x170] sm:$0xff] }
  0x3b   :  { %712 = vmatprep.subr.bf16.mxu0 %v711_v45  ;;  %744 = vmatprep.subr.bf16.mxu1 %v743_v52  ;;  %v715_v56 = vpack.c.bf16 %v53_v28, %v52_v21  ;;  %v747_v63 = vpack.c.bf16 %v1211_v31, %v1192_v27  ;;  %v721_v45 = vpack.c.bf16 %v1100_v44, %v1088_v32 }
  0x3c   :  { %849 = vxpose.xlu1.b32.cont [10/16] (narrow) %v848_v34, 64  ;;  %v129_v14 = vadd.f32 %v128_v55, %v127_v9  ;;  %v745_v55 = vpack.c.bf16 %v1178_v5, %v1156_v48  ;;  %v784_v9 = vpack.i.bf16 %v1211_v31, %v53_v28 }
  0x3e   :  { %779 = vxpose.xlu0.b32.cont [11/16] (narrow) %v778_v57, 64  ;;  %v131_v30 = vadd.f32 %v130_v62, %v129_v14  ;;  %v1217_v57 = vld [vmem:[#allocation2 + $0x168] sm:$0xff]  ;;  %714 = vmatpush3.bf16.msra.mxu0 %v713_v13  ;;  %v1230_v14 = vld [vmem:[#allocation2 + $0x1f8] sm:$0xff] }
  0x3f   :  { %v856_v62 = vpack.i.bf16 %v1217_v57, %v1084_v24  ;;  %746 = vmatpush3.bf16.msra.mxu1 %v745_v55  ;;  %716 = vmatprep.subr.bf16.mxu0 %v715_v56  ;;  %v751_v11 = vpack.c.bf16 %v1230_v14, %v1228_v35  ;;  %v719_v24 = vpack.c.bf16 %v55_v42, %v54_v37  ;;  %v154_v56 = vsel %vm88_vm0, %v976_v10, 0.0 }
  0x40   :  { %851 = vxpose.xlu1.b32.cont [11/16] (narrow) %v850_v58, 64  ;;  %v133_v34 = vadd.f32 %v132_v0, %v131_v30  ;;  %v140_v58 = vsel %vm88_vm0, %v1148_v36, 0.0  ;;  %v749_v36 = vpack.c.bf16 %v1217_v57, %v1198_v6  ;;  %748 = vmatprep.subr.bf16.mxu1 %v747_v63  ;;  %v144_v30 = vsel %vm88_vm0, %v52_v21, 0.0 }
  0x41   :  { %v148_v21 = vsel %vm88_vm0, %v54_v37, 0.0  ;;  %v788_v13 = vpack.i.bf16 %v1230_v14, %v55_v42  ;;  %v160_v37 = vsel %vm88_vm0, %v1028_v41, 0.0  ;;  %v164_v10 = vsel %vm88_vm0, %v1066_v3, 0.0 }
  0x42   :  { %781 = vxpose.xlu0.b32.cont [12/16] (narrow) %v780_v19, 64  ;;  %v135_v54 = vadd.f32 %v134_v33, %v133_v34  ;;  %v142_v19 = vsel %vm88_vm0, %v1170_v59, 0.0  ;;  %v71_v33 = vld [vmem:[#allocation2 + $0x178] sm:$0xff]  ;;  %718 = vmatpush3.bf16.msra.mxu0 %v717_v8  ;;  %v858_v59 = vpack.i.bf16 %v70_v49, %v1088_v32  ;;  %v150_v32 = vsel %vm88_vm0, %v55_v42, 0.0 }
  0x43   :  { %750 = vmatpush3.bf16.msra.mxu1 %v749_v36  ;;  %v753_v34 = vpack.c.bf16 %v71_v33, %v70_v49  ;;  %720 = vmatprep.subr.bf16.mxu0 %v719_v24  ;;  %v170_v41 = vsel %vm88_vm0, %v1134_v23, 0.0  ;;  %v174_v3 = vsel %vm88_vm0, %v1178_v5, 0.0  ;;  %v186_v5 = vsel %vm88_vm0, %v970_v7, 0.0 }
  0x44   :  { %853 = vxpose.xlu1.b32.cont [12/16] (narrow) %v852_v17, 64  ;;  %v137_v25 = vadd.f32 %v136_v46, %v135_v54  ;;  %v146_v46 = vsel %vm88_vm0, %v53_v28, 0.0  ;;  %752 = vmatprep.subr.bf16.mxu1 %v751_v11  ;;  %v152_v28 = vsel %vm88_vm0, %v964_v4, 0.0  ;;  %v162_v4 = vsel %vm88_vm0, %v1048_v53, 0.0 }
  0x45   :  { %v172_v53 = vsel %vm88_vm0, %v1156_v48, 0.0  ;;  %v184_v48 = vsel %vm88_vm0, %v958_v1, 0.0  ;;  %v194_v1 = vsel %vm88_vm0, %v1044_v50, 0.0  ;;  %v196_v7 = vsel %vm88_vm0, %v1062_v61, 0.0 }
  0x46   :  { %783 = vxpose.xlu0.b32.cont [13/16] (narrow) %v782_v15, 64  ;;  %v139_v0 = vadd.f32 %v138_v39, %v137_v25  ;;  %722 = vmatpush3.bf16.msra.mxu0 %v721_v45  ;;  %v156_v25 = vsel %vm88_vm0, %v990_v18, 0.0  ;;  %v166_v18 = vsel %vm88_vm0, %v1082_v22, 0.0  ;;  %v176_v22 = vsel %vm88_vm0, %v1198_v6, 0.0 }
  0x47   :  { %754 = vmatpush3.bf16.msra.mxu1 %v753_v34  ;;  %v182_v45 = vsel %vm88_vm0, %v71_v33, 0.0  ;;  %v188_v6 = vsel %vm88_vm0, %v986_v16, 0.0  ;;  %v198_v16 = vsel %vm88_vm0, %v1080_v20, 0.0  ;;  %v204_v50 = vsel %vm88_vm0, %v1150_v43, 0.0 }
  0x48   :  { %855 = vxpose.xlu1.b32.cont [13/16] (narrow) %v854_v47, 64  ;;  %v141_v17 = vadd.f32 %v140_v58, %v139_v0  ;;  %v860_v47 = vpack.i.bf16 %v71_v33, %v1100_v44  ;;  %v158_v44 = vsel %vm88_vm0, %v1008_v29, 0.0  ;;  %v168_v29 = vsel %vm88_vm0, %v1108_v51, 0.0 }
  0x49   :  { %v178_v51 = vsel %vm88_vm0, %v1217_v57, 0.0  ;;  %v190_v57 = vsel %vm88_vm0, %v1004_v26, 0.0  ;;  %v192_v33 = vsel %vm88_vm0, %v1024_v38, 0.0  ;;  %v200_v26 = vsel %vm88_vm0, %v1098_v40, 0.0 }
  0x4a   :  { %785 = vxpose.xlu0.b32.cont [14/16] (narrow) %v784_v9, 64  ;;  %v143_v52 = vadd.f32 %v142_v19, %v141_v17  ;;  %v202_v38 = vsel %vm88_vm0, %v1128_v12, 0.0  ;;  %v206_v61 = vsel %vm88_vm0, %v1172_v2, 0.0  ;;  %v208_v20 = vsel %vm88_vm0, %v1192_v27, 0.0 }
  0x4b   :  { %v210_v40 = vsel %vm88_vm0, %v1211_v31, 0.0  ;;  %v212_v12 = vsel %vm88_vm0, %v1228_v35, 0.0  ;;  %v214_v43 = vsel %vm88_vm0, %v1230_v14, 0.0 }
  0x4c   :  { %857 = vxpose.xlu1.b32.cont [14/16] (narrow) %v856_v62, 64  ;;  %v145_v15 = vadd.f32 %v144_v30, %v143_v52 }
  0x4e   :  { %787 = vxpose.xlu0.b32.cont [15/16] (narrow) %v786_v60, 64  ;;  %v147_v54 = vadd.f32 %v146_v46, %v145_v15  ;;  %v180_v60 = vsel %vm88_vm0, %v70_v49, 0.0 }
  0x50   :  { %859 = vxpose.xlu1.b32.cont [15/16] (narrow) %v858_v59, 64  ;;  %v149_v55 = vadd.f32 %v148_v21, %v147_v54 }
  0x52   :  { %789 = vxpose.xlu0.b32.end [16/16] (narrow) %v788_v13, 64  ;;  %v151_v39 = vadd.f32 %v150_v32, %v149_v55 }
  0x54   :  { %861 = vxpose.xlu1.b32.end [16/16] (narrow) %v860_v47, 64  ;;  %v153_v63 = vadd.f32 %v152_v28, %v151_v39 }
  0x56   :  { %v155_v58 = vadd.f32 %v154_v56, %v153_v63 }
  0x58   :  { %v157_v9 = vadd.f32 %v156_v25, %v155_v58 }
  0x5a   :  { %v159_v8 = vadd.f32 %v158_v44, %v157_v9 }
  0x5c   :  { %v161_v62 = vadd.f32 %v160_v37, %v159_v8 }
  0x5e   :  { %v163_v42 = vadd.f32 %v162_v4, %v161_v62 }
  0x60   :  { %v165_v0 = vadd.f32 %v164_v10, %v163_v42 }
  0x62   :  { %v167_v36 = vadd.f32 %v166_v18, %v165_v0 }
  0x64   :  { %v169_v19 = vadd.f32 %v168_v29, %v167_v36 }
  0x66   :  { %v171_v11 = vadd.f32 %v170_v41, %v169_v19 }
  0x68   :  { %v173_v24 = vadd.f32 %v172_v53, %v171_v11 }
  0x6a   :  { %v175_v17 = vadd.f32 %v174_v3, %v173_v24 }
  0x6c   :  { %v177_v30 = vadd.f32 %v176_v22, %v175_v17 }
  0x6e   :  { %v179_v23 = vadd.f32 %v178_v51, %v177_v30 }
  0x70   :  { %v181_v59 = vadd.f32 %v180_v60, %v179_v23 }
  0x72   :  { %v183_v52 = vadd.f32 %v182_v45, %v181_v59 }
  0x74   :  { %v185_v34 = vadd.f32 %v184_v48, %v183_v52 }
  0x76   :  { %v187_v46 = vadd.f32 %v186_v5, %v185_v34 }
  0x78   :  { %v189_v49 = vadd.f32 %v188_v6, %v187_v46 }
  0x7a   :  { %v191_v15 = vadd.f32 %v190_v57, %v189_v49 }
  0x7c   :  { %v193_v21 = vadd.f32 %v192_v33, %v191_v15 }
  0x7e   :  { %v195_v13 = vadd.f32 %v194_v1, %v193_v21 }
  0x80   :  { %v197_v47 = vadd.f32 %v196_v7, %v195_v13 }
  0x82   :  { %v199_v54 = vadd.f32 %v198_v16, %v197_v47 }
  0x84   :  { %v201_v32 = vadd.f32 %v200_v26, %v199_v54 }
  0x86   :  { %v203_v55 = vadd.f32 %v202_v38, %v201_v32 }
  0x88   :  { %v205_v28 = vadd.f32 %v204_v50, %v203_v55 }
  0x8a   :  { %v207_v39 = vadd.f32 %v206_v61, %v205_v28 }
  0x8c   :  { %v209_v56 = vadd.f32 %v208_v20, %v207_v39 }
  0x8e   :  { %v211_v63 = vadd.f32 %v210_v40, %v209_v56 }
  0x90   :  { %v213_v25 = vadd.f32 %v212_v12, %v211_v63 }
  0x92   :  { %v215_v58 = vadd.f32 %v214_v43, %v213_v25 }
  0x94   :  { %v216_v44 = vrot.slane %v215_v58, 4 }
  0x96   :  { %v790_v2 = vpop.trf.xlu0  ;;  %v217_v9 = vadd.f32 %v216_v44, %v215_v58 }
  0x97   :  { %v791_v8 = vunpack.i.l.bf16 %v790_v2  ;;  %v794_v27 = vunpack.i.h.bf16 %v790_v2 }
  0x98   :  { %v862_v37 = vpop.trf.xlu1  ;;  %v218_v62 = vrot.slane %v217_v9, 2 }
  0x99   :  { %v863_v4 = vunpack.i.l.bf16 %v862_v37  ;;  %416 = vmatprep.mubr.f32.mxu0 %v791_v8  ;;  %v866_v31 = vunpack.i.h.bf16 %v862_v37  ;;  %521 = vmatprep.mubr.f32.mxu1 %v794_v27 }
  0x9a   :  { %v795_v10 = vpop.trf.xlu0  ;;  %v219_v35 = vadd.f32 %v218_v62, %v217_v9 }
  0x9b   :  { %417 = vmatmul.mubr.f32.vlgmr.msra.gmra.mrb[0].mxu0 %v863_v4  ;;  %522 = vmatmul.mubr.f32.vlgmr.msra.gmra.mrb[0].mxu1 %v866_v31  ;;  %v796_v18 = vunpack.i.l.bf16 %v795_v10  ;;  %v799_v14 = vunpack.i.h.bf16 %v795_v10 }
  0x9c   :  { %v867_v42 = vpop.trf.xlu1  ;;  %v220_v29 = vrot.slane %v219_v35, 1 }
  0x9d   :  { %v868_v0 = vunpack.i.l.bf16 %v867_v42  ;;  %421 = vmatprep.mubr.f32.mxu0 %v796_v18  ;;  %v871_v36 = vunpack.i.h.bf16 %v867_v42  ;;  %526 = vmatprep.mubr.f32.mxu1 %v799_v14 }
  0x9e   :  { %v800_v41 = vpop.trf.xlu0  ;;  %v221_v19 = vadd.f32 %v220_v29, %v219_v35 }
  0x9f   :  { %422 = vmatmul.mubr.f32.gmra.mrb[2].mxu0 %v868_v0  ;;  %527 = vmatmul.mubr.f32.gmra.mrb[2].mxu1 %v871_v36  ;;  %v801_v11 = vunpack.i.l.bf16 %v800_v41  ;;  %v804_v3 = vunpack.i.h.bf16 %v800_v41 }
  0xa0   :  { %v872_v53 = vpop.trf.xlu1  ;;  %223 = vst.msk [vmem:[%s1346_s1] sm:$0x1] %vm222_vm1, %v221_v19 }
  0xa1   :  { %v873_v24 = vunpack.i.l.bf16 %v872_v53  ;;  %426 = vmatprep.mubr.f32.mxu0 %v801_v11  ;;  %v876_v22 = vunpack.i.h.bf16 %v872_v53  ;;  %531 = vmatprep.mubr.f32.mxu1 %v804_v3 }
  0xa2   :  { %v805_v17 = vpop.trf.xlu0 }
  0xa3   :  { %427 = vmatmul.mubr.f32.gmra.mrb[4].mxu0 %v873_v24  ;;  %532 = vmatmul.mubr.f32.gmra.mrb[4].mxu1 %v876_v22  ;;  %v806_v30 = vunpack.i.l.bf16 %v805_v17  ;;  %v809_v60 = vunpack.i.h.bf16 %v805_v17 }
  0xa4   :  { %v877_v51 = vpop.trf.xlu1 }
  0xa5   :  { %v878_v23 = vunpack.i.l.bf16 %v877_v51  ;;  %v881_v45 = vunpack.i.h.bf16 %v877_v51  ;;  %431 = vmatprep.mubr.f32.mxu0 %v806_v30  ;;  %536 = vmatprep.mubr.f32.mxu1 %v809_v60 }
  0xa6   :  { %v810_v59 = vpop.trf.xlu0 }
  0xa7   :  { %432 = vmatmul.mubr.f32.gmra.mrb[6].mxu0 %v878_v23  ;;  %537 = vmatmul.mubr.f32.gmra.mrb[6].mxu1 %v881_v45  ;;  %v811_v52 = vunpack.i.l.bf16 %v810_v59  ;;  %v814_v5 = vunpack.i.h.bf16 %v810_v59 }
  0xa8   :  { %v882_v48 = vpop.trf.xlu1 }
  0xa9   :  { %v883_v34 = vunpack.i.l.bf16 %v882_v48  ;;  %v886_v6 = vunpack.i.h.bf16 %v882_v48  ;;  %436 = vmatprep.mubr.f32.mxu0 %v811_v52  ;;  %541 = vmatprep.mubr.f32.mxu1 %v814_v5 }
  0xaa   :  { %v815_v46 = vpop.trf.xlu0 }
  0xab   :  { %437 = vmatmul.mubr.f32.gmra.mrb[8].mxu0 %v883_v34  ;;  %542 = vmatmul.mubr.f32.gmra.mrb[8].mxu1 %v886_v6  ;;  %v816_v49 = vunpack.i.l.bf16 %v815_v46  ;;  %v819_v33 = vunpack.i.h.bf16 %v815_v46 }
  0xac   :  { %v887_v57 = vpop.trf.xlu1 }
  0xad   :  { %v888_v15 = vunpack.i.l.bf16 %v887_v57  ;;  %v891_v1 = vunpack.i.h.bf16 %v887_v57  ;;  %441 = vmatprep.mubr.f32.mxu0 %v816_v49  ;;  %546 = vmatprep.mubr.f32.mxu1 %v819_v33 }
  0xae   :  { %v820_v21 = vpop.trf.xlu0 }
  0xaf   :  { %442 = vmatmul.mubr.f32.gmra.mrb[10].mxu0 %v888_v15  ;;  %547 = vmatmul.mubr.f32.gmra.mrb[10].mxu1 %v891_v1  ;;  %v821_v13 = vunpack.i.l.bf16 %v820_v21  ;;  %v824_v16 = vunpack.i.h.bf16 %v820_v21 }
  0xb0   :  { %v892_v7 = vpop.trf.xlu1 }
  0xb1   :  { %v893_v47 = vunpack.i.l.bf16 %v892_v7  ;;  %v896_v26 = vunpack.i.h.bf16 %v892_v7  ;;  %446 = vmatprep.mubr.f32.mxu0 %v821_v13  ;;  %551 = vmatprep.mubr.f32.mxu1 %v824_v16 }
  0xb2   :  { %v825_v54 = vpop.trf.xlu0 }
  0xb3   :  { %447 = vmatmul.mubr.f32.gmra.mrb[12].mxu0 %v893_v47  ;;  %v829_v38 = vunpack.i.h.bf16 %v825_v54  ;;  %v826_v32 = vunpack.i.l.bf16 %v825_v54  ;;  %552 = vmatmul.mubr.f32.gmra.mrb[12].mxu1 %v896_v26 }
  0xb4   :  { %v897_v50 = vpop.trf.xlu1 }
  0xb5   :  { %v901_v55 = vunpack.i.h.bf16 %v897_v50  ;;  %v898_v61 = vunpack.i.l.bf16 %v897_v50  ;;  %451 = vmatprep.mubr.f32.mxu0 %v826_v32  ;;  %556 = vmatprep.mubr.f32.mxu1 %v829_v38 }
  0xb7   :  { %452 = vmatmul.mubr.f32.gmra.mrb[14].mxu0 %v898_v61  ;;  %557 = vmatmul.mubr.f32.gmra.mrb[14].mxu1 %v901_v55 }
 0x16e   :  { %v611_v28 = vpop.f32.mrb[0].mxu0  ;;  %v667_v20 = vpop.f32.mrb[0].mxu1 }
 0x16f   :  { %v612_v39 = vpop.f32.mrb[1].mxu0  ;;  %v668_v56 = vpop.f32.mrb[1].mxu1 }
 0x170   :  { %v613_v40 = vadd.f32 %v612_v39, %v611_v28  ;;  %v669_v12 = vadd.f32 %v668_v56, %v667_v20 }
 0x172   :  { %v614_v63 = vpop.f32.mrb[2].mxu0  ;;  %v524_v43 = vadd.f32 %v669_v12, %v613_v40  ;;  %v670_v25 = vpop.f32.mrb[2].mxu1 }
 0x173   :  { %v615_v58 = vpop.f32.mrb[3].mxu0  ;;  %v671_v2 = vpop.f32.mrb[3].mxu1 }
 0x174   :  { %v616_v44 = vadd.f32 %v615_v58, %v614_v63  ;;  %562 = vst.msk [vmem:[%s1347_s2] sm:$0xff] %vm88_vm0, %v524_v43  ;;  %v672_v9 = vadd.f32 %v671_v2, %v670_v25 }
 0x176   :  { %v617_v37 = vpop.f32.mrb[4].mxu0  ;;  %v529_v8 = vadd.f32 %v672_v9, %v616_v44  ;;  %v673_v27 = vpop.f32.mrb[4].mxu1 }
 0x177   :  { %v618_v4 = vpop.f32.mrb[5].mxu0  ;;  %v674_v31 = vpop.f32.mrb[5].mxu1 }
 0x178   :  { %v619_v62 = vadd.f32 %v618_v4, %v617_v37  ;;  %563 = vst.msk [vmem:[%s1347_s2 + $0x8] sm:$0xff] %vm88_vm0, %v529_v8  ;;  %v675_v10 = vadd.f32 %v674_v31, %v673_v27 }
 0x17a   :  { %v620_v35 = vpop.f32.mrb[6].mxu0  ;;  %v534_v42 = vadd.f32 %v675_v10, %v619_v62  ;;  %v676_v18 = vpop.f32.mrb[6].mxu1 }
 0x17b   :  { %v621_v14 = vpop.f32.mrb[7].mxu0  ;;  %v677_v29 = vpop.f32.mrb[7].mxu1 }
 0x17c   :  { %v622_v0 = vadd.f32 %v621_v14, %v620_v35  ;;  %564 = vst.msk [vmem:[%s1347_s2 + $0x10] sm:$0xff] %vm88_vm0, %v534_v42  ;;  %v678_v36 = vadd.f32 %v677_v29, %v676_v18 }
 0x17e   :  { %v623_v41 = vpop.f32.mrb[8].mxu0  ;;  %v539_v19 = vadd.f32 %v678_v36, %v622_v0  ;;  %v679_v53 = vpop.f32.mrb[8].mxu1 }
 0x17f   :  { %v624_v11 = vpop.f32.mrb[9].mxu0  ;;  %v680_v24 = vpop.f32.mrb[9].mxu1 }
 0x180   :  { %v625_v3 = vadd.f32 %v624_v11, %v623_v41  ;;  %565 = vst.msk [vmem:[%s1347_s2 + $0x18] sm:$0xff] %vm88_vm0, %v539_v19  ;;  %v681_v22 = vadd.f32 %v680_v24, %v679_v53 }
 0x182   :  { %v626_v17 = vpop.f32.mrb[10].mxu0  ;;  %v544_v51 = vadd.f32 %v681_v22, %v625_v3  ;;  %v682_v30 = vpop.f32.mrb[10].mxu1 }
 0x183   :  { %v627_v60 = vpop.f32.mrb[11].mxu0  ;;  %v683_v45 = vpop.f32.mrb[11].mxu1 }
 0x184   :  { %v628_v23 = vadd.f32 %v627_v60, %v626_v17  ;;  %566 = vst.msk [vmem:[%s1347_s2 + $0x20] sm:$0xff] %vm88_vm0, %v544_v51  ;;  %v684_v59 = vadd.f32 %v683_v45, %v682_v30 }
 0x186   :  { %v629_v48 = vpop.f32.mrb[12].mxu0  ;;  %v549_v52 = vadd.f32 %v684_v59, %v628_v23  ;;  %v685_v5 = vpop.f32.mrb[12].mxu1 }
 0x187   :  { %v630_v34 = vpop.f32.mrb[13].mxu0  ;;  %v686_v46 = vpop.f32.mrb[13].mxu1 }
 0x188   :  { %v631_v6 = vadd.f32 %v630_v34, %v629_v48  ;;  %567 = vst.msk [vmem:[%s1347_s2 + $0x28] sm:$0xff] %vm88_vm0, %v549_v52  ;;  %v687_v57 = vadd.f32 %v686_v46, %v685_v5 }
 0x18a   :  { %v632_v49 = vpop.f32.mrb[14].mxu0  ;;  %v554_v33 = vadd.f32 %v687_v57, %v631_v6  ;;  %v688_v15 = vpop.f32.mrb[14].mxu1 }
 0x18b   :  { %v633_v1 = vpop.f32.mrb[15].mxu0  ;;  %v689_v7 = vpop.f32.mrb[15].mxu1 }
 0x18c   :  { %v634_v21 = vadd.f32 %v633_v1, %v632_v49  ;;  %568 = vst.msk [vmem:[%s1347_s2 + $0x30] sm:$0xff] %vm88_vm0, %v554_v33  ;;  %v690_v13 = vadd.f32 %v689_v7, %v688_v15 }
 0x18e   :  { %v559_v16 = vadd.f32 %v690_v13, %v634_v21 }
 0x190   :  { %569 = vst.msk [vmem:[%s1347_s2 + $0x38] sm:$0xff] %vm88_vm0, %v559_v16 }
 0x191   :  { %578 = vsyncpa [#allocation3], 1 }

// kernel: _lambda_.6
= control target key start
LH: loop header
LB: loop body
LE: loop exit
PB: predicated region body
PF: predicated region fallthrough
CT: control target
= control target key end

     0   :  { %vm350_vm0 = vcmask 261120   ;;  %vm484_vm1 = vcmask 253952   ;;  %s1875_s0 = inlined_call_operand.vmem [shape: bf16[512,32], index: 0, kind: input, shape index: {}]   ;;  %s1876_s1 = inlined_call_operand.vmem [shape: f32[1,32], index: 1, kind: input, shape index: {}]   ;;  %s1877_s2 = inlined_call_operand.vmem [shape: f32[1,32], index: 2, kind: input, shape index: {}]   ;;  %s1878_s3 = inlined_call_operand.vmem [shape: f32[1,1,32], index: 3, kind: output, shape index: {0}]   ;;  %s1879_s4 = inlined_call_operand.vmem [shape: f32[1,32,32], index: 4, kind: output, shape index: {1}]  }
   0x1   :  { %v933_v0 = vld [vmem:[%s1875_s0 + $0x40] sm:$0xff]   ;;  %v934_v39 = vld [vmem:[%s1875_s0 + $0x48] sm:$0xff]  }
   0x2   :  { %v949_v1 = vld [vmem:[%s1875_s0 + $0xc0] sm:$0xff]   ;;  %v832_v3 = vunpack.c.l.bf16 %v933_v0  ;;  %v833_v7 = vunpack.c.h.bf16 %v933_v0  ;;  %v950_v40 = vld [vmem:[%s1875_s0 + $0xc8] sm:$0xff]   ;;  %v836_v49 = vunpack.c.l.bf16 %v934_v39  ;;  %v837_v53 = vunpack.c.h.bf16 %v934_v39 }
   0x3   :  { %v1247_v2 = vld [vmem:[%s1876_s1] ss:$0 sm:$0xff]  ;;  %v896_v4 = vunpack.c.l.bf16 %v949_v1  ;;  %v897_v8 = vunpack.c.h.bf16 %v949_v1  ;;  %v926_v41 = vld [vmem:[%s1875_s0 + $0x8] sm:$0xff]   ;;  %v900_v50 = vunpack.c.l.bf16 %v950_v40  ;;  %v901_v54 = vunpack.c.h.bf16 %v950_v40 }
   0x4   :  { %v799_v5 = vld [vmem:[%s1875_s0] sm:$0xff]   ;;  %v167_v14 = vmul.f32 %v832_v3, %v1247_v2  ;;  %v168_v16 = vmul.f32 %v833_v7, %v1247_v2  ;;  %v942_v44 = vld [vmem:[%s1875_s0 + $0x88] sm:$0xff]   ;;  %v804_v51 = vunpack.c.l.bf16 %v926_v41  ;;  %v805_v55 = vunpack.c.h.bf16 %v926_v41 }
   0x5   :  { %v941_v6 = vld [vmem:[%s1875_s0 + $0x80] sm:$0xff]   ;;  %v800_v10 = vunpack.c.l.bf16 %v799_v5  ;;  %v801_v12 = vunpack.c.h.bf16 %v799_v5  ;;  %v199_v15 = vmul.f32 %v896_v4, %v1247_v2  ;;  %v200_v17 = vmul.f32 %v897_v8, %v1247_v2 }
   0x6   :  { %v1258_v9 = vld [vmem:[%s1877_s2] ss:$0 sm:$0xff]  ;;  %v864_v11 = vunpack.c.l.bf16 %v941_v6  ;;  %v865_v13 = vunpack.c.h.bf16 %v941_v6  ;;  %v868_v52 = vunpack.c.l.bf16 %v942_v44  ;;  %v169_v56 = vmul.f32 %v836_v49, %v1247_v2 }
   0x7   :  { %v151_v18 = vmul.f32 %v800_v10, %v1247_v2  ;;  %v152_v20 = vmul.f32 %v801_v12, %v1247_v2  ;;  %v238_v22 = vadd.f32 %v1258_v9, %v167_v14  ;;  %v270_v23 = vadd.f32 %v1258_v9, %v199_v15 }
   0x8   :  { %v183_v19 = vmul.f32 %v864_v11, %v1247_v2  ;;  %v184_v21 = vmul.f32 %v865_v13, %v1247_v2  ;;  %v239_v24 = vadd.f32 %v1258_v9, %v168_v16  ;;  %v271_v25 = vadd.f32 %v1258_v9, %v200_v17 }
   0x9   :  { %v222_v26 = vadd.f32 %v1258_v9, %v151_v18  ;;  %v223_v28 = vadd.f32 %v1258_v9, %v152_v20  ;;  %v1276_v30 = vmax.f32 %v238_v22, 0.0  ;;  %v1278_v31 = vmax.f32 %v270_v23, 0.0  ;;  %v935_v20 = vld [vmem:[%s1875_s0 + $0x50] sm:$0xff]  }
   0xa   :  { %v254_v27 = vadd.f32 %v1258_v9, %v183_v19  ;;  %v255_v29 = vadd.f32 %v1258_v9, %v184_v21  ;;  %v1280_v32 = vmax.f32 %v239_v24, 0.0  ;;  %v1282_v33 = vmax.f32 %v271_v25, 0.0  ;;  %v951_v21 = vld [vmem:[%s1875_s0 + $0xd0] sm:$0xff]  }
   0xb   :  { %v1284_v34 = vmax.f32 %v222_v26, 0.0  ;;  %v1288_v36 = vmax.f32 %v223_v28, 0.0  ;;  %v1109_v38 = vpack.i.bf16 %v1278_v31, %v1276_v30  ;;  %v201_v57 = vmul.f32 %v900_v50, %v1247_v2  ;;  %v927_v22 = vld [vmem:[%s1875_s0 + $0x10] sm:$0xff]  }
   0xc   :  { %v1286_v35 = vmax.f32 %v254_v27, 0.0  ;;  %v1290_v37 = vmax.f32 %v255_v29, 0.0  ;;  %v1111_v45 = vpack.i.bf16 %v1282_v33, %v1280_v32  ;;  %v153_v58 = vmul.f32 %v804_v51, %v1247_v2  ;;  %v943_v25 = vld [vmem:[%s1875_s0 + $0x90] sm:$0xff]  }
   0xd   :  { %v351_v43 = vsel %vm350_vm0, %v1284_v34, 0.0  ;;  %1110 = vxpose.xlu0.b32.start [1/16] (narrow) %v1109_v38, 32  ;;  %v352_v47 = vsel %vm350_vm0, %v1288_v36, 0.0  ;;  %v869_v59 = vunpack.c.h.bf16 %v942_v44  ;;  %v185_v60 = vmul.f32 %v868_v52, %v1247_v2 }
   0xe   :  { %v1161_v42 = vpack.i.bf16 %v1286_v35, %v1284_v34  ;;  %v1163_v46 = vpack.i.bf16 %v1290_v37, %v1288_v36  ;;  %v353_v48 = vadd.f32 %v352_v47, %v351_v43  ;;  %v170_v61 = vmul.f32 %v837_v53, %v1247_v2 }
   0xf   :  { %v202_v62 = vmul.f32 %v901_v54, %v1247_v2  ;;  %v154_v63 = vmul.f32 %v805_v55, %v1247_v2  ;;  %v240_v0 = vadd.f32 %v1258_v9, %v169_v56  ;;  %v272_v1 = vadd.f32 %v1258_v9, %v201_v57 }
  0x10   :  { %1162 = vxpose.xlu1.b32.start [1/16] (narrow) %v1161_v42, 32  ;;  %v224_v3 = vadd.f32 %v1258_v9, %v153_v58  ;;  %v186_v4 = vmul.f32 %v869_v59, %v1247_v2  ;;  %v256_v5 = vadd.f32 %v1258_v9, %v185_v60  ;;  %v241_v6 = vadd.f32 %v1258_v9, %v170_v61 }
  0x11   :  { %1112 = vxpose.xlu0.b32.cont [2/16] (narrow) %v1111_v45, 32  ;;  %v273_v7 = vadd.f32 %v1258_v9, %v202_v62  ;;  %v225_v8 = vadd.f32 %v1258_v9, %v154_v63  ;;  %v1331_v10 = vmax.f32 %v240_v0, 0.0  ;;  %v1333_v11 = vmax.f32 %v272_v1, 0.0 }
  0x12   :  { %v1335_v12 = vmax.f32 %v224_v3, 0.0  ;;  %v257_v13 = vadd.f32 %v1258_v9, %v186_v4  ;;  %v1338_v14 = vmax.f32 %v256_v5, 0.0  ;;  %v1340_v15 = vmax.f32 %v241_v6, 0.0  ;;  %v936_v5 = vld [vmem:[%s1875_s0 + $0x58] sm:$0xff]  }
  0x13   :  { %v1342_v16 = vmax.f32 %v273_v7, 0.0  ;;  %v1113_v17 = vpack.i.bf16 %v1333_v11, %v1331_v10  ;;  %v1348_v19 = vmax.f32 %v225_v8, 0.0  ;;  %v840_v29 = vunpack.c.l.bf16 %v935_v20  ;;  %v952_v8 = vld [vmem:[%s1875_s0 + $0xd8] sm:$0xff]  }
  0x14   :  { %1164 = vxpose.xlu1.b32.cont [2/16] (narrow) %v1163_v46, 32  ;;  %v354_v18 = vsel %vm350_vm0, %v1335_v12, 0.0  ;;  %v1165_v23 = vpack.i.bf16 %v1338_v14, %v1335_v12  ;;  %v1366_v27 = vmax.f32 %v257_v13, 0.0  ;;  %v904_v38 = vunpack.c.l.bf16 %v951_v21  ;;  %v928_v13 = vld [vmem:[%s1875_s0 + $0x18] sm:$0xff]  }
  0x15   :  { %v355_v24 = vadd.f32 %v354_v18, %v353_v48  ;;  %1114 = vxpose.xlu0.b32.cont [3/16] (narrow) %v1113_v17, 32  ;;  %v1115_v26 = vpack.i.bf16 %v1342_v16, %v1340_v15  ;;  %v356_v28 = vsel %vm350_vm0, %v1348_v19, 0.0  ;;  %v808_v39 = vunpack.c.l.bf16 %v927_v22 }
  0x16   :  { %v1167_v40 = vpack.i.bf16 %v1366_v27, %v1348_v19  ;;  %v872_v42 = vunpack.c.l.bf16 %v943_v25  ;;  %v841_v43 = vunpack.c.h.bf16 %v935_v20  ;;  %v171_v44 = vmul.f32 %v840_v29, %v1247_v2 }
  0x17   :  { %v357_v41 = vadd.f32 %v356_v28, %v355_v24  ;;  %v203_v45 = vmul.f32 %v904_v38, %v1247_v2  ;;  %v155_v46 = vmul.f32 %v808_v39, %v1247_v2  ;;  %v905_v47 = vunpack.c.h.bf16 %v951_v21  ;;  %v944_v24 = vld [vmem:[%s1875_s0 + $0x98] sm:$0xff]  }
  0x18   :  { %1166 = vxpose.xlu1.b32.cont [3/16] (narrow) %v1165_v23, 32  ;;  %v187_v48 = vmul.f32 %v872_v42, %v1247_v2  ;;  %v172_v49 = vmul.f32 %v841_v43, %v1247_v2  ;;  %v809_v50 = vunpack.c.h.bf16 %v927_v22  ;;  %v873_v51 = vunpack.c.h.bf16 %v943_v25 }
  0x19   :  { %1116 = vxpose.xlu0.b32.cont [4/16] (narrow) %v1115_v26, 32  ;;  %v242_v52 = vadd.f32 %v1258_v9, %v171_v44  ;;  %v274_v53 = vadd.f32 %v1258_v9, %v203_v45  ;;  %v226_v54 = vadd.f32 %v1258_v9, %v155_v46  ;;  %v204_v55 = vmul.f32 %v905_v47, %v1247_v2 }
  0x1a   :  { %v258_v56 = vadd.f32 %v1258_v9, %v187_v48  ;;  %v243_v57 = vadd.f32 %v1258_v9, %v172_v49  ;;  %v156_v58 = vmul.f32 %v809_v50, %v1247_v2  ;;  %v188_v59 = vmul.f32 %v873_v51, %v1247_v2 }
  0x1b   :  { %v1385_v60 = vmax.f32 %v242_v52, 0.0  ;;  %v1387_v61 = vmax.f32 %v274_v53, 0.0  ;;  %v1389_v62 = vmax.f32 %v226_v54, 0.0  ;;  %v275_v63 = vadd.f32 %v1258_v9, %v204_v55 }
  0x1c   :  { %1168 = vxpose.xlu1.b32.cont [4/16] (narrow) %v1167_v40, 32  ;;  %v1392_v0 = vmax.f32 %v258_v56, 0.0  ;;  %v1394_v1 = vmax.f32 %v243_v57, 0.0  ;;  %v227_v3 = vadd.f32 %v1258_v9, %v156_v58  ;;  %v259_v4 = vadd.f32 %v1258_v9, %v188_v59 }
  0x1d   :  { %v1117_v6 = vpack.i.bf16 %v1387_v61, %v1385_v60  ;;  %v358_v7 = vsel %vm350_vm0, %v1389_v62, 0.0  ;;  %v1413_v20 = vmax.f32 %v275_v63, 0.0  ;;  %v844_v23 = vunpack.c.l.bf16 %v936_v5 }
  0x1e   :  { %v1169_v17 = vpack.i.bf16 %v1392_v0, %v1389_v62  ;;  %v359_v18 = vadd.f32 %v358_v7, %v357_v41  ;;  %v1415_v21 = vmax.f32 %v227_v3, 0.0  ;;  %v1417_v22 = vmax.f32 %v259_v4, 0.0 }
  0x1f   :  { %1118 = vxpose.xlu0.b32.cont [5/16] (narrow) %v1117_v6, 32  ;;  %v1119_v25 = vpack.i.bf16 %v1413_v20, %v1394_v1  ;;  %v908_v26 = vunpack.c.l.bf16 %v952_v8  ;;  %v812_v28 = vunpack.c.l.bf16 %v928_v13  ;;  %v173_v39 = vmul.f32 %v844_v23, %v1247_v2 }
  0x20   :  { %1170 = vxpose.xlu1.b32.cont [5/16] (narrow) %v1169_v17, 32  ;;  %v1171_v29 = vpack.i.bf16 %v1417_v22, %v1415_v21  ;;  %v360_v38 = vsel %vm350_vm0, %v1415_v21, 0.0  ;;  %v876_v42 = vunpack.c.l.bf16 %v944_v24  ;;  %v845_v45 = vunpack.c.h.bf16 %v936_v5  ;;  %v937_v5 = vld [vmem:[%s1875_s0 + $0x60] sm:$0xff]  }
  0x21   :  { %v361_v40 = vadd.f32 %v360_v38, %v359_v18  ;;  %v205_v41 = vmul.f32 %v908_v26, %v1247_v2  ;;  %v157_v43 = vmul.f32 %v812_v28, %v1247_v2  ;;  %v244_v44 = vadd.f32 %v1258_v9, %v173_v39  ;;  %v945_v38 = vld [vmem:[%s1875_s0 + $0xa0] sm:$0xff]  }
  0x22   :  { %v909_v46 = vunpack.c.h.bf16 %v952_v8  ;;  %v813_v47 = vunpack.c.h.bf16 %v928_v13  ;;  %v189_v49 = vmul.f32 %v876_v42, %v1247_v2  ;;  %v877_v51 = vunpack.c.h.bf16 %v944_v24  ;;  %v953_v24 = vld [vmem:[%s1875_s0 + $0xe0] sm:$0xff]  }
  0x23   :  { %1120 = vxpose.xlu0.b32.cont [6/16] (narrow) %v1119_v25, 32  ;;  %v276_v48 = vadd.f32 %v1258_v9, %v205_v41  ;;  %v228_v50 = vadd.f32 %v1258_v9, %v157_v43  ;;  %v1435_v52 = vmax.f32 %v244_v44, 0.0  ;;  %v174_v53 = vmul.f32 %v845_v45, %v1247_v2  ;;  %v929_v25 = vld [vmem:[%s1875_s0 + $0x20] sm:$0xff]  }
  0x24   :  { %1172 = vxpose.xlu1.b32.cont [6/16] (narrow) %v1171_v29, 32  ;;  %v206_v54 = vmul.f32 %v909_v46, %v1247_v2  ;;  %v158_v55 = vmul.f32 %v813_v47, %v1247_v2  ;;  %v260_v57 = vadd.f32 %v1258_v9, %v189_v49  ;;  %v190_v59 = vmul.f32 %v877_v51, %v1247_v2 }
  0x25   :  { %v1440_v56 = vmax.f32 %v276_v48, 0.0  ;;  %v1443_v58 = vmax.f32 %v228_v50, 0.0  ;;  %v245_v63 = vadd.f32 %v1258_v9, %v174_v53  ;;  %v848_v29 = vunpack.c.l.bf16 %v937_v5 }
  0x26   :  { %v277_v3 = vadd.f32 %v1258_v9, %v206_v54  ;;  %v229_v4 = vadd.f32 %v1258_v9, %v158_v55  ;;  %v1454_v7 = vmax.f32 %v260_v57, 0.0  ;;  %v261_v23 = vadd.f32 %v1258_v9, %v190_v59 }
  0x27   :  { %v1121_v6 = vpack.i.bf16 %v1440_v56, %v1435_v52  ;;  %v362_v8 = vsel %vm350_vm0, %v1443_v58, 0.0  ;;  %v1458_v17 = vmax.f32 %v245_v63, 0.0  ;;  %v912_v42 = vunpack.c.l.bf16 %v953_v24 }
  0x28   :  { %v363_v13 = vadd.f32 %v362_v8, %v361_v40  ;;  %v1460_v18 = vmax.f32 %v277_v3, 0.0  ;;  %v1173_v26 = vpack.i.bf16 %v1454_v7, %v1443_v58  ;;  %v1471_v28 = vmax.f32 %v229_v4, 0.0 }
  0x29   :  { %1122 = vxpose.xlu0.b32.cont [7/16] (narrow) %v1121_v6, 32  ;;  %v1478_v40 = vmax.f32 %v261_v23, 0.0  ;;  %v175_v43 = vmul.f32 %v848_v29, %v1247_v2  ;;  %v816_v44 = vunpack.c.l.bf16 %v929_v25  ;;  %v880_v47 = vunpack.c.l.bf16 %v945_v38 }
  0x2a   :  { %v1123_v39 = vpack.i.bf16 %v1460_v18, %v1458_v17  ;;  %1174 = vxpose.xlu1.b32.cont [7/16] (narrow) %v1173_v26, 32  ;;  %v364_v41 = vsel %vm350_vm0, %v1471_v28, 0.0  ;;  %v207_v48 = vmul.f32 %v912_v42, %v1247_v2  ;;  %v849_v51 = vunpack.c.h.bf16 %v937_v5 }
  0x2b   :  { %v1175_v45 = vpack.i.bf16 %v1478_v40, %v1471_v28  ;;  %v365_v46 = vadd.f32 %v364_v41, %v363_v13  ;;  %v246_v49 = vadd.f32 %v1258_v9, %v175_v43  ;;  %v159_v50 = vmul.f32 %v816_v44, %v1247_v2  ;;  %v938_v41 = vld [vmem:[%s1875_s0 + $0x68] sm:$0xff]  }
  0x2c   :  { %v191_v53 = vmul.f32 %v880_v47, %v1247_v2  ;;  %v913_v54 = vunpack.c.h.bf16 %v953_v24  ;;  %v817_v55 = vunpack.c.h.bf16 %v929_v25  ;;  %v881_v57 = vunpack.c.h.bf16 %v945_v38  ;;  %v930_v47 = vld [vmem:[%s1875_s0 + $0x28] sm:$0xff]  }
  0x2d   :  { %1124 = vxpose.xlu0.b32.cont [8/16] (narrow) %v1123_v39, 32  ;;  %v278_v59 = vadd.f32 %v1258_v9, %v207_v48  ;;  %v1490_v63 = vmax.f32 %v246_v49, 0.0  ;;  %v230_v3 = vadd.f32 %v1258_v9, %v159_v50  ;;  %v176_v4 = vmul.f32 %v849_v51, %v1247_v2 }
  0x2e   :  { %1176 = vxpose.xlu1.b32.cont [8/16] (narrow) %v1175_v45, 32  ;;  %v262_v6 = vadd.f32 %v1258_v9, %v191_v53  ;;  %v208_v8 = vmul.f32 %v913_v54, %v1247_v2  ;;  %v160_v5 = vmul.f32 %v817_v55, %v1247_v2  ;;  %v192_v13 = vmul.f32 %v881_v57, %v1247_v2  ;;  %v954_v45 = vld [vmem:[%s1875_s0 + $0xe8] sm:$0xff]  }
  0x2f   :  { %v1498_v23 = vmax.f32 %v278_v59, 0.0  ;;  %v1500_v24 = vmax.f32 %v230_v3, 0.0  ;;  %v247_v25 = vadd.f32 %v1258_v9, %v176_v4  ;;  %v852_v54 = vunpack.c.l.bf16 %v938_v41  ;;  %v946_v55 = vld [vmem:[%s1875_s0 + $0xa8] sm:$0xff]  }
  0x30   :  { %v1503_v26 = vmax.f32 %v262_v6, 0.0  ;;  %v279_v29 = vadd.f32 %v1258_v9, %v208_v8  ;;  %v231_v38 = vadd.f32 %v1258_v9, %v160_v5  ;;  %v263_v39 = vadd.f32 %v1258_v9, %v192_v13 }
  0x31   :  { %v1125_v42 = vpack.i.bf16 %v1498_v23, %v1490_v63  ;;  %v366_v43 = vsel %vm350_vm0, %v1500_v24, 0.0  ;;  %v1515_v44 = vmax.f32 %v247_v25, 0.0  ;;  %v916_v59 = vunpack.c.l.bf16 %v954_v45 }
  0x32   :  { %1910 = vst [vmem:[#allocation2_spill] sm:$0xff] %v1503_v26  ;;  %v1177_v48 = vpack.i.bf16 %v1503_v26, %v1500_v24  ;;  %v367_v49 = vadd.f32 %v366_v43, %v365_v46  ;;  %v1525_v50 = vmax.f32 %v279_v29, 0.0  ;;  %v1527_v51 = vmax.f32 %v231_v38, 0.0 }
  0x33   :  { %1126 = vxpose.xlu0.b32.cont [9/16] (narrow) %v1125_v42, 32  ;;  %v1529_v53 = vmax.f32 %v263_v39, 0.0  ;;  %v820_v3 = vunpack.c.l.bf16 %v930_v47  ;;  %v177_v6 = vmul.f32 %v852_v54, %v1247_v2  ;;  %v209_v5 = vmul.f32 %v916_v59, %v1247_v2 }
  0x34   :  { %1911 = vst [vmem:[#allocation3_spill] sm:$0xff] %v1527_v51  ;;  %1178 = vxpose.xlu1.b32.cont [9/16] (narrow) %v1177_v48, 32  ;;  %v1127_v57 = vpack.i.bf16 %v1525_v50, %v1515_v44  ;;  %v368_v4 = vsel %vm350_vm0, %v1527_v51, 0.0  ;;  %v884_v13 = vunpack.c.l.bf16 %v946_v55  ;;  %v853_v38 = vunpack.c.h.bf16 %v938_v41 }
  0x35   :  { %1912 = vst [vmem:[#allocation4_spill] sm:$0xff] %v1529_v53  ;;  %v1179_v46 = vpack.i.bf16 %v1529_v53, %v1527_v51  ;;  %v369_v8 = vadd.f32 %v368_v4, %v367_v49  ;;  %v161_v25 = vmul.f32 %v820_v3, %v1247_v2  ;;  %v248_v29 = vadd.f32 %v1258_v9, %v177_v6 }
  0x36   :  { %v917_v39 = vunpack.c.h.bf16 %v954_v45  ;;  %v821_v42 = vunpack.c.h.bf16 %v930_v47  ;;  %v280_v43 = vadd.f32 %v1258_v9, %v209_v5  ;;  %v193_v48 = vmul.f32 %v884_v13, %v1247_v2  ;;  %v939_v5 = vld [vmem:[%s1875_s0 + $0x70] sm:$0xff]  }
  0x37   :  { %1128 = vxpose.xlu0.b32.cont [10/16] (narrow) %v1127_v57, 32  ;;  %v232_v53 = vadd.f32 %v1258_v9, %v161_v25  ;;  %v885_v54 = vunpack.c.h.bf16 %v946_v55  ;;  %v1547_v49 = vmax.f32 %v248_v29, 0.0  ;;  %v178_v59 = vmul.f32 %v853_v38, %v1247_v2 }
  0x38   :  { %1180 = vxpose.xlu1.b32.cont [10/16] (narrow) %v1179_v46, 32  ;;  %v210_v3 = vmul.f32 %v917_v39, %v1247_v2  ;;  %v162_v57 = vmul.f32 %v821_v42, %v1247_v2  ;;  %v1552_v4 = vmax.f32 %v280_v43, 0.0  ;;  %v264_v41 = vadd.f32 %v1258_v9, %v193_v48  ;;  %v955_v43 = vld [vmem:[%s1875_s0 + $0xf0] sm:$0xff]  }
  0x39   :  { %1913 = vst [vmem:[#allocation5_spill] sm:$0xff] %v1547_v49  ;;  %v1555_v45 = vmax.f32 %v232_v53, 0.0  ;;  %v194_v47 = vmul.f32 %v885_v54, %v1247_v2  ;;  %v249_v46 = vadd.f32 %v1258_v9, %v178_v59  ;;  %v931_v48 = vld [vmem:[%s1875_s0 + $0x30] sm:$0xff]  }
  0x3a   :  { %1914 = vst [vmem:[#allocation6_spill] sm:$0xff] %v1552_v4  ;;  %v281_v55 = vadd.f32 %v1258_v9, %v210_v3  ;;  %v233_v6 = vadd.f32 %v1258_v9, %v162_v57  ;;  %v1129_v13 = vpack.i.bf16 %v1552_v4, %v1547_v49  ;;  %v1566_v25 = vmax.f32 %v264_v41, 0.0  ;;  %v947_v3 = vld [vmem:[%s1875_s0 + $0xb0] sm:$0xff]  }
  0x3b   :  { %1915 = vst [vmem:[#allocation7_spill] sm:$0xff] %v1555_v45  ;;  %v370_v53 = vsel %vm350_vm0, %v1555_v45, 0.0  ;;  %v1570_v38 = vmax.f32 %v249_v46, 0.0  ;;  %v265_v42 = vadd.f32 %v1258_v9, %v194_v47  ;;  %v920_v46 = vunpack.c.l.bf16 %v955_v43 }
  0x3c   :  { %1916 = vst [vmem:[#allocation8_spill] sm:$0xff] %v1566_v25  ;;  %v371_v29 = vadd.f32 %v370_v53, %v369_v8  ;;  %v1572_v39 = vmax.f32 %v281_v55, 0.0  ;;  %1130 = vxpose.xlu0.b32.cont [11/16] (narrow) %v1129_v13, 32  ;;  %v1181_v54 = vpack.i.bf16 %v1566_v25, %v1555_v45  ;;  %v1583_v59 = vmax.f32 %v233_v6, 0.0 }
  0x3d   :  { %1917 = vst [vmem:[#allocation9_spill] sm:$0xff] %v1570_v38  ;;  %v856_v8 = vunpack.c.l.bf16 %v939_v5  ;;  %v1590_v41 = vmax.f32 %v265_v42, 0.0  ;;  %v824_v13 = vunpack.c.l.bf16 %v931_v48  ;;  %v888_v25 = vunpack.c.l.bf16 %v947_v3 }
  0x3e   :  { %1918 = vst [vmem:[#allocation10_spill] sm:$0xff] %v1572_v39  ;;  %v1131_v57 = vpack.i.bf16 %v1572_v39, %v1570_v38  ;;  %1182 = vxpose.xlu1.b32.cont [11/16] (narrow) %v1181_v54, 32  ;;  %v372_v47 = vsel %vm350_vm0, %v1583_v59, 0.0  ;;  %v211_v45 = vmul.f32 %v920_v46, %v1247_v2  ;;  %v857_v54 = vunpack.c.h.bf16 %v939_v5 }
  0x3f   :  { %v179_v55 = vmul.f32 %v856_v8, %v1247_v2  ;;  %v1183_v6 = vpack.i.bf16 %v1590_v41, %v1583_v59  ;;  %v373_v53 = vadd.f32 %v372_v47, %v371_v29  ;;  %v163_v42 = vmul.f32 %v824_v13, %v1247_v2 }
  0x40   :  { %1132 = vxpose.xlu0.b32.cont [12/16] (narrow) %v1131_v57, 32  ;;  %v195_v4 = vmul.f32 %v888_v25, %v1247_v2  ;;  %v921_v38 = vunpack.c.h.bf16 %v955_v43  ;;  %v825_v49 = vunpack.c.h.bf16 %v931_v48  ;;  %v889_v26 = vunpack.c.h.bf16 %v947_v3 }
  0x41   :  { %v250_v39 = vadd.f32 %v1258_v9, %v179_v55  ;;  %v282_v8 = vadd.f32 %v1258_v9, %v211_v45  ;;  %v234_v29 = vadd.f32 %v1258_v9, %v163_v42  ;;  %v180_v57 = vmul.f32 %v857_v54, %v1247_v2  ;;  %v932_v42 = vld [vmem:[%s1875_s0 + $0x38] sm:$0xff]  }
  0x42   :  { %1184 = vxpose.xlu1.b32.cont [12/16] (narrow) %v1183_v6, 32  ;;  %v266_v47 = vadd.f32 %v1258_v9, %v195_v4  ;;  %v212_v46 = vmul.f32 %v921_v38, %v1247_v2  ;;  %v164_v5 = vmul.f32 %v825_v49, %v1247_v2  ;;  %v196_v25 = vmul.f32 %v889_v26, %v1247_v2  ;;  %v940_v49 = vld [vmem:[%s1875_s0 + $0x78] sm:$0xff]  }
  0x43   :  { %v1602_v51 = vmax.f32 %v250_v39, 0.0  ;;  %v1610_v43 = vmax.f32 %v282_v8, 0.0  ;;  %v1612_v48 = vmax.f32 %v234_v29, 0.0  ;;  %v251_v45 = vadd.f32 %v1258_v9, %v180_v57  ;;  %v956_v6 = vld [vmem:[%s1875_s0 + $0xf8] sm:$0xff]  }
  0x44   :  { %v1615_v39 = vmax.f32 %v266_v47, 0.0  ;;  %v283_v3 = vadd.f32 %v1258_v9, %v212_v46  ;;  %v235_v55 = vadd.f32 %v1258_v9, %v164_v5  ;;  %v267_v4 = vadd.f32 %v1258_v9, %v196_v25  ;;  %v948_v5 = vld [vmem:[%s1875_s0 + $0xb8] sm:$0xff]  }
  0x45   :  { %1919 = vst [vmem:[#allocation11_spill] sm:$0xff] %v1602_v51  ;;  %1920 = vst [vmem:[#allocation12_spill] sm:$0xff] %v1610_v43  ;;  %v1133_v26 = vpack.i.bf16 %v1610_v43, %v1602_v51  ;;  %v374_v38 = vsel %vm350_vm0, %v1612_v48, 0.0  ;;  %v1627_v13 = vmax.f32 %v251_v45, 0.0  ;;  %v860_v46 = vunpack.c.l.bf16 %v940_v49 }
  0x46   :  { %1921 = vst [vmem:[#allocation13_spill] sm:$0xff] %v1612_v48  ;;  %1922 = vst [vmem:[#allocation14_spill] sm:$0xff] %v1615_v39  ;;  %v1185_v54 = vpack.i.bf16 %v1615_v39, %v1612_v48  ;;  %v375_v8 = vadd.f32 %v374_v38, %v373_v53  ;;  %v1637_v29 = vmax.f32 %v283_v3, 0.0  ;;  %v1639_v57 = vmax.f32 %v235_v55, 0.0 }
  0x47   :  { %1923 = vst [vmem:[#allocation15_spill] sm:$0xff] %v1627_v13  ;;  %1134 = vxpose.xlu0.b32.cont [13/16] (narrow) %v1133_v26, 32  ;;  %v1641_v47 = vmax.f32 %v267_v4, 0.0  ;;  %v924_v45 = vunpack.c.l.bf16 %v956_v6  ;;  %v828_v43 = vunpack.c.l.bf16 %v932_v42  ;;  %v181_v55 = vmul.f32 %v860_v46, %v1247_v2 }
  0x48   :  { %1924 = vst [vmem:[#allocation16_spill] sm:$0xff] %v1637_v29  ;;  %1925 = vst [vmem:[#allocation17_spill] sm:$0xff] %v1639_v57  ;;  %1186 = vxpose.xlu1.b32.cont [13/16] (narrow) %v1185_v54, 32  ;;  %v1135_v25 = vpack.i.bf16 %v1637_v29, %v1627_v13  ;;  %v376_v3 = vsel %vm350_vm0, %v1639_v57, 0.0  ;;  %v892_v38 = vunpack.c.l.bf16 %v948_v5  ;;  %v861_v48 = vunpack.c.h.bf16 %v940_v49 }
  0x49   :  { %1926 = vst [vmem:[#allocation18_spill] sm:$0xff] %v1641_v47  ;;  %v1187_v53 = vpack.i.bf16 %v1641_v47, %v1639_v57  ;;  %v377_v4 = vadd.f32 %v376_v3, %v375_v8  ;;  %v213_v26 = vmul.f32 %v924_v45, %v1247_v2  ;;  %v165_v39 = vmul.f32 %v828_v43, %v1247_v2 }
  0x4a   :  { %v252_v54 = vadd.f32 %v1258_v9, %v181_v55  ;;  %v925_v29 = vunpack.c.h.bf16 %v956_v6  ;;  %v829_v13 = vunpack.c.h.bf16 %v932_v42  ;;  %v197_v51 = vmul.f32 %v892_v38, %v1247_v2 }
  0x4b   :  { %1136 = vxpose.xlu0.b32.cont [14/16] (narrow) %v1135_v25, 32  ;;  %v284_v47 = vadd.f32 %v1258_v9, %v213_v26  ;;  %v236_v57 = vadd.f32 %v1258_v9, %v165_v39  ;;  %v893_v46 = vunpack.c.h.bf16 %v948_v5  ;;  %v182_v45 = vmul.f32 %v861_v48, %v1247_v2 }
  0x4c   :  { %1188 = vxpose.xlu1.b32.cont [14/16] (narrow) %v1187_v53, 32  ;;  %v1659_v8 = vmax.f32 %v252_v54, 0.0  ;;  %v214_v43 = vmul.f32 %v925_v29, %v1247_v2  ;;  %v166_v25 = vmul.f32 %v829_v13, %v1247_v2  ;;  %v268_v49 = vadd.f32 %v1258_v9, %v197_v51 }
  0x4d   :  { %v1664_v3 = vmax.f32 %v284_v47, 0.0  ;;  %v1667_v6 = vmax.f32 %v236_v57, 0.0  ;;  %v198_v42 = vmul.f32 %v893_v46, %v1247_v2  ;;  %v253_v53 = vadd.f32 %v1258_v9, %v182_v45 }
  0x4e   :  { %v285_v39 = vadd.f32 %v1258_v9, %v214_v43  ;;  %v237_v5 = vadd.f32 %v1258_v9, %v166_v25  ;;  %v1675_v29 = vmax.f32 %v268_v49, 0.0  ;;  %v1045_v38 = vpack.c.bf16 %v1280_v32, %v1276_v30 }
  0x4f   :  { %v1137_v48 = vpack.i.bf16 %v1664_v3, %v1659_v8  ;;  %v378_v13 = vsel %vm350_vm0, %v1667_v6, 0.0  ;;  %v1679_v51 = vmax.f32 %v253_v53, 0.0  ;;  %v269_v2 = vadd.f32 %v1258_v9, %v198_v42 }
  0x50   :  { %v379_v47 = vadd.f32 %v378_v13, %v377_v4  ;;  %v1681_v57 = vmax.f32 %v285_v39, 0.0  ;;  %v1189_v55 = vpack.i.bf16 %v1675_v29, %v1667_v6  ;;  %v1686_v26 = vmax.f32 %v237_v5, 0.0  ;;  %1046 = vmatprep.subr.bf16.mxu0 %v1045_v38 }
  0x51   :  { %1138 = vxpose.xlu0.b32.cont [15/16] (narrow) %v1137_v48, 32  ;;  %v382_v54 = vsel %vm350_vm0, %v1276_v30, 0.0  ;;  %v1694_v46 = vmax.f32 %v269_v2, 0.0  ;;  %v1077_v45 = vpack.c.bf16 %v1282_v33, %v1278_v31  ;;  %v1047_v43 = vpack.c.bf16 %v1288_v36, %v1284_v34 }
  0x52   :  { %v1139_v4 = vpack.i.bf16 %v1681_v57, %v1679_v51  ;;  %1190 = vxpose.xlu1.b32.cont [15/16] (narrow) %v1189_v55, 32  ;;  %v380_v9 = vsel %vm350_vm0, %v1686_v26, 0.0  ;;  %v1079_v25 = vpack.c.bf16 %v1290_v37, %v1286_v35  ;;  %v1049_v42 = vpack.c.bf16 %v1340_v15, %v1331_v10 }
  0x53   :  { %v1191_v30 = vpack.i.bf16 %v1694_v46, %v1686_v26  ;;  %v381_v49 = vadd.f32 %v380_v9, %v379_v47  ;;  %v384_v53 = vsel %vm350_vm0, %v1280_v32, 0.0  ;;  %1078 = vmatprep.subr.bf16.mxu1 %v1077_v45  ;;  %v1081_v39 = vpack.c.bf16 %v1342_v16, %v1333_v11  ;;  %1048 = vmatpush3.bf16.msra.mxu0 %v1047_v43 }
  0x54   :  { %v1051_v34 = vpack.c.bf16 %v1348_v19, %v1335_v12  ;;  %v1083_v36 = vpack.c.bf16 %v1366_v27, %v1338_v14  ;;  %1080 = vmatpush3.bf16.msra.mxu1 %v1079_v25  ;;  %v1053_v48 = vpack.c.bf16 %v1394_v1, %v1385_v60  ;;  %v1085_v32 = vpack.c.bf16 %v1413_v20, %v1387_v61 }
  0x55   :  { %1140 = vxpose.xlu0.b32.end [16/16] (narrow) %v1139_v4, 32  ;;  %v383_v5 = vadd.f32 %v382_v54, %v381_v49  ;;  %v386_v13 = vsel %vm350_vm0, %v1331_v10, 0.0  ;;  %1050 = vmatprep.subr.bf16.mxu0 %v1049_v42  ;;  %v1087_v12 = vpack.c.bf16 %v1417_v22, %v1392_v0  ;;  %v388_v47 = vsel %vm350_vm0, %v1340_v15, 0.0  ;;  %v1928_v49 = vld [vmem:[#allocation2_spill] sm:$0xff] }
  0x56   :  { %1192 = vxpose.xlu1.b32.end [16/16] (narrow) %v1191_v30, 32  ;;  %1082 = vmatprep.subr.bf16.mxu1 %v1081_v39  ;;  %v1055_v55 = vpack.c.bf16 %v1415_v21, %v1389_v62  ;;  %v390_v38 = vsel %vm350_vm0, %v1385_v60, 0.0  ;;  %v1057_v10 = vpack.c.bf16 %v1458_v17, %v1435_v52  ;;  %v1089_v54 = vpack.c.bf16 %v1460_v18, %v1440_v56  ;;  %v1930_v39 = vld [vmem:[#allocation5_spill] sm:$0xff] }
  0x57   :  { %v385_v19 = vadd.f32 %v384_v53, %v383_v5  ;;  %1052 = vmatpush3.bf16.msra.mxu0 %v1051_v34  ;;  %v392_v15 = vsel %vm350_vm0, %v1394_v1, 0.0  ;;  %v1059_v62 = vpack.c.bf16 %v1471_v28, %v1443_v58  ;;  %v1091_v60 = vpack.c.bf16 %v1478_v40, %v1454_v7  ;;  %v1927_v58 = vld [vmem:[#allocation3_spill] sm:$0xff]  ;;  %v1931_v34 = vld [vmem:[#allocation9_spill] sm:$0xff]  ;;  %v1932_v5 = vld [vmem:[#allocation6_spill] sm:$0xff] }
  0x58   :  { %1084 = vmatpush3.bf16.msra.mxu1 %v1083_v36  ;;  %1054 = vmatprep.subr.bf16.mxu0 %v1053_v48  ;;  %v394_v21 = vsel %vm350_vm0, %v1435_v52, 0.0  ;;  %v1061_v45 = vpack.c.bf16 %v1515_v44, %v1490_v63  ;;  %v1093_v1 = vpack.c.bf16 %v1525_v50, %v1498_v23  ;;  %v396_v25 = vsel %vm350_vm0, %v1458_v17, 0.0  ;;  %v1929_v52 = vld [vmem:[#allocation4_spill] sm:$0xff]  ;;  %v1933_v48 = vld [vmem:[#allocation10_spill] sm:$0xff] }
  0x59   :  { %v387_v2 = vadd.f32 %v386_v13, %v385_v19  ;;  %1086 = vmatprep.subr.bf16.mxu1 %v1085_v32  ;;  %v1063_v28 = vpack.c.bf16 %v1927_v58, %v1500_v24  ;;  %v1095_v42 = vpack.c.bf16 %v1929_v52, %v1928_v49  ;;  %v398_v53 = vsel %vm350_vm0, %v1490_v63, 0.0  ;;  %v1934_v24 = vld [vmem:[#allocation7_spill] sm:$0xff] }
  0x5a   :  { %v1065_v36 = vpack.c.bf16 %v1931_v34, %v1930_v39  ;;  %v1097_v17 = vpack.c.bf16 %v1933_v48, %v1932_v5  ;;  %v400_v13 = vsel %vm350_vm0, %v1515_v44, 0.0  ;;  %v1067_v19 = vpack.c.bf16 %v1583_v59, %v1934_v24  ;;  %v1940_v59 = vld [vmem:[#allocation13_spill] sm:$0xff] }
  0x5b   :  { %v389_v4 = vadd.f32 %v388_v47, %v387_v2  ;;  %1056 = vmatpush3.bf16.msra.mxu0 %v1055_v55  ;;  %v1935_v47 = vld [vmem:[#allocation8_spill] sm:$0xff]  ;;  %v402_v2 = vsel %vm350_vm0, %v1930_v39, 0.0  ;;  %v1936_v55 = vld [vmem:[#allocation11_spill] sm:$0xff]  ;;  %v1073_v58 = vpack.c.bf16 %v1679_v51, %v1659_v8  ;;  %v1107_v39 = vpack.c.bf16 %v1694_v46, %v1675_v29 }
  0x5c   :  { %1088 = vmatpush3.bf16.msra.mxu1 %v1087_v12  ;;  %1058 = vmatprep.subr.bf16.mxu0 %v1057_v10  ;;  %v1099_v63 = vpack.c.bf16 %v1590_v41, %v1935_v47 }
  0x5d   :  { %v391_v9 = vadd.f32 %v390_v38, %v389_v4  ;;  %1090 = vmatprep.subr.bf16.mxu1 %v1089_v54  ;;  %v1937_v38 = vld [vmem:[#allocation15_spill] sm:$0xff]  ;;  %v1938_v54 = vld [vmem:[#allocation12_spill] sm:$0xff] }
  0x5e   :  { %v1069_v10 = vpack.c.bf16 %v1937_v38, %v1936_v55  ;;  %v1939_v4 = vld [vmem:[#allocation16_spill] sm:$0xff] }
  0x5f   :  { %v393_v43 = vadd.f32 %v392_v15, %v391_v9  ;;  %1060 = vmatpush3.bf16.msra.mxu0 %v1059_v62  ;;  %v1101_v44 = vpack.c.bf16 %v1939_v4, %v1938_v54  ;;  %v404_v9 = vsel %vm350_vm0, %v1931_v34, 0.0  ;;  %v1075_v34 = vpack.c.bf16 %v1686_v26, %v1667_v6 }
  0x60   :  { %1092 = vmatpush3.bf16.msra.mxu1 %v1091_v60  ;;  %1062 = vmatprep.subr.bf16.mxu0 %v1061_v45  ;;  %v1941_v60 = vld [vmem:[#allocation17_spill] sm:$0xff]  ;;  %v1942_v45 = vld [vmem:[#allocation14_spill] sm:$0xff] }
  0x61   :  { %v395_v30 = vadd.f32 %v394_v21, %v393_v43  ;;  %1094 = vmatprep.subr.bf16.mxu1 %v1093_v1  ;;  %v1071_v21 = vpack.c.bf16 %v1941_v60, %v1940_v59  ;;  %v1943_v1 = vld [vmem:[#allocation18_spill] sm:$0xff] }
  0x62   :  { %v1103_v43 = vpack.c.bf16 %v1943_v1, %v1942_v45 }
  0x63   :  { %v397_v32 = vadd.f32 %v396_v25, %v395_v30  ;;  %1064 = vmatpush3.bf16.msra.mxu0 %v1063_v28  ;;  %v406_v25 = vsel %vm350_vm0, %v1936_v55, 0.0  ;;  %v1105_v30 = vpack.c.bf16 %v1681_v57, %v1664_v3 }
  0x64   :  { %1096 = vmatpush3.bf16.msra.mxu1 %v1095_v42  ;;  %1066 = vmatprep.subr.bf16.mxu0 %v1065_v36  ;;  %v408_v42 = vsel %vm350_vm0, %v1937_v38, 0.0  ;;  %v410_v36 = vsel %vm350_vm0, %v1659_v8, 0.0  ;;  %v418_v8 = vsel %vm350_vm0, %v1338_v14, 0.0  ;;  %v428_v14 = vsel %vm350_vm0, %v1478_v40, 0.0 }
  0x65   :  { %v399_v12 = vadd.f32 %v398_v53, %v397_v32  ;;  %1098 = vmatprep.subr.bf16.mxu1 %v1097_v17  ;;  %v412_v32 = vsel %vm350_vm0, %v1679_v51, 0.0  ;;  %v422_v51 = vsel %vm350_vm0, %v1392_v0, 0.0  ;;  %v432_v0 = vsel %vm350_vm0, %v1929_v52, 0.0 }
  0x66   :  { %v438_v40 = vsel %vm350_vm0, %v1942_v45, 0.0  ;;  %v442_v52 = vsel %vm350_vm0, %v1675_v29, 0.0  ;;  %v448_v45 = vsel %vm350_vm0, %v1282_v33, 0.0  ;;  %v452_v29 = vsel %vm350_vm0, %v1342_v16, 0.0 }
  0x67   :  { %v401_v15 = vadd.f32 %v400_v13, %v399_v12  ;;  %1068 = vmatpush3.bf16.msra.mxu0 %v1067_v19  ;;  %v414_v12 = vsel %vm350_vm0, %v1286_v35, 0.0  ;;  %v416_v19 = vsel %vm350_vm0, %v1290_v37, 0.0  ;;  %v424_v35 = vsel %vm350_vm0, %v1417_v22, 0.0 }
  0x68   :  { %1100 = vmatpush3.bf16.msra.mxu1 %v1099_v63  ;;  %1070 = vmatprep.subr.bf16.mxu0 %v1069_v10  ;;  %v420_v63 = vsel %vm350_vm0, %v1366_v27, 0.0  ;;  %v426_v37 = vsel %vm350_vm0, %v1454_v7, 0.0  ;;  %v430_v27 = vsel %vm350_vm0, %v1928_v49, 0.0  ;;  %v434_v22 = vsel %vm350_vm0, %v1935_v47, 0.0 }
  0x69   :  { %v403_v62 = vadd.f32 %v402_v2, %v401_v15  ;;  %1102 = vmatprep.subr.bf16.mxu1 %v1101_v44  ;;  %v436_v7 = vsel %vm350_vm0, %v1590_v41, 0.0  ;;  %v440_v49 = vsel %vm350_vm0, %v1943_v1, 0.0  ;;  %v444_v47 = vsel %vm350_vm0, %v1694_v46, 0.0 }
  0x6a   :  { %v446_v41 = vsel %vm350_vm0, %v1278_v31, 0.0  ;;  %v450_v1 = vsel %vm350_vm0, %v1333_v11, 0.0  ;;  %v454_v46 = vsel %vm350_vm0, %v1387_v61, 0.0  ;;  %v456_v33 = vsel %vm350_vm0, %v1413_v20, 0.0 }
  0x6b   :  { %v405_v28 = vadd.f32 %v404_v9, %v403_v62  ;;  %1072 = vmatpush3.bf16.msra.mxu0 %v1071_v21 }
  0x6c   :  { %1104 = vmatpush3.bf16.msra.mxu1 %v1103_v43  ;;  %1074 = vmatprep.subr.bf16.mxu0 %v1073_v58 }
  0x6d   :  { %v407_v53 = vadd.f32 %v406_v25, %v405_v28  ;;  %1106 = vmatprep.subr.bf16.mxu1 %v1105_v30 }
  0x6f   :  { %v409_v17 = vadd.f32 %v408_v42, %v407_v53  ;;  %1076 = vmatpush3.bf16.msra.mxu0 %v1075_v34 }
  0x70   :  { %1108 = vmatpush3.bf16.msra.mxu1 %v1107_v39 }
  0x71   :  { %v411_v13 = vadd.f32 %v410_v36, %v409_v17 }
  0x73   :  { %v413_v24 = vadd.f32 %v412_v32, %v411_v13 }
  0x75   :  { %v415_v6 = vadd.f32 %v414_v12, %v413_v24  ;;  %v458_v12 = vsel %vm350_vm0, %v1440_v56, 0.0 }
  0x77   :  { %v417_v26 = vadd.f32 %v416_v19, %v415_v6 }
  0x79   :  { %v419_v2 = vadd.f32 %v418_v8, %v417_v26  ;;  %v460_v8 = vsel %vm350_vm0, %v1460_v18, 0.0 }
  0x7b   :  { %v421_v55 = vadd.f32 %v420_v63, %v419_v2 }
  0x7d   :  { %v423_v38 = vadd.f32 %v422_v51, %v421_v55  ;;  %v462_v51 = vsel %vm350_vm0, %v1498_v23, 0.0 }
  0x7f   :  { %v425_v10 = vadd.f32 %v424_v35, %v423_v38 }
  0x81   :  { %v427_v44 = vadd.f32 %v426_v37, %v425_v10  ;;  %v464_v37 = vsel %vm350_vm0, %v1525_v50, 0.0 }
  0x83   :  { %v429_v15 = vadd.f32 %v428_v14, %v427_v44 }
  0x85   :  { %v431_v9 = vadd.f32 %v430_v27, %v429_v15  ;;  %v466_v27 = vsel %vm350_vm0, %v1932_v5, 0.0  ;;  %v472_v5 = vsel %vm350_vm0, %v1939_v4, 0.0 }
  0x87   :  { %v433_v62 = vadd.f32 %v432_v0, %v431_v9 }
  0x89   :  { %v435_v59 = vadd.f32 %v434_v22, %v433_v62  ;;  %v468_v22 = vsel %vm350_vm0, %v1933_v48, 0.0  ;;  %v476_v48 = vsel %vm350_vm0, %v1681_v57, 0.0 }
  0x8b   :  { %v437_v60 = vadd.f32 %v436_v7, %v435_v59  ;;  %v470_v7 = vsel %vm350_vm0, %v1938_v54, 0.0 }
  0x8d   :  { %v439_v21 = vadd.f32 %v438_v40, %v437_v60  ;;  %v474_v60 = vsel %vm350_vm0, %v1664_v3, 0.0 }
  0x8f   :  { %v441_v43 = vadd.f32 %v440_v49, %v439_v21 }
  0x91   :  { %v443_v25 = vadd.f32 %v442_v52, %v441_v43 }
  0x93   :  { %v445_v30 = vadd.f32 %v444_v47, %v443_v25 }
  0x95   :  { %v447_v58 = vadd.f32 %v446_v41, %v445_v30 }
  0x97   :  { %v449_v28 = vadd.f32 %v448_v45, %v447_v58 }
  0x99   :  { %v1141_v42 = vpop.trf.xlu0  ;;  %v451_v53 = vadd.f32 %v450_v1, %v449_v28 }
  0x9a   :  { %v1142_v39 = vunpack.i.l.bf16 %v1141_v42  ;;  %v1193_v34 = vpop.trf.xlu1  ;;  %v1145_v31 = vunpack.i.h.bf16 %v1141_v42 }
  0x9b   :  { %v453_v36 = vadd.f32 %v452_v29, %v451_v53  ;;  %v1194_v17 = vunpack.i.l.bf16 %v1193_v34  ;;  %v1197_v32 = vunpack.i.h.bf16 %v1193_v34 }
  0x9c   :  { %678 = vmatprep.mubr.f32.mxu0 %v1142_v39  ;;  %763 = vmatprep.mubr.f32.mxu1 %v1145_v31 }
  0x9d   :  { %v1146_v11 = vpop.trf.xlu0  ;;  %v455_v13 = vadd.f32 %v454_v46, %v453_v36  ;;  %679 = vmatmul.mubr.f32.vlgmr.msra.gmra.mrb[0].mxu0 %v1194_v17  ;;  %764 = vmatmul.mubr.f32.vlgmr.msra.gmra.mrb[0].mxu1 %v1197_v32 }
  0x9e   :  { %v1147_v16 = vunpack.i.l.bf16 %v1146_v11  ;;  %v1198_v24 = vpop.trf.xlu1  ;;  %v1150_v61 = vunpack.i.h.bf16 %v1146_v11 }
  0x9f   :  { %v457_v19 = vadd.f32 %v456_v33, %v455_v13  ;;  %v1199_v6 = vunpack.i.l.bf16 %v1198_v24  ;;  %v1202_v26 = vunpack.i.h.bf16 %v1198_v24 }
  0xa0   :  { %683 = vmatprep.mubr.f32.mxu0 %v1147_v16  ;;  %768 = vmatprep.mubr.f32.mxu1 %v1150_v61 }
  0xa1   :  { %v1151_v20 = vpop.trf.xlu0  ;;  %v459_v63 = vadd.f32 %v458_v12, %v457_v19  ;;  %684 = vmatmul.mubr.f32.gmra.mrb[2].mxu0 %v1199_v6  ;;  %769 = vmatmul.mubr.f32.gmra.mrb[2].mxu1 %v1202_v26 }
  0xa2   :  { %v1152_v2 = vunpack.i.l.bf16 %v1151_v20  ;;  %v1203_v56 = vpop.trf.xlu1  ;;  %v1155_v55 = vunpack.i.h.bf16 %v1151_v20 }
  0xa3   :  { %v461_v35 = vadd.f32 %v460_v8, %v459_v63  ;;  %v1204_v38 = vunpack.i.l.bf16 %v1203_v56  ;;  %v1207_v10 = vunpack.i.h.bf16 %v1203_v56 }
  0xa4   :  { %688 = vmatprep.mubr.f32.mxu0 %v1152_v2  ;;  %773 = vmatprep.mubr.f32.mxu1 %v1155_v55 }
  0xa5   :  { %v1156_v18 = vpop.trf.xlu0  ;;  %v463_v14 = vadd.f32 %v462_v51, %v461_v35  ;;  %689 = vmatmul.mubr.f32.gmra.mrb[4].mxu0 %v1204_v38  ;;  %774 = vmatmul.mubr.f32.gmra.mrb[4].mxu1 %v1207_v10 }
  0xa6   :  { %v1160_v44 = vunpack.i.h.bf16 %v1156_v18  ;;  %v1157_v15 = vunpack.i.l.bf16 %v1156_v18  ;;  %v1208_v23 = vpop.trf.xlu1 }
  0xa7   :  { %v465_v0 = vadd.f32 %v464_v37, %v463_v14  ;;  %v1212_v9 = vunpack.i.h.bf16 %v1208_v23  ;;  %v1209_v62 = vunpack.i.l.bf16 %v1208_v23 }
  0xa8   :  { %778 = vmatprep.mubr.f32.mxu1 %v1160_v44  ;;  %693 = vmatprep.mubr.f32.mxu0 %v1157_v15 }
  0xa9   :  { %v467_v50 = vadd.f32 %v466_v27, %v465_v0  ;;  %694 = vmatmul.mubr.f32.gmra.mrb[6].mxu0 %v1209_v62  ;;  %779 = vmatmul.mubr.f32.gmra.mrb[6].mxu1 %v1212_v9 }
  0xab   :  { %v469_v59 = vadd.f32 %v468_v22, %v467_v50 }
  0xad   :  { %v471_v40 = vadd.f32 %v470_v7, %v469_v59 }
  0xaf   :  { %v473_v49 = vadd.f32 %v472_v5, %v471_v40 }
  0xb1   :  { %v475_v21 = vadd.f32 %v474_v60, %v473_v49 }
  0xb3   :  { %v477_v52 = vadd.f32 %v476_v48, %v475_v21 }
  0xb5   :  { %v478_v43 = vrot.slane %v477_v52, 4 }
  0xb7   :  { %v479_v47 = vadd.f32 %v478_v43, %v477_v52 }
  0xb9   :  { %v480_v25 = vrot.slane %v479_v47, 2 }
  0xbb   :  { %v481_v54 = vadd.f32 %v480_v25, %v479_v47 }
  0xbd   :  { %v482_v41 = vrot.slane %v481_v54, 1 }
  0xbf   :  { %v483_v30 = vadd.f32 %v482_v41, %v481_v54 }
  0xc1   :  { %485 = vst.msk [vmem:[%s1878_s3] sm:$0x1] %vm484_vm1, %v483_v30 }
 0x170   :  { %v989_v4 = vpop.f32.mrb[0].mxu0  ;;  %v1033_v45 = vpop.f32.mrb[0].mxu1 }
 0x171   :  { %v990_v3 = vpop.f32.mrb[1].mxu0  ;;  %v1034_v1 = vpop.f32.mrb[1].mxu1 }
 0x172   :  { %v991_v58 = vadd.f32 %v990_v3, %v989_v4  ;;  %v1035_v28 = vadd.f32 %v1034_v1, %v1033_v45 }
 0x174   :  { %v992_v57 = vpop.f32.mrb[2].mxu0  ;;  %v766_v29 = vadd.f32 %v1035_v28, %v991_v58  ;;  %v1036_v42 = vpop.f32.mrb[2].mxu1 }
 0x175   :  { %v993_v53 = vpop.f32.mrb[3].mxu0  ;;  %v1037_v46 = vpop.f32.mrb[3].mxu1 }
 0x176   :  { %v994_v39 = vadd.f32 %v993_v53, %v992_v57  ;;  %784 = vst.msk [vmem:[%s1879_s4] sm:$0xff] %vm350_vm0, %v766_v29  ;;  %v1038_v34 = vadd.f32 %v1037_v46, %v1036_v42 }
 0x178   :  { %v995_v31 = vpop.f32.mrb[4].mxu0  ;;  %v771_v36 = vadd.f32 %v1038_v34, %v994_v39  ;;  %v1039_v17 = vpop.f32.mrb[4].mxu1 }
 0x179   :  { %v996_v33 = vpop.f32.mrb[5].mxu0  ;;  %v1040_v32 = vpop.f32.mrb[5].mxu1 }
 0x17a   :  { %v997_v11 = vadd.f32 %v996_v33, %v995_v31  ;;  %785 = vst.msk [vmem:[%s1879_s4 + $0x8] sm:$0xff] %vm350_vm0, %v771_v36  ;;  %v1041_v13 = vadd.f32 %v1040_v32, %v1039_v17 }
 0x17c   :  { %v776_v16 = vadd.f32 %v1041_v13, %v997_v11  ;;  %v998_v12 = vpop.f32.mrb[6].mxu0  ;;  %v1042_v24 = vpop.f32.mrb[6].mxu1 }
 0x17d   :  { %v999_v61 = vpop.f32.mrb[7].mxu0  ;;  %v1043_v19 = vpop.f32.mrb[7].mxu1 }
 0x17e   :  { %786 = vst.msk [vmem:[%s1879_s4 + $0x10] sm:$0xff] %vm350_vm0, %v776_v16  ;;  %v1000_v6 = vadd.f32 %v999_v61, %v998_v12  ;;  %v1044_v8 = vadd.f32 %v1043_v19, %v1042_v24 }
 0x180   :  { %v781_v20 = vadd.f32 %v1044_v8, %v1000_v6 }
 0x182   :  { %787 = vst.msk [vmem:[%s1879_s4 + $0x18] sm:$0xff] %vm350_vm0, %v781_v20 }

// kernel: _lambda_.7
= control target key start
LH: loop header
LB: loop body
LE: loop exit
PB: predicated region body
PF: predicated region fallthrough
CT: control target
= control target key end

     0   :  { %vm526_vm0 = vcmask 523264   ;;  %vm924_vm1 = vcmask 261120   ;;  %s2696_s0 = inlined_call_operand.vmem [shape: bf16[512,32], index: 0, kind: input, shape index: {}]   ;;  %s2697_s1 = inlined_call_operand.vmem [shape: f32[512,64], index: 1, kind: input, shape index: {}]   ;;  %s2698_s2 = inlined_call_operand.vmem [shape: f32[1,32], index: 2, kind: input, shape index: {}]   ;;  %s2699_s3 = inlined_call_operand.vmem [shape: f32[1,32], index: 3, kind: input, shape index: {}]   ;;  %s2700_s4 = inlined_call_operand.vmem [shape: bf16[32,128], index: 4, kind: input, shape index: {}]   ;;  %s2701_s5 = inlined_call_operand.vmem [shape: bf16[64,128], index: 5, kind: input, shape index: {}]   ;;  %s2702_s6 = inlined_call_operand.vmem [shape: f32[1,128], index: 6, kind: input, shape index: {}]   ;;  %s2703_s7 = inlined_call_operand.hbm [shape: f32[512,128], index: 7, kind: output, shape index: {}]  }
   0x1   :  { %v2034_v0 = vld [vmem:[%s2701_s5] sm:$0xff]   ;;  %v2035_v1 = vld [vmem:[%s2701_s5 + $0x8] sm:$0xff]   ;;  %v2037_v3 = vld [vmem:[%s2701_s5 + $0x10] sm:$0xff]  }
   0x2   :  { %1827 = vmatprep.subr.bf16.mxu1 %v2034_v0  ;;  %v2036_v2 = vld [vmem:[%s2700_s4] sm:$0xff]   ;;  %v2038_v4 = vld [vmem:[%s2700_s4 + $0x8] sm:$0xff]   ;;  %v2039_v5 = vld [vmem:[%s2701_s5 + $0x18] sm:$0xff]  }
   0x3   :  { %1828 = vmatpush3.bf16.msra.mxu1 %v2034_v0  ;;  %1899 = vmatprep.subr.bf16.mxu0 %v2036_v2  ;;  %v1599_v6 = vld [vmem:[%s2696_s0] sm:$0xff]   ;;  %v1726_v11 = vld [vmem:[%s2696_s0 + $0x8] sm:$0xff]   ;;  %v400_v17 = vld [vmem:[%s2697_s1 + $0x10] sm:$0xff] }
   0x4   :  { %1829 = vmatprep.subr.bf16.mxu1 %v2035_v1  ;;  %1900 = vmatpush3.bf16.msra.mxu0 %v2036_v2  ;;  %v2131_v7 = vld [vmem:[%s2698_s2] ss:$0 sm:$0xff]  ;;  %v1600_v9 = vunpack.c.l.bf16 %v1599_v6  ;;  %v1601_v10 = vunpack.c.h.bf16 %v1599_v6  ;;  %v399_v13 = vld [vmem:[%s2697_s1 + $0x8] sm:$0xff]  ;;  %v1604_v14 = vunpack.c.l.bf16 %v1726_v11  ;;  %v1605_v15 = vunpack.c.h.bf16 %v1726_v11  ;;  %v401_v18 = vld [vmem:[%s2697_s1 + $0x18] sm:$0xff] }
   0x5   :  { %1901 = vmatprep.subr.bf16.mxu0 %v2038_v4  ;;  %v2136_v8 = vld [vmem:[%s2699_s3] ss:$0 sm:$0xff]  ;;  %v1727_v19 = vld [vmem:[%s2696_s0 + $0x10] sm:$0xff]   ;;  %v463_v22 = vpack.c.bf16 %v401_v18, %v400_v17  ;;  %v1728_v24 = vld [vmem:[%s2696_s0 + $0x18] sm:$0xff]  }
   0x6   :  { %v398_v12 = vld [vmem:[%s2697_s1] sm:$0xff]  ;;  %v163_v20 = vmul.f32 %v1600_v9, %v2131_v7  ;;  %v164_v21 = vmul.f32 %v1601_v10, %v2131_v7  ;;  %v1608_v23 = vunpack.c.l.bf16 %v1727_v19  ;;  %v165_v25 = vmul.f32 %v1604_v14, %v2131_v7  ;;  %v403_v38 = vld [vmem:[%s2697_s1 + $0x28] sm:$0xff]  ;;  %v404_v56 = vld [vmem:[%s2697_s1 + $0x30] sm:$0xff] }
   0x7   :  { %1830 = vmatpush3.bf16.msra.mxu1 %v2035_v1  ;;  %v462_v16 = vpack.c.bf16 %v399_v13, %v398_v12  ;;  %v166_v26 = vmul.f32 %v1605_v15, %v2131_v7  ;;  %v1609_v27 = vunpack.c.h.bf16 %v1727_v19  ;;  %v1612_v28 = vunpack.c.l.bf16 %v1728_v24  ;;  %v402_v37 = vld [vmem:[%s2697_s1 + $0x20] sm:$0xff]  ;;  %v1730_v48 = vld [vmem:[%s2696_s0 + $0x28] sm:$0xff]   ;;  %v405_v57 = vld [vmem:[%s2697_s1 + $0x38] sm:$0xff] }
   0x8   :  { %1831 = vmatprep.subr.bf16.mxu1 %v2037_v3  ;;  %1902 = vmatpush3.bf16.msra.mxu0 %v2038_v4  ;;  %v234_v29 = vadd.f32 %v2136_v8, %v163_v20  ;;  %v235_v30 = vadd.f32 %v2136_v8, %v164_v21  ;;  %v167_v31 = vmul.f32 %v1608_v23, %v2131_v7  ;;  %v1613_v32 = vunpack.c.h.bf16 %v1728_v24  ;;  %v1729_v47 = vld [vmem:[%s2696_s0 + $0x20] sm:$0xff]   ;;  %v1731_v62 = vld [vmem:[%s2696_s0 + $0x30] sm:$0xff]   ;;  %v1732_v63 = vld [vmem:[%s2696_s0 + $0x38] sm:$0xff]  }
   0x9   :  { %1835 = vmatprep.mubr.msk.bf16.mxu1 %vm526_vm0, %v462_v16  ;;  %v236_v33 = vadd.f32 %v2136_v8, %v165_v25  ;;  %v237_v34 = vadd.f32 %v2136_v8, %v166_v26  ;;  %v168_v35 = vmul.f32 %v1609_v27, %v2131_v7  ;;  %v169_v36 = vmul.f32 %v1612_v28, %v2131_v7  ;;  %v406_v9 = vld [vmem:[%s2697_s1 + $0x40] sm:$0xff]  ;;  %v407_v10 = vld [vmem:[%s2697_s1 + $0x48] sm:$0xff] }
   0xa   :  { %v298_v39 = vmax.f32 %v234_v29, 0.0  ;;  %v299_v40 = vmax.f32 %v235_v30, 0.0  ;;  %v238_v41 = vadd.f32 %v2136_v8, %v167_v31  ;;  %v170_v42 = vmul.f32 %v1613_v32, %v2131_v7  ;;  %v1733_v28 = vld [vmem:[%s2696_s0 + $0x40] sm:$0xff]   ;;  %v408_v30 = vld [vmem:[%s2697_s1 + $0x50] sm:$0xff]  ;;  %v409_v31 = vld [vmem:[%s2697_s1 + $0x58] sm:$0xff] }
   0xb   :  { %1832 = vmatpush3.bf16.msra.mxu1 %v2037_v3  ;;  %v300_v43 = vmax.f32 %v236_v33, 0.0  ;;  %v301_v44 = vmax.f32 %v237_v34, 0.0  ;;  %v239_v45 = vadd.f32 %v2136_v8, %v168_v35  ;;  %v240_v46 = vadd.f32 %v2136_v8, %v169_v36  ;;  %v1734_v35 = vld [vmem:[%s2696_s0 + $0x48] sm:$0xff]  }
   0xc   :  { %1833 = vmatprep.subr.bf16.mxu1 %v2039_v5  ;;  %v362_v49 = vpack.c.bf16 %v299_v40, %v298_v39  ;;  %v302_v50 = vmax.f32 %v238_v41, 0.0  ;;  %v241_v51 = vadd.f32 %v2136_v8, %v170_v42  ;;  %v464_v52 = vpack.c.bf16 %v403_v38, %v402_v37  ;;  %v1735_v40 = vld [vmem:[%s2696_s0 + $0x50] sm:$0xff]  }
   0xd   :  { %v363_v53 = vpack.c.bf16 %v301_v44, %v300_v43  ;;  %v303_v54 = vmax.f32 %v239_v45, 0.0  ;;  %v304_v55 = vmax.f32 %v240_v46, 0.0  ;;  %v1616_v59 = vunpack.c.l.bf16 %v1729_v47  ;;  %v410_v43 = vld [vmem:[%s2697_s1 + $0x60] sm:$0xff]  ;;  %v411_v44 = vld [vmem:[%s2697_s1 + $0x68] sm:$0xff] }
   0xe   :  { %1903 = vmatprep.mubr.msk.bf16.mxu0 %vm924_vm1, %v362_v49  ;;  %v305_v58 = vmax.f32 %v241_v51, 0.0  ;;  %v1617_v60 = vunpack.c.h.bf16 %v1729_v47  ;;  %v1620_v61 = vunpack.c.l.bf16 %v1730_v48  ;;  %v1621_v1 = vunpack.c.h.bf16 %v1730_v48 }
   0xf   :  { %1834 = vmatpush3.bf16.msra.mxu1 %v2039_v5  ;;  %1904 = vmatmul.mubr.msk.bf16.vlgmr.msra.gmra.mrb[0].mxu0 %vm924_vm1, %v363_v53  ;;  %v364_v0 = vpack.c.bf16 %v303_v54, %v302_v50  ;;  %v465_v2 = vpack.c.bf16 %v405_v57, %v404_v56  ;;  %v171_v3 = vmul.f32 %v1616_v59, %v2131_v7  ;;  %v1624_v11 = vunpack.c.l.bf16 %v1731_v62 }
  0x10   :  { %v172_v4 = vmul.f32 %v1617_v60, %v2131_v7  ;;  %v173_v5 = vmul.f32 %v1620_v61, %v2131_v7  ;;  %v174_v6 = vmul.f32 %v1621_v1, %v2131_v7  ;;  %v1625_v12 = vunpack.c.h.bf16 %v1731_v62  ;;  %v412_v60 = vld [vmem:[%s2697_s1 + $0x70] sm:$0xff]  ;;  %v413_v61 = vld [vmem:[%s2697_s1 + $0x78] sm:$0xff] }
  0x11   :  { %1907 = vmatprep.mubr.msk.bf16.mxu0 %vm924_vm1, %v364_v0  ;;  %v1628_v13 = vunpack.c.l.bf16 %v1732_v63  ;;  %v365_v14 = vpack.c.bf16 %v305_v58, %v304_v55  ;;  %v242_v15 = vadd.f32 %v2136_v8, %v171_v3  ;;  %v1629_v17 = vunpack.c.h.bf16 %v1732_v63  ;;  %v1736_v1 = vld [vmem:[%s2696_s0 + $0x58] sm:$0xff]  }
  0x12   :  { %1836 = vmatmul.mubr.msk.bf16.vlgmr.msra.gmra.mrb[0].mxu1 %vm526_vm0, %v463_v22  ;;  %v243_v16 = vadd.f32 %v2136_v8, %v172_v4  ;;  %v244_v18 = vadd.f32 %v2136_v8, %v173_v5  ;;  %v245_v19 = vadd.f32 %v2136_v8, %v174_v6  ;;  %v175_v20 = vmul.f32 %v1624_v11, %v2131_v7  ;;  %v414_v4 = vld [vmem:[%s2697_s1 + $0x80] sm:$0xff]  ;;  %v415_v5 = vld [vmem:[%s2697_s1 + $0x88] sm:$0xff] }
  0x13   :  { %1839 = vmatprep.mubr.msk.bf16.mxu1 %vm526_vm0, %v464_v52  ;;  %v176_v21 = vmul.f32 %v1625_v12, %v2131_v7  ;;  %v306_v22 = vmax.f32 %v242_v15, 0.0  ;;  %v466_v24 = vpack.c.bf16 %v407_v10, %v406_v9  ;;  %v177_v27 = vmul.f32 %v1628_v13, %v2131_v7  ;;  %v1737_v6 = vld [vmem:[%s2696_s0 + $0x60] sm:$0xff]  }
  0x14   :  { %v307_v23 = vmax.f32 %v243_v16, 0.0  ;;  %v246_v25 = vadd.f32 %v2136_v8, %v175_v20  ;;  %v178_v32 = vmul.f32 %v1629_v17, %v2131_v7  ;;  %v308_v33 = vmax.f32 %v244_v18, 0.0 }
  0x15   :  { %v247_v26 = vadd.f32 %v2136_v8, %v176_v21  ;;  %v309_v34 = vmax.f32 %v245_v19, 0.0  ;;  %v1632_v38 = vunpack.c.l.bf16 %v1733_v28  ;;  %v1633_v39 = vunpack.c.h.bf16 %v1733_v28 }
  0x16   :  { %v366_v29 = vpack.c.bf16 %v307_v23, %v306_v22  ;;  %v310_v36 = vmax.f32 %v246_v25, 0.0  ;;  %v467_v41 = vpack.c.bf16 %v409_v31, %v408_v30  ;;  %v248_v42 = vadd.f32 %v2136_v8, %v177_v27 }
  0x17   :  { %1908 = vmatmul.mubr.msk.bf16.gmra.mrb[4].mxu0 %vm924_vm1, %v365_v14  ;;  %v311_v37 = vmax.f32 %v247_v26, 0.0  ;;  %v249_v45 = vadd.f32 %v2136_v8, %v178_v32  ;;  %v179_v46 = vmul.f32 %v1632_v38, %v2131_v7  ;;  %v180_v47 = vmul.f32 %v1633_v39, %v2131_v7 }
  0x18   :  { %1911 = vmatprep.mubr.msk.bf16.mxu0 %vm924_vm1, %v366_v29  ;;  %v1636_v48 = vunpack.c.l.bf16 %v1734_v35  ;;  %v367_v49 = vpack.c.bf16 %v309_v34, %v308_v33  ;;  %v1637_v50 = vunpack.c.h.bf16 %v1734_v35  ;;  %v1640_v51 = vunpack.c.l.bf16 %v1735_v40 }
  0x19   :  { %v1641_v52 = vunpack.c.h.bf16 %v1735_v40  ;;  %v368_v53 = vpack.c.bf16 %v311_v37, %v310_v36  ;;  %v468_v54 = vpack.c.bf16 %v411_v44, %v410_v43  ;;  %v250_v55 = vadd.f32 %v2136_v8, %v179_v46 }
  0x1a   :  { %1840 = vmatmul.mubr.msk.bf16.gmra.mrb[4].mxu1 %vm526_vm0, %v465_v2  ;;  %v251_v56 = vadd.f32 %v2136_v8, %v180_v47  ;;  %v312_v57 = vmax.f32 %v248_v42, 0.0  ;;  %v313_v58 = vmax.f32 %v249_v45, 0.0  ;;  %v181_v59 = vmul.f32 %v1636_v48, %v2131_v7 }
  0x1b   :  { %1843 = vmatprep.mubr.msk.bf16.mxu1 %vm526_vm0, %v466_v24  ;;  %v182_v62 = vmul.f32 %v1637_v50, %v2131_v7  ;;  %v183_v63 = vmul.f32 %v1640_v51, %v2131_v7  ;;  %v184_v0 = vmul.f32 %v1641_v52, %v2131_v7  ;;  %v314_v2 = vmax.f32 %v250_v55, 0.0 }
  0x1c   :  { %v315_v3 = vmax.f32 %v251_v56, 0.0  ;;  %v369_v9 = vpack.c.bf16 %v313_v58, %v312_v57  ;;  %v469_v10 = vpack.c.bf16 %v413_v61, %v412_v60  ;;  %v252_v11 = vadd.f32 %v2136_v8, %v181_v59 }
  0x1d   :  { %v1644_v12 = vunpack.c.l.bf16 %v1736_v1  ;;  %v253_v13 = vadd.f32 %v2136_v8, %v182_v62  ;;  %v254_v14 = vadd.f32 %v2136_v8, %v183_v63  ;;  %v255_v15 = vadd.f32 %v2136_v8, %v184_v0 }
  0x1e   :  { %v1645_v16 = vunpack.c.h.bf16 %v1736_v1 }
  0x1f   :  { %1912 = vmatmul.mubr.msk.bf16.gmra.mrb[8].mxu0 %vm924_vm1, %v367_v49 }
  0x20   :  { %1915 = vmatprep.mubr.msk.bf16.mxu0 %vm924_vm1, %v368_v53 }
  0x22   :  { %1844 = vmatmul.mubr.msk.bf16.gmra.mrb[8].mxu1 %vm526_vm0, %v467_v41 }
  0x23   :  { %1847 = vmatprep.mubr.msk.bf16.mxu1 %vm526_vm0, %v468_v54 }
  0x24   :  { %12 = vsyncpa [#allocation3], 0  ;;  %v370_v17 = vpack.c.bf16 %v315_v3, %v314_v2  ;;  %v470_v18 = vpack.c.bf16 %v415_v5, %v414_v4  ;;  %v1648_v19 = vunpack.c.l.bf16 %v1737_v6  ;;  %v1649_v20 = vunpack.c.h.bf16 %v1737_v6  ;;  %v416_v24 = vld [vmem:[%s2697_s1 + $0x90] sm:$0xff]  ;;  %v417_v25 = vld [vmem:[%s2697_s1 + $0x98] sm:$0xff] }
  0x25   :  { %v316_v21 = vmax.f32 %v252_v11, 0.0  ;;  %v185_v22 = vmul.f32 %v1644_v12, %v2131_v7  ;;  %v317_v23 = vmax.f32 %v253_v13, 0.0  ;;  %v318_v26 = vmax.f32 %v254_v14, 0.0  ;;  %v1738_v29 = vld [vmem:[%s2696_s0 + $0x68] sm:$0xff]   ;;  %v418_v30 = vld [vmem:[%s2697_s1 + $0xa0] sm:$0xff]  ;;  %v1739_v34 = vld [vmem:[%s2696_s0 + $0x70] sm:$0xff]  }
  0x26   :  { %v319_v27 = vmax.f32 %v255_v15, 0.0  ;;  %v186_v28 = vmul.f32 %v1645_v16, %v2131_v7  ;;  %v419_v31 = vld [vmem:[%s2697_s1 + $0xa8] sm:$0xff]  ;;  %v187_v32 = vmul.f32 %v1648_v19, %v2131_v7  ;;  %v188_v33 = vmul.f32 %v1649_v20, %v2131_v7  ;;  %v1740_v51 = vld [vmem:[%s2696_s0 + $0x78] sm:$0xff]   ;;  %v420_v52 = vld [vmem:[%s2697_s1 + $0xb0] sm:$0xff] }
  0x27   :  { %1916 = vmatmul.mubr.msk.bf16.gmra.mrb[12].mxu0 %vm924_vm1, %v369_v9  ;;  %v471_v35 = vpack.c.bf16 %v417_v25, %v416_v24  ;;  %v256_v36 = vadd.f32 %v2136_v8, %v185_v22  ;;  %v1652_v37 = vunpack.c.l.bf16 %v1738_v29  ;;  %v1653_v38 = vunpack.c.h.bf16 %v1738_v29  ;;  %v421_v53 = vld [vmem:[%s2697_s1 + $0xb8] sm:$0xff]  ;;  %v1741_v58 = vld [vmem:[%s2696_s0 + $0x80] sm:$0xff]   ;;  %v423_v60 = vld [vmem:[%s2697_s1 + $0xc8] sm:$0xff] }
  0x28   :  { %1919 = vmatprep.mubr.msk.bf16.mxu0 %vm924_vm1, %v370_v17  ;;  %v371_v39 = vpack.c.bf16 %v317_v23, %v316_v21  ;;  %v372_v40 = vpack.c.bf16 %v319_v27, %v318_v26  ;;  %v257_v41 = vadd.f32 %v2136_v8, %v186_v28  ;;  %v472_v42 = vpack.c.bf16 %v419_v31, %v418_v30  ;;  %v422_v59 = vld [vmem:[%s2697_s1 + $0xc0] sm:$0xff]  ;;  %v424_v15 = vld [vmem:[%s2697_s1 + $0xd0] sm:$0xff]  ;;  %v425_v16 = vld [vmem:[%s2697_s1 + $0xd8] sm:$0xff] }
  0x29   :  { %v258_v43 = vadd.f32 %v2136_v8, %v187_v32  ;;  %v259_v44 = vadd.f32 %v2136_v8, %v188_v33  ;;  %v1656_v45 = vunpack.c.l.bf16 %v1739_v34  ;;  %v1657_v46 = vunpack.c.h.bf16 %v1739_v34  ;;  %v1742_v21 = vld [vmem:[%s2696_s0 + $0x88] sm:$0xff]   ;;  %v426_v22 = vld [vmem:[%s2697_s1 + $0xe0] sm:$0xff]  ;;  %v1743_v24 = vld [vmem:[%s2696_s0 + $0x90] sm:$0xff]  }
  0x2a   :  { %1848 = vmatmul.mubr.msk.bf16.gmra.mrb[12].mxu1 %vm526_vm0, %v469_v10  ;;  %v189_v47 = vmul.f32 %v1652_v37, %v2131_v7  ;;  %v190_v48 = vmul.f32 %v1653_v38, %v2131_v7  ;;  %v320_v49 = vmax.f32 %v256_v36, 0.0  ;;  %v321_v50 = vmax.f32 %v257_v41, 0.0  ;;  %v427_v23 = vld [vmem:[%s2697_s1 + $0xe8] sm:$0xff] }
  0x2b   :  { %1851 = vmatprep.mubr.msk.bf16.mxu1 %vm526_vm0, %v470_v18  ;;  %v322_v54 = vmax.f32 %v258_v43, 0.0  ;;  %v323_v55 = vmax.f32 %v259_v44, 0.0  ;;  %v191_v56 = vmul.f32 %v1656_v45, %v2131_v7  ;;  %v192_v57 = vmul.f32 %v1657_v46, %v2131_v7  ;;  %v430_v45 = vld [vmem:[%s2697_s1 + $0x100] sm:$0xff]  ;;  %v431_v46 = vld [vmem:[%s2697_s1 + $0x108] sm:$0xff] }
  0x2c   :  { %v260_v61 = vadd.f32 %v2136_v8, %v189_v47  ;;  %v261_v62 = vadd.f32 %v2136_v8, %v190_v48  ;;  %v1660_v63 = vunpack.c.l.bf16 %v1740_v51  ;;  %v1661_v0 = vunpack.c.h.bf16 %v1740_v51  ;;  %v1744_v47 = vld [vmem:[%s2696_s0 + $0x98] sm:$0xff]  }
  0x2d   :  { %v373_v1 = vpack.c.bf16 %v321_v50, %v320_v49  ;;  %v473_v2 = vpack.c.bf16 %v421_v53, %v420_v52  ;;  %v1664_v3 = vunpack.c.l.bf16 %v1741_v58  ;;  %v1665_v4 = vunpack.c.h.bf16 %v1741_v58  ;;  %v1745_v50 = vld [vmem:[%s2696_s0 + $0xa0] sm:$0xff]  }
  0x2e   :  { %v374_v5 = vpack.c.bf16 %v323_v55, %v322_v54  ;;  %v474_v6 = vpack.c.bf16 %v423_v60, %v422_v59  ;;  %v262_v9 = vadd.f32 %v2136_v8, %v191_v56  ;;  %v263_v10 = vadd.f32 %v2136_v8, %v192_v57 }
  0x2f   :  { %1920 = vmatmul.mubr.msk.bf16.gmra.mrb[16].mxu0 %vm924_vm1, %v371_v39  ;;  %v324_v11 = vmax.f32 %v260_v61, 0.0  ;;  %v325_v12 = vmax.f32 %v261_v62, 0.0  ;;  %v193_v13 = vmul.f32 %v1660_v63, %v2131_v7  ;;  %v194_v14 = vmul.f32 %v1661_v0, %v2131_v7  ;;  %v428_v39 = vld [vmem:[%s2697_s1 + $0xf0] sm:$0xff] }
  0x30   :  { %1923 = vmatprep.mubr.msk.bf16.mxu0 %vm924_vm1, %v372_v40  ;;  %v195_v17 = vmul.f32 %v1664_v3, %v2131_v7  ;;  %v196_v18 = vmul.f32 %v1665_v4, %v2131_v7  ;;  %v326_v19 = vmax.f32 %v262_v9, 0.0  ;;  %v327_v20 = vmax.f32 %v263_v10, 0.0  ;;  %v429_v40 = vld [vmem:[%s2697_s1 + $0xf8] sm:$0xff]  ;;  %v432_v63 = vld [vmem:[%s2697_s1 + $0x110] sm:$0xff] }
  0x31   :  { %v375_v25 = vpack.c.bf16 %v325_v12, %v324_v11  ;;  %v475_v26 = vpack.c.bf16 %v425_v16, %v424_v15  ;;  %v264_v27 = vadd.f32 %v2136_v8, %v193_v13  ;;  %v265_v28 = vadd.f32 %v2136_v8, %v194_v14  ;;  %v433_v4 = vld [vmem:[%s2697_s1 + $0x118] sm:$0xff]  ;;  %v1746_v13 = vld [vmem:[%s2696_s0 + $0xa8] sm:$0xff]   ;;  %v1747_v14 = vld [vmem:[%s2696_s0 + $0xb0] sm:$0xff]  }
  0x32   :  { %1852 = vmatmul.mubr.msk.bf16.gmra.mrb[16].mxu1 %vm526_vm0, %v471_v35  ;;  %v266_v29 = vadd.f32 %v2136_v8, %v195_v17  ;;  %v267_v30 = vadd.f32 %v2136_v8, %v196_v18  ;;  %v1668_v31 = vunpack.c.l.bf16 %v1742_v21  ;;  %v1669_v32 = vunpack.c.h.bf16 %v1742_v21 }
  0x33   :  { %1855 = vmatprep.mubr.msk.bf16.mxu1 %vm526_vm0, %v472_v42  ;;  %v376_v33 = vpack.c.bf16 %v327_v20, %v326_v19  ;;  %v476_v34 = vpack.c.bf16 %v427_v23, %v426_v22  ;;  %v1672_v35 = vunpack.c.l.bf16 %v1743_v24  ;;  %v1673_v36 = vunpack.c.h.bf16 %v1743_v24 }
  0x34   :  { %v328_v37 = vmax.f32 %v264_v27, 0.0  ;;  %v329_v38 = vmax.f32 %v265_v28, 0.0  ;;  %v330_v41 = vmax.f32 %v266_v29, 0.0  ;;  %v331_v42 = vmax.f32 %v267_v30, 0.0  ;;  %v436_v29 = vld [vmem:[%s2697_s1 + $0x130] sm:$0xff]  ;;  %v437_v30 = vld [vmem:[%s2697_s1 + $0x138] sm:$0xff] }
  0x35   :  { %v197_v43 = vmul.f32 %v1668_v31, %v2131_v7  ;;  %v198_v44 = vmul.f32 %v1669_v32, %v2131_v7  ;;  %v199_v48 = vmul.f32 %v1672_v35, %v2131_v7  ;;  %v200_v49 = vmul.f32 %v1673_v36, %v2131_v7  ;;  %v1748_v36 = vld [vmem:[%s2696_s0 + $0xb8] sm:$0xff]  }
  0x36   :  { %v477_v51 = vpack.c.bf16 %v429_v40, %v428_v39  ;;  %v478_v52 = vpack.c.bf16 %v431_v46, %v430_v45  ;;  %v1676_v53 = vunpack.c.l.bf16 %v1744_v47  ;;  %v1677_v54 = vunpack.c.h.bf16 %v1744_v47  ;;  %v1749_v40 = vld [vmem:[%s2696_s0 + $0xc0] sm:$0xff]  }
  0x37   :  { %1924 = vmatmul.mubr.msk.bf16.gmra.mrb[20].mxu0 %vm924_vm1, %v373_v1  ;;  %v377_v55 = vpack.c.bf16 %v329_v38, %v328_v37  ;;  %v378_v56 = vpack.c.bf16 %v331_v42, %v330_v41  ;;  %v268_v57 = vadd.f32 %v2136_v8, %v197_v43  ;;  %v269_v58 = vadd.f32 %v2136_v8, %v198_v44 }
  0x38   :  { %1927 = vmatprep.mubr.msk.bf16.mxu0 %vm924_vm1, %v374_v5  ;;  %v270_v59 = vadd.f32 %v2136_v8, %v199_v48  ;;  %v271_v60 = vadd.f32 %v2136_v8, %v200_v49  ;;  %v1680_v61 = vunpack.c.l.bf16 %v1745_v50  ;;  %v1681_v62 = vunpack.c.h.bf16 %v1745_v50  ;;  %v434_v5 = vld [vmem:[%s2697_s1 + $0x120] sm:$0xff] }
  0x39   :  { %v201_v0 = vmul.f32 %v1676_v53, %v2131_v7  ;;  %v202_v1 = vmul.f32 %v1677_v54, %v2131_v7  ;;  %v333_v3 = vmax.f32 %v269_v58, 0.0  ;;  %v479_v15 = vpack.c.bf16 %v433_v4, %v432_v63 }
  0x3a   :  { %1856 = vmatmul.mubr.msk.bf16.gmra.mrb[20].mxu1 %vm526_vm0, %v473_v2  ;;  %v332_v2 = vmax.f32 %v268_v57, 0.0  ;;  %v334_v9 = vmax.f32 %v270_v59, 0.0  ;;  %v335_v10 = vmax.f32 %v271_v60, 0.0  ;;  %v203_v11 = vmul.f32 %v1680_v61, %v2131_v7  ;;  %v441_v57 = vld [vmem:[%s2697_s1 + $0x158] sm:$0xff]  ;;  %v1750_v59 = vld [vmem:[%s2696_s0 + $0xc8] sm:$0xff]  }
  0x3b   :  { %1859 = vmatprep.mubr.msk.bf16.mxu1 %vm526_vm0, %v474_v6  ;;  %v435_v6 = vld [vmem:[%s2697_s1 + $0x128] sm:$0xff]  ;;  %v204_v12 = vmul.f32 %v1681_v62, %v2131_v7  ;;  %v272_v16 = vadd.f32 %v2136_v8, %v201_v0  ;;  %v273_v17 = vadd.f32 %v2136_v8, %v202_v1  ;;  %v1684_v20 = vunpack.c.l.bf16 %v1746_v13  ;;  %v1751_v0 = vld [vmem:[%s2696_s0 + $0xd0] sm:$0xff]   ;;  %v442_v1 = vld [vmem:[%s2697_s1 + $0x160] sm:$0xff] }
  0x3c   :  { %v480_v18 = vpack.c.bf16 %v435_v6, %v434_v5  ;;  %v379_v19 = vpack.c.bf16 %v333_v3, %v332_v2  ;;  %v1685_v21 = vunpack.c.h.bf16 %v1746_v13  ;;  %v1688_v22 = vunpack.c.l.bf16 %v1747_v14  ;;  %v443_v2 = vld [vmem:[%s2697_s1 + $0x168] sm:$0xff] }
  0x3d   :  { %v380_v23 = vpack.c.bf16 %v335_v10, %v334_v9  ;;  %v274_v24 = vadd.f32 %v2136_v8, %v203_v11  ;;  %v336_v27 = vmax.f32 %v272_v16, 0.0  ;;  %v337_v28 = vmax.f32 %v273_v17, 0.0 }
  0x3e   :  { %v205_v31 = vmul.f32 %v1684_v20, %v2131_v7  ;;  %v206_v32 = vmul.f32 %v1685_v21, %v2131_v7  ;;  %v207_v35 = vmul.f32 %v1688_v22, %v2131_v7  ;;  %v481_v42 = vpack.c.bf16 %v437_v30, %v436_v29  ;;  %v447_v29 = vld [vmem:[%s2697_s1 + $0x188] sm:$0xff]  ;;  %v1753_v30 = vld [vmem:[%s2696_s0 + $0xe0] sm:$0xff]  }
  0x3f   :  { %1928 = vmatmul.mubr.msk.bf16.gmra.mrb[24].mxu0 %vm924_vm1, %v375_v25  ;;  %v275_v25 = vadd.f32 %v2136_v8, %v204_v12  ;;  %v338_v37 = vmax.f32 %v274_v24, 0.0  ;;  %v381_v41 = vpack.c.bf16 %v337_v28, %v336_v27  ;;  %v1692_v44 = vunpack.c.l.bf16 %v1748_v36  ;;  %v444_v24 = vld [vmem:[%s2697_s1 + $0x170] sm:$0xff]  ;;  %v446_v28 = vld [vmem:[%s2697_s1 + $0x180] sm:$0xff] }
  0x40   :  { %1931 = vmatprep.mubr.msk.bf16.mxu0 %vm924_vm1, %v376_v33  ;;  %v438_v33 = vld [vmem:[%s2697_s1 + $0x140] sm:$0xff]  ;;  %v276_v45 = vadd.f32 %v2136_v8, %v205_v31  ;;  %v277_v46 = vadd.f32 %v2136_v8, %v206_v32  ;;  %v278_v47 = vadd.f32 %v2136_v8, %v207_v35  ;;  %v1693_v48 = vunpack.c.h.bf16 %v1748_v36 }
  0x41   :  { %v339_v38 = vmax.f32 %v275_v25, 0.0  ;;  %v209_v53 = vmul.f32 %v1692_v44, %v2131_v7  ;;  %v1700_v5 = vunpack.c.l.bf16 %v1750_v59  ;;  %v1701_v6 = vunpack.c.h.bf16 %v1750_v59  ;;  %v445_v25 = vld [vmem:[%s2697_s1 + $0x178] sm:$0xff] }
  0x42   :  { %1860 = vmatmul.mubr.msk.bf16.gmra.mrb[24].mxu1 %vm526_vm0, %v475_v26  ;;  %v1689_v26 = vunpack.c.h.bf16 %v1747_v14  ;;  %v340_v54 = vmax.f32 %v276_v45, 0.0  ;;  %v210_v58 = vmul.f32 %v1693_v48, %v2131_v7  ;;  %v342_v60 = vmax.f32 %v278_v47, 0.0  ;;  %v448_v47 = vld [vmem:[%s2697_s1 + $0x190] sm:$0xff]  ;;  %v449_v48 = vld [vmem:[%s2697_s1 + $0x198] sm:$0xff] }
  0x43   :  { %1863 = vmatprep.mubr.msk.bf16.mxu1 %vm526_vm0, %v476_v34  ;;  %v439_v34 = vld [vmem:[%s2697_s1 + $0x148] sm:$0xff]  ;;  %v382_v49 = vpack.c.bf16 %v339_v38, %v338_v37  ;;  %v280_v4 = vadd.f32 %v2136_v8, %v209_v53  ;;  %v1704_v11 = vunpack.c.l.bf16 %v1751_v0  ;;  %v1705_v12 = vunpack.c.h.bf16 %v1751_v0 }
  0x44   :  { %v208_v39 = vmul.f32 %v1689_v26, %v2131_v7  ;;  %v482_v43 = vpack.c.bf16 %v439_v34, %v438_v33  ;;  %v281_v10 = vadd.f32 %v2136_v8, %v210_v58  ;;  %v484_v14 = vpack.c.bf16 %v443_v2, %v442_v1 }
  0x45   :  { %v213_v17 = vmul.f32 %v1700_v5, %v2131_v7  ;;  %v215_v21 = vmul.f32 %v1704_v11, %v2131_v7  ;;  %v216_v22 = vmul.f32 %v1705_v12, %v2131_v7  ;;  %v485_v36 = vpack.c.bf16 %v445_v25, %v444_v24 }
  0x46   :  { %v279_v50 = vadd.f32 %v2136_v8, %v208_v39  ;;  %v345_v20 = vmax.f32 %v281_v10, 0.0  ;;  %v487_v58 = vpack.c.bf16 %v449_v48, %v448_v47  ;;  %v453_v10 = vld [vmem:[%s2697_s1 + $0x1b8] sm:$0xff]  ;;  %v460_v47 = vld [vmem:[%s2697_s1 + $0x1f0] sm:$0xff] }
  0x47   :  { %1932 = vmatmul.mubr.msk.bf16.gmra.mrb[28].mxu0 %vm924_vm1, %v377_v55  ;;  %v341_v55 = vmax.f32 %v277_v46, 0.0  ;;  %v284_v31 = vadd.f32 %v2136_v8, %v213_v17  ;;  %v286_v37 = vadd.f32 %v2136_v8, %v215_v21  ;;  %v287_v38 = vadd.f32 %v2136_v8, %v216_v22  ;;  %v1756_v17 = vld [vmem:[%s2696_s0 + $0xf8] sm:$0xff]  }
  0x48   :  { %1935 = vmatprep.mubr.msk.bf16.mxu0 %vm924_vm1, %v378_v56  ;;  %v440_v56 = vld [vmem:[%s2697_s1 + $0x150] sm:$0xff]  ;;  %v343_v61 = vmax.f32 %v279_v50, 0.0  ;;  %v1724_v24 = vunpack.c.l.bf16 %v1756_v17  ;;  %v1725_v25 = vunpack.c.h.bf16 %v1756_v17 }
  0x49   :  { %v483_v3 = vpack.c.bf16 %v441_v57, %v440_v56  ;;  %v383_v9 = vpack.c.bf16 %v341_v55, %v340_v54  ;;  %v351_v50 = vmax.f32 %v287_v38, 0.0  ;;  %v1754_v55 = vld [vmem:[%s2696_s0 + $0xe8] sm:$0xff]   ;;  %v1755_v56 = vld [vmem:[%s2696_s0 + $0xf0] sm:$0xff]   ;;  %v458_v38 = vld [vmem:[%s2697_s1 + $0x1e0] sm:$0xff] }
  0x4a   :  { %1864 = vmatmul.mubr.msk.bf16.gmra.mrb[28].mxu1 %vm526_vm0, %v477_v51  ;;  %v1696_v51 = vunpack.c.l.bf16 %v1749_v40  ;;  %v384_v13 = vpack.c.bf16 %v343_v61, %v342_v60  ;;  %v1717_v0 = vunpack.c.h.bf16 %v1754_v55 }
  0x4b   :  { %1867 = vmatprep.mubr.msk.bf16.mxu1 %vm526_vm0, %v478_v52  ;;  %v1697_v52 = vunpack.c.h.bf16 %v1749_v40  ;;  %v486_v40 = vpack.c.bf16 %v447_v29, %v446_v28 }
  0x4c   :  { %v211_v62 = vmul.f32 %v1696_v51, %v2131_v7  ;;  %v450_v51 = vld [vmem:[%s2697_s1 + $0x1a0] sm:$0xff]  ;;  %v222_v12 = vmul.f32 %v1717_v0, %v2131_v7 }
  0x4d   :  { %v212_v63 = vmul.f32 %v1697_v52, %v2131_v7  ;;  %v451_v52 = vld [vmem:[%s2697_s1 + $0x1a8] sm:$0xff] }
  0x4f   :  { %1936 = vmatmul.mubr.msk.bf16.gmra.mrb[32].mxu0 %vm924_vm1, %v379_v19  ;;  %v283_v16 = vadd.f32 %v2136_v8, %v212_v63  ;;  %v344_v19 = vmax.f32 %v280_v4, 0.0  ;;  %v1716_v63 = vunpack.c.l.bf16 %v1754_v55  ;;  %v1721_v4 = vunpack.c.h.bf16 %v1755_v56 }
  0x50   :  { %1939 = vmatprep.mubr.msk.bf16.mxu0 %vm924_vm1, %v380_v23  ;;  %v1752_v23 = vld [vmem:[%s2696_s0 + $0xd8] sm:$0xff]  }
  0x51   :  { %v347_v27 = vmax.f32 %v283_v16, 0.0  ;;  %v1708_v33 = vunpack.c.l.bf16 %v1752_v23  ;;  %v1709_v34 = vunpack.c.h.bf16 %v1752_v23  ;;  %v385_v35 = vpack.c.bf16 %v345_v20, %v344_v19  ;;  %v455_v19 = vld [vmem:[%s2697_s1 + $0x1c8] sm:$0xff] }
  0x52   :  { %1868 = vmatmul.mubr.msk.bf16.gmra.mrb[32].mxu1 %vm526_vm0, %v479_v15  ;;  %v282_v15 = vadd.f32 %v2136_v8, %v211_v62  ;;  %v488_v62 = vpack.c.bf16 %v451_v52, %v450_v51  ;;  %v221_v11 = vmul.f32 %v1716_v63, %v2131_v7  ;;  %v224_v16 = vmul.f32 %v1721_v4, %v2131_v7  ;;  %v2618_v52 = vld [vmem:[%s2702_s6] ss:$0 sm:$0xff] }
  0x53   :  { %1871 = vmatprep.mubr.msk.bf16.mxu1 %vm526_vm0, %v480_v18  ;;  %v214_v18 = vmul.f32 %v1701_v6, %v2131_v7  ;;  %v217_v45 = vmul.f32 %v1708_v33, %v2131_v7  ;;  %v218_v46 = vmul.f32 %v1709_v34, %v2131_v7  ;;  %v293_v23 = vadd.f32 %v2136_v8, %v222_v12  ;;  %v456_v34 = vld [vmem:[%s2697_s1 + $0x1d0] sm:$0xff] }
  0x54   :  { %v346_v26 = vmax.f32 %v282_v15, 0.0  ;;  %v292_v22 = vadd.f32 %v2136_v8, %v221_v11  ;;  %v295_v29 = vadd.f32 %v2136_v8, %v224_v16  ;;  %v226_v33 = vmul.f32 %v1725_v25, %v2131_v7 }
  0x55   :  { %v285_v32 = vadd.f32 %v2136_v8, %v214_v18  ;;  %v288_v59 = vadd.f32 %v2136_v8, %v217_v45  ;;  %v289_v60 = vadd.f32 %v2136_v8, %v218_v46  ;;  %v454_v18 = vld [vmem:[%s2697_s1 + $0x1c0] sm:$0xff] }
  0x56   :  { %v386_v39 = vpack.c.bf16 %v347_v27, %v346_v26  ;;  %v490_v27 = vpack.c.bf16 %v455_v19, %v454_v18 }
  0x57   :  { %1940 = vmatmul.mubr.msk.bf16.gmra.mrb[36].mxu0 %vm924_vm1, %v381_v41  ;;  %v1712_v41 = vunpack.c.l.bf16 %v1753_v30  ;;  %v349_v44 = vmax.f32 %v285_v32, 0.0  ;;  %v352_v5 = vmax.f32 %v288_v59, 0.0  ;;  %v353_v6 = vmax.f32 %v289_v60, 0.0 }
  0x58   :  { %1943 = vmatprep.mubr.msk.bf16.mxu0 %vm924_vm1, %v382_v49  ;;  %v350_v49 = vmax.f32 %v286_v37, 0.0  ;;  %v225_v32 = vmul.f32 %v1724_v24, %v2131_v7  ;;  %v359_v37 = vmax.f32 %v295_v29, 0.0 }
  0x59   :  { %v219_v53 = vmul.f32 %v1712_v41, %v2131_v7  ;;  %v389_v20 = vpack.c.bf16 %v353_v6, %v352_v5 }
  0x5a   :  { %1872 = vmatmul.mubr.msk.bf16.gmra.mrb[36].mxu1 %vm526_vm0, %v481_v42  ;;  %v1713_v42 = vunpack.c.h.bf16 %v1753_v30  ;;  %v388_v61 = vpack.c.bf16 %v351_v50, %v350_v49  ;;  %v356_v30 = vmax.f32 %v292_v22, 0.0  ;;  %v296_v41 = vadd.f32 %v2136_v8, %v225_v32 }
  0x5b   :  { %1875 = vmatprep.mubr.msk.bf16.mxu1 %vm526_vm0, %v482_v43  ;;  %v348_v43 = vmax.f32 %v284_v31, 0.0  ;;  %v290_v1 = vadd.f32 %v2136_v8, %v219_v53  ;;  %v357_v31 = vmax.f32 %v293_v23, 0.0 }
  0x5c   :  { %v220_v54 = vmul.f32 %v1713_v42, %v2131_v7  ;;  %v297_v42 = vadd.f32 %v2136_v8, %v226_v33  ;;  %v360_v45 = vmax.f32 %v296_v41, 0.0 }
  0x5d   :  { %v387_v57 = vpack.c.bf16 %v349_v44, %v348_v43 }
  0x5e   :  { %v291_v2 = vadd.f32 %v2136_v8, %v220_v54  ;;  %v361_v46 = vmax.f32 %v297_v42, 0.0 }
  0x5f   :  { %1944 = vmatmul.mubr.msk.bf16.gmra.mrb[40].mxu0 %vm924_vm1, %v383_v9  ;;  %v452_v9 = vld [vmem:[%s2697_s1 + $0x1b0] sm:$0xff] }
  0x60   :  { %1947 = vmatprep.mubr.msk.bf16.mxu0 %vm924_vm1, %v384_v13  ;;  %v354_v13 = vmax.f32 %v290_v1, 0.0  ;;  %v489_v21 = vpack.c.bf16 %v453_v10, %v452_v9  ;;  %v393_v48 = vpack.c.bf16 %v361_v46, %v360_v45 }
  0x62   :  { %1876 = vmatmul.mubr.msk.bf16.gmra.mrb[40].mxu1 %vm526_vm0, %v483_v3  ;;  %v1720_v3 = vunpack.c.l.bf16 %v1755_v56 }
  0x63   :  { %1879 = vmatprep.mubr.msk.bf16.mxu1 %vm526_vm0, %v484_v14  ;;  %v355_v14 = vmax.f32 %v291_v2, 0.0 }
  0x64   :  { %v223_v15 = vmul.f32 %v1720_v3, %v2131_v7  ;;  %v459_v7 = vld [vmem:[%s2697_s1 + $0x1e8] sm:$0xff] }
  0x65   :  { %v390_v26 = vpack.c.bf16 %v355_v14, %v354_v13  ;;  %v492_v44 = vpack.c.bf16 %v459_v7, %v458_v38 }
  0x66   :  { %v294_v28 = vadd.f32 %v2136_v8, %v223_v15  ;;  %v461_v8 = vld [vmem:[%s2697_s1 + $0x1f8] sm:$0xff] }
  0x67   :  { %1948 = vmatmul.mubr.msk.bf16.gmra.mrb[44].mxu0 %vm924_vm1, %v385_v35  ;;  %v457_v35 = vld [vmem:[%s2697_s1 + $0x1d8] sm:$0xff]  ;;  %v493_v49 = vpack.c.bf16 %v461_v8, %v460_v47  ;;  %s2064_s1 = smov [#allocation2]  }
  0x68   :  { %1951 = vmatprep.mubr.msk.bf16.mxu0 %vm924_vm1, %v386_v39  ;;  %v391_v39 = vpack.c.bf16 %v357_v31, %v356_v30  ;;  %s1514_s6 = sshll.u32 %s2064_s1, 4  ;;  %s1515_s6 = int_to_ptr.vmem [resolvable:$true] %s1514_s6 }
  0x69   :  { %s2040_s5 = scalar_lea.vmem %s1515_s6, 8192  ;;  %p2045_p1 = scmp.lt.s32.totalorder %s1515_s6, %s1515_s6 }
  0x6a   :  { %1880 = vmatmul.mubr.msk.bf16.gmra.mrb[44].mxu1 %vm526_vm0, %v485_v36  ;;  %v358_v36 = vmax.f32 %v294_v28, 0.0  ;;  %p2041_p0 = scmp.ne.s32.totalorder %s1515_s6, %s2040_s5  ;;  %p2046_p2 = scmp.lt.s32.totalorder %s2040_s5, %s2040_s5 }
  0x6b   :  { %1883 = vmatprep.mubr.msk.bf16.mxu1 %vm526_vm0, %v486_v40  ;;  %v491_v40 = vpack.c.bf16 %v457_v35, %v456_v34 }
  0x6c   :  { %v392_v43 = vpack.c.bf16 %v359_v37, %v358_v36  ;;  %p2047_p3 = por %p2046_p2, %p2045_p1 }
  0x6e   :  { %p2048_p4 = pnand %p2047_p3, %p2041_p0 }
  0x6f   :  { %1952 = vmatmul.mubr.msk.bf16.gmra.mrb[48].mxu0 %vm924_vm1, %v387_v57 }
  0x70   :  { %1955 = vmatprep.mubr.msk.bf16.mxu0 %vm924_vm1, %v388_v61 }
  0x72   :  { %1884 = vmatmul.mubr.msk.bf16.gmra.mrb[48].mxu1 %vm526_vm0, %v487_v58 }
  0x73   :  { %1887 = vmatprep.mubr.msk.bf16.mxu1 %vm526_vm0, %v488_v62 }
  0x77   :  { %1956 = vmatmul.mubr.msk.bf16.gmra.mrb[52].mxu0 %vm924_vm1, %v389_v20 }
  0x78   :  { %1959 = vmatprep.mubr.msk.bf16.mxu0 %vm924_vm1, %v390_v26 }
  0x7a   :  { %1888 = vmatmul.mubr.msk.bf16.gmra.mrb[52].mxu1 %vm526_vm0, %v489_v21 }
  0x7b   :  { %1891 = vmatprep.mubr.msk.bf16.mxu1 %vm526_vm0, %v490_v27 }
  0x7f   :  { %1960 = vmatmul.mubr.msk.bf16.gmra.mrb[56].mxu0 %vm924_vm1, %v391_v39 }
  0x80   :  { %1963 = vmatprep.mubr.msk.bf16.mxu0 %vm924_vm1, %v392_v43 }
  0x82   :  { %1892 = vmatmul.mubr.msk.bf16.gmra.mrb[56].mxu1 %vm526_vm0, %v491_v40 }
  0x83   :  { %1895 = vmatprep.mubr.msk.bf16.mxu1 %vm526_vm0, %v492_v44 }
  0x87   :  { %1964 = vmatmul.mubr.msk.bf16.gmra.mrb[60].mxu0 %vm924_vm1, %v393_v48 }
  0x8a   :  { %1896 = vmatmul.mubr.msk.bf16.gmra.mrb[60].mxu1 %vm526_vm0, %v493_v49 }
  0xe2   :  { %v1905_v50 = vpop.f32.mrb[0].mxu0 }
  0xe3   :  { %v1055_v53 = vpop.f32.mrb[1].mxu0 }
  0xe4   :  { %v1906_v56 = vpop.f32.mrb[2].mxu0 }
  0xe5   :  { %v1837_v51 = vpop.f32.mrb[0].mxu1  ;;  %v1058_v60 = vpop.f32.mrb[3].mxu0 }
  0xe6   :  { %v1064_v54 = vadd.f32 %v1905_v50, %v1837_v51  ;;  %v657_v55 = vpop.f32.mrb[1].mxu1 }
  0xe7   :  { %v1056_v57 = vadd.f32 %v1055_v53, %v657_v55  ;;  %v1838_v58 = vpop.f32.mrb[2].mxu1 }
  0xe8   :  { %v1319_v59 = vadd.f32 %v2618_v52, %v1064_v54  ;;  %v1067_v61 = vadd.f32 %v1906_v56, %v1838_v58  ;;  %v660_v62 = vpop.f32.mrb[3].mxu1 }
  0xe9   :  { %v1317_v63 = vadd.f32 %v2618_v52, %v1056_v57  ;;  %v1059_v0 = vadd.f32 %v1058_v60, %v660_v62 }
  0xea   :  { %v1383_v1 = vmax.f32 %v1319_v59, 0.0  ;;  %v1320_v2 = vadd.f32 %v2618_v52, %v1067_v61  ;;  %v1909_v9 = vpop.f32.mrb[4].mxu0 }
  0xeb   :  { %v1381_v3 = vmax.f32 %v1317_v63, 0.0  ;;  %v1318_v4 = vadd.f32 %v2618_v52, %v1059_v0  ;;  %v1071_v11 = vpop.f32.mrb[5].mxu0 }
  0xec   :  { %1447 = vst [vmem:[#allocation2 + $0x10] sm:$0xff] %v1383_v1  ;;  %v1384_v5 = vmax.f32 %v1320_v2, 0.0  ;;  %v1910_v14 = vpop.f32.mrb[6].mxu0 }
  0xed   :  { %1445 = vst [vmem:[#allocation2] sm:$0xff] %v1381_v3  ;;  %v1382_v6 = vmax.f32 %v1318_v4, 0.0  ;;  %v1841_v10 = vpop.f32.mrb[4].mxu1  ;;  %v1074_v18 = vpop.f32.mrb[7].mxu0 }
  0xee   :  { %1448 = vst [vmem:[#allocation2 + $0x18] sm:$0xff] %v1384_v5  ;;  %v1080_v12 = vadd.f32 %v1909_v9, %v1841_v10  ;;  %v673_v13 = vpop.f32.mrb[5].mxu1 }
  0xef   :  { %1446 = vst [vmem:[#allocation2 + $0x8] sm:$0xff] %v1382_v6  ;;  %v1072_v15 = vadd.f32 %v1071_v11, %v673_v13  ;;  %v1842_v16 = vpop.f32.mrb[6].mxu1 }
  0xf0   :  { %v1323_v17 = vadd.f32 %v2618_v52, %v1080_v12  ;;  %v1083_v19 = vadd.f32 %v1910_v14, %v1842_v16  ;;  %v676_v20 = vpop.f32.mrb[7].mxu1 }
  0xf1   :  { %v1321_v21 = vadd.f32 %v2618_v52, %v1072_v15  ;;  %v1075_v22 = vadd.f32 %v1074_v18, %v676_v20 }
  0xf2   :  { %v1387_v23 = vmax.f32 %v1323_v17, 0.0  ;;  %v1324_v24 = vadd.f32 %v2618_v52, %v1083_v19  ;;  %v1913_v29 = vpop.f32.mrb[8].mxu0 }
  0xf3   :  { %v1385_v25 = vmax.f32 %v1321_v21, 0.0  ;;  %v1322_v26 = vadd.f32 %v2618_v52, %v1075_v22  ;;  %v1087_v31 = vpop.f32.mrb[9].mxu0 }
  0xf4   :  { %1451 = vst [vmem:[#allocation2 + $0x30] sm:$0xff] %v1387_v23  ;;  %v1388_v27 = vmax.f32 %v1324_v24, 0.0  ;;  %v1914_v34 = vpop.f32.mrb[10].mxu0 }
  0xf5   :  { %1449 = vst [vmem:[#allocation2 + $0x20] sm:$0xff] %v1385_v25  ;;  %v1386_v28 = vmax.f32 %v1322_v26, 0.0  ;;  %v1845_v30 = vpop.f32.mrb[8].mxu1  ;;  %v1090_v38 = vpop.f32.mrb[11].mxu0 }
  0xf6   :  { %1452 = vst [vmem:[#allocation2 + $0x38] sm:$0xff] %v1388_v27  ;;  %v1096_v32 = vadd.f32 %v1913_v29, %v1845_v30  ;;  %v689_v33 = vpop.f32.mrb[9].mxu1 }
  0xf7   :  { %1450 = vst [vmem:[#allocation2 + $0x28] sm:$0xff] %v1386_v28  ;;  %v1088_v35 = vadd.f32 %v1087_v31, %v689_v33  ;;  %v1846_v36 = vpop.f32.mrb[10].mxu1 }
  0xf8   :  { %v1327_v37 = vadd.f32 %v2618_v52, %v1096_v32  ;;  %v1099_v7 = vadd.f32 %v1914_v34, %v1846_v36  ;;  %v692_v39 = vpop.f32.mrb[11].mxu1 }
  0xf9   :  { %v1325_v40 = vadd.f32 %v2618_v52, %v1088_v35  ;;  %v1091_v41 = vadd.f32 %v1090_v38, %v692_v39 }
  0xfa   :  { %v1391_v42 = vmax.f32 %v1327_v37, 0.0  ;;  %v1328_v43 = vadd.f32 %v2618_v52, %v1099_v7  ;;  %v1917_v8 = vpop.f32.mrb[12].mxu0 }
  0xfb   :  { %v1389_v44 = vmax.f32 %v1325_v40, 0.0  ;;  %v1326_v45 = vadd.f32 %v2618_v52, %v1091_v41  ;;  %v1103_v49 = vpop.f32.mrb[13].mxu0 }
  0xfc   :  { %1455 = vst [vmem:[#allocation2 + $0x50] sm:$0xff] %v1391_v42  ;;  %v1392_v46 = vmax.f32 %v1328_v43, 0.0  ;;  %v1918_v53 = vpop.f32.mrb[14].mxu0 }
  0xfd   :  { %1453 = vst [vmem:[#allocation2 + $0x40] sm:$0xff] %v1389_v44  ;;  %v1390_v47 = vmax.f32 %v1326_v45, 0.0  ;;  %v1849_v48 = vpop.f32.mrb[12].mxu1  ;;  %v1106_v57 = vpop.f32.mrb[15].mxu0 }
  0xfe   :  { %1456 = vst [vmem:[#allocation2 + $0x58] sm:$0xff] %v1392_v46  ;;  %v1112_v50 = vadd.f32 %v1917_v8, %v1849_v48  ;;  %v705_v51 = vpop.f32.mrb[13].mxu1 }
  0xff   :  { %1454 = vst [vmem:[#allocation2 + $0x48] sm:$0xff] %v1390_v47  ;;  %v1104_v54 = vadd.f32 %v1103_v49, %v705_v51  ;;  %v1850_v55 = vpop.f32.mrb[14].mxu1 }
 0x100   :  { %v1331_v56 = vadd.f32 %v2618_v52, %v1112_v50  ;;  %v1115_v58 = vadd.f32 %v1918_v53, %v1850_v55  ;;  %v708_v59 = vpop.f32.mrb[15].mxu1 }
 0x101   :  { %v1329_v60 = vadd.f32 %v2618_v52, %v1104_v54  ;;  %v1107_v61 = vadd.f32 %v1106_v57, %v708_v59 }
 0x102   :  { %v1395_v62 = vmax.f32 %v1331_v56, 0.0  ;;  %v1332_v63 = vadd.f32 %v2618_v52, %v1115_v58  ;;  %v1921_v4 = vpop.f32.mrb[16].mxu0 }
 0x103   :  { %v1393_v0 = vmax.f32 %v1329_v60, 0.0  ;;  %v1330_v1 = vadd.f32 %v2618_v52, %v1107_v61  ;;  %v1119_v6 = vpop.f32.mrb[17].mxu0 }
 0x104   :  { %1459 = vst [vmem:[#allocation2 + $0x70] sm:$0xff] %v1395_v62  ;;  %v1396_v2 = vmax.f32 %v1332_v63, 0.0  ;;  %v1922_v11 = vpop.f32.mrb[18].mxu0 }
 0x105   :  { %1457 = vst [vmem:[#allocation2 + $0x60] sm:$0xff] %v1393_v0  ;;  %v1394_v3 = vmax.f32 %v1330_v1, 0.0  ;;  %v1853_v5 = vpop.f32.mrb[16].mxu1  ;;  %v1122_v15 = vpop.f32.mrb[19].mxu0 }
 0x106   :  { %1460 = vst [vmem:[#allocation2 + $0x78] sm:$0xff] %v1396_v2  ;;  %v1128_v9 = vadd.f32 %v1921_v4, %v1853_v5  ;;  %v721_v10 = vpop.f32.mrb[17].mxu1 }
 0x107   :  { %1458 = vst [vmem:[#allocation2 + $0x68] sm:$0xff] %v1394_v3  ;;  %v1120_v12 = vadd.f32 %v1119_v6, %v721_v10  ;;  %v1854_v13 = vpop.f32.mrb[18].mxu1 }
 0x108   :  { %v1335_v14 = vadd.f32 %v2618_v52, %v1128_v9  ;;  %v1131_v16 = vadd.f32 %v1922_v11, %v1854_v13  ;;  %v724_v17 = vpop.f32.mrb[19].mxu1 }
 0x109   :  { %v1333_v18 = vadd.f32 %v2618_v52, %v1120_v12  ;;  %v1123_v19 = vadd.f32 %v1122_v15, %v724_v17 }
 0x10a   :  { %v1399_v20 = vmax.f32 %v1335_v14, 0.0  ;;  %v1336_v21 = vadd.f32 %v2618_v52, %v1131_v16  ;;  %v1925_v26 = vpop.f32.mrb[20].mxu0 }
 0x10b   :  { %v1397_v22 = vmax.f32 %v1333_v18, 0.0  ;;  %v1334_v23 = vadd.f32 %v2618_v52, %v1123_v19  ;;  %v1135_v28 = vpop.f32.mrb[21].mxu0 }
 0x10c   :  { %1463 = vst [vmem:[#allocation2 + $0x90] sm:$0xff] %v1399_v20  ;;  %v1400_v24 = vmax.f32 %v1336_v21, 0.0  ;;  %v1926_v31 = vpop.f32.mrb[22].mxu0 }
 0x10d   :  { %1461 = vst [vmem:[#allocation2 + $0x80] sm:$0xff] %v1397_v22  ;;  %v1398_v25 = vmax.f32 %v1334_v23, 0.0  ;;  %v1857_v27 = vpop.f32.mrb[20].mxu1  ;;  %v1138_v35 = vpop.f32.mrb[23].mxu0 }
 0x10e   :  { %1464 = vst [vmem:[#allocation2 + $0x98] sm:$0xff] %v1400_v24  ;;  %v1144_v29 = vadd.f32 %v1925_v26, %v1857_v27  ;;  %v737_v30 = vpop.f32.mrb[21].mxu1 }
 0x10f   :  { %1462 = vst [vmem:[#allocation2 + $0x88] sm:$0xff] %v1398_v25  ;;  %v1136_v32 = vadd.f32 %v1135_v28, %v737_v30  ;;  %v1858_v33 = vpop.f32.mrb[22].mxu1 }
 0x110   :  { %v1339_v34 = vadd.f32 %v2618_v52, %v1144_v29  ;;  %v1147_v36 = vadd.f32 %v1926_v31, %v1858_v33  ;;  %v740_v37 = vpop.f32.mrb[23].mxu1 }
 0x111   :  { %v1337_v38 = vadd.f32 %v2618_v52, %v1136_v32  ;;  %v1139_v7 = vadd.f32 %v1138_v35, %v740_v37 }
 0x112   :  { %v1403_v39 = vmax.f32 %v1339_v34, 0.0  ;;  %v1340_v40 = vadd.f32 %v2618_v52, %v1147_v36  ;;  %v1929_v45 = vpop.f32.mrb[24].mxu0 }
 0x113   :  { %v1401_v41 = vmax.f32 %v1337_v38, 0.0  ;;  %v1338_v42 = vadd.f32 %v2618_v52, %v1139_v7  ;;  %v1151_v47 = vpop.f32.mrb[25].mxu0 }
 0x114   :  { %1467 = vst [vmem:[#allocation2 + $0xb0] sm:$0xff] %v1403_v39  ;;  %v1404_v43 = vmax.f32 %v1340_v40, 0.0  ;;  %v1930_v49 = vpop.f32.mrb[26].mxu0 }
 0x115   :  { %1465 = vst [vmem:[#allocation2 + $0xa0] sm:$0xff] %v1401_v41  ;;  %v1402_v44 = vmax.f32 %v1338_v42, 0.0  ;;  %v1861_v46 = vpop.f32.mrb[24].mxu1  ;;  %v1154_v54 = vpop.f32.mrb[27].mxu0 }
 0x116   :  { %1468 = vst [vmem:[#allocation2 + $0xb8] sm:$0xff] %v1404_v43  ;;  %v1160_v8 = vadd.f32 %v1929_v45, %v1861_v46  ;;  %v753_v48 = vpop.f32.mrb[25].mxu1 }
 0x117   :  { %1466 = vst [vmem:[#allocation2 + $0xa8] sm:$0xff] %v1402_v44  ;;  %v1152_v50 = vadd.f32 %v1151_v47, %v753_v48  ;;  %v1862_v51 = vpop.f32.mrb[26].mxu1 }
 0x118   :  { %v1343_v53 = vadd.f32 %v2618_v52, %v1160_v8  ;;  %v1163_v55 = vadd.f32 %v1930_v49, %v1862_v51  ;;  %v756_v56 = vpop.f32.mrb[27].mxu1 }
 0x119   :  { %v1341_v57 = vadd.f32 %v2618_v52, %v1152_v50  ;;  %v1155_v58 = vadd.f32 %v1154_v54, %v756_v56 }
 0x11a   :  { %v1407_v59 = vmax.f32 %v1343_v53, 0.0  ;;  %v1344_v60 = vadd.f32 %v2618_v52, %v1163_v55  ;;  %v1933_v1 = vpop.f32.mrb[28].mxu0 }
 0x11b   :  { %v1405_v61 = vmax.f32 %v1341_v57, 0.0  ;;  %v1342_v62 = vadd.f32 %v2618_v52, %v1155_v58  ;;  %v1167_v3 = vpop.f32.mrb[29].mxu0 }
 0x11c   :  { %1471 = vst [vmem:[#allocation2 + $0xd0] sm:$0xff] %v1407_v59  ;;  %v1408_v63 = vmax.f32 %v1344_v60, 0.0  ;;  %v1934_v6 = vpop.f32.mrb[30].mxu0 }
 0x11d   :  { %1469 = vst [vmem:[#allocation2 + $0xc0] sm:$0xff] %v1405_v61  ;;  %v1406_v0 = vmax.f32 %v1342_v62, 0.0  ;;  %v1865_v2 = vpop.f32.mrb[28].mxu1  ;;  %v1170_v12 = vpop.f32.mrb[31].mxu0 }
 0x11e   :  { %1472 = vst [vmem:[#allocation2 + $0xd8] sm:$0xff] %v1408_v63  ;;  %v1176_v4 = vadd.f32 %v1933_v1, %v1865_v2  ;;  %v769_v5 = vpop.f32.mrb[29].mxu1 }
 0x11f   :  { %1470 = vst [vmem:[#allocation2 + $0xc8] sm:$0xff] %v1406_v0  ;;  %v1168_v9 = vadd.f32 %v1167_v3, %v769_v5  ;;  %v1866_v10 = vpop.f32.mrb[30].mxu1 }
 0x120   :  { %v1347_v11 = vadd.f32 %v2618_v52, %v1176_v4  ;;  %v1179_v13 = vadd.f32 %v1934_v6, %v1866_v10  ;;  %v772_v14 = vpop.f32.mrb[31].mxu1 }
 0x121   :  { %v1345_v15 = vadd.f32 %v2618_v52, %v1168_v9  ;;  %v1171_v16 = vadd.f32 %v1170_v12, %v772_v14 }
 0x122   :  { %v1411_v17 = vmax.f32 %v1347_v11, 0.0  ;;  %v1348_v18 = vadd.f32 %v2618_v52, %v1179_v13  ;;  %v1937_v23 = vpop.f32.mrb[32].mxu0 }
 0x123   :  { %v1409_v19 = vmax.f32 %v1345_v15, 0.0  ;;  %v1346_v20 = vadd.f32 %v2618_v52, %v1171_v16  ;;  %v1183_v25 = vpop.f32.mrb[33].mxu0 }
 0x124   :  { %1475 = vst [vmem:[#allocation2 + $0xf0] sm:$0xff] %v1411_v17  ;;  %v1412_v21 = vmax.f32 %v1348_v18, 0.0  ;;  %v1938_v28 = vpop.f32.mrb[34].mxu0 }
 0x125   :  { %1473 = vst [vmem:[#allocation2 + $0xe0] sm:$0xff] %v1409_v19  ;;  %v1410_v22 = vmax.f32 %v1346_v20, 0.0  ;;  %v1869_v24 = vpop.f32.mrb[32].mxu1  ;;  %v1186_v32 = vpop.f32.mrb[35].mxu0 }
 0x126   :  { %1476 = vst [vmem:[#allocation2 + $0xf8] sm:$0xff] %v1412_v21  ;;  %v1192_v26 = vadd.f32 %v1937_v23, %v1869_v24  ;;  %v785_v27 = vpop.f32.mrb[33].mxu1 }
 0x127   :  { %1474 = vst [vmem:[#allocation2 + $0xe8] sm:$0xff] %v1410_v22  ;;  %v1184_v29 = vadd.f32 %v1183_v25, %v785_v27  ;;  %v1870_v30 = vpop.f32.mrb[34].mxu1 }
 0x128   :  { %v1351_v31 = vadd.f32 %v2618_v52, %v1192_v26  ;;  %v1195_v33 = vadd.f32 %v1938_v28, %v1870_v30  ;;  %v788_v34 = vpop.f32.mrb[35].mxu1 }
 0x129   :  { %v1349_v35 = vadd.f32 %v2618_v52, %v1184_v29  ;;  %v1187_v36 = vadd.f32 %v1186_v32, %v788_v34 }
 0x12a   :  { %v1415_v37 = vmax.f32 %v1351_v31, 0.0  ;;  %v1352_v38 = vadd.f32 %v2618_v52, %v1195_v33  ;;  %v1941_v42 = vpop.f32.mrb[36].mxu0 }
 0x12b   :  { %v1413_v7 = vmax.f32 %v1349_v35, 0.0  ;;  %v1350_v39 = vadd.f32 %v2618_v52, %v1187_v36  ;;  %v1199_v44 = vpop.f32.mrb[37].mxu0 }
 0x12c   :  { %1479 = vst [vmem:[#allocation2 + $0x110] sm:$0xff] %v1415_v37  ;;  %v1416_v40 = vmax.f32 %v1352_v38, 0.0  ;;  %v1942_v47 = vpop.f32.mrb[38].mxu0 }
 0x12d   :  { %1477 = vst [vmem:[#allocation2 + $0x100] sm:$0xff] %v1413_v7  ;;  %v1414_v41 = vmax.f32 %v1350_v39, 0.0  ;;  %v1873_v43 = vpop.f32.mrb[36].mxu1  ;;  %v1202_v50 = vpop.f32.mrb[39].mxu0 }
 0x12e   :  { %1480 = vst [vmem:[#allocation2 + $0x118] sm:$0xff] %v1416_v40  ;;  %v1208_v45 = vadd.f32 %v1941_v42, %v1873_v43  ;;  %v801_v46 = vpop.f32.mrb[37].mxu1 }
 0x12f   :  { %1478 = vst [vmem:[#allocation2 + $0x108] sm:$0xff] %v1414_v41  ;;  %v1200_v8 = vadd.f32 %v1199_v44, %v801_v46  ;;  %v1874_v48 = vpop.f32.mrb[38].mxu1 }
 0x130   :  { %v1355_v49 = vadd.f32 %v2618_v52, %v1208_v45  ;;  %v1211_v51 = vadd.f32 %v1942_v47, %v1874_v48  ;;  %v804_v53 = vpop.f32.mrb[39].mxu1 }
 0x131   :  { %v1353_v54 = vadd.f32 %v2618_v52, %v1200_v8  ;;  %v1203_v55 = vadd.f32 %v1202_v50, %v804_v53 }
 0x132   :  { %v1419_v56 = vmax.f32 %v1355_v49, 0.0  ;;  %v1356_v57 = vadd.f32 %v2618_v52, %v1211_v51  ;;  %v1945_v62 = vpop.f32.mrb[40].mxu0 }
 0x133   :  { %v1417_v58 = vmax.f32 %v1353_v54, 0.0  ;;  %v1354_v59 = vadd.f32 %v2618_v52, %v1203_v55  ;;  %v1215_v0 = vpop.f32.mrb[41].mxu0 }
 0x134   :  { %1483 = vst [vmem:[#allocation2 + $0x130] sm:$0xff] %v1419_v56  ;;  %v1420_v60 = vmax.f32 %v1356_v57, 0.0  ;;  %v1946_v3 = vpop.f32.mrb[42].mxu0 }
 0x135   :  { %1481 = vst [vmem:[#allocation2 + $0x120] sm:$0xff] %v1417_v58  ;;  %v1418_v61 = vmax.f32 %v1354_v59, 0.0  ;;  %v1877_v63 = vpop.f32.mrb[40].mxu1  ;;  %v1218_v9 = vpop.f32.mrb[43].mxu0 }
 0x136   :  { %1484 = vst [vmem:[#allocation2 + $0x138] sm:$0xff] %v1420_v60  ;;  %v1224_v1 = vadd.f32 %v1945_v62, %v1877_v63  ;;  %v817_v2 = vpop.f32.mrb[41].mxu1 }
 0x137   :  { %1482 = vst [vmem:[#allocation2 + $0x128] sm:$0xff] %v1418_v61  ;;  %v1216_v4 = vadd.f32 %v1215_v0, %v817_v2  ;;  %v1878_v5 = vpop.f32.mrb[42].mxu1 }
 0x138   :  { %v1359_v6 = vadd.f32 %v2618_v52, %v1224_v1  ;;  %v1227_v10 = vadd.f32 %v1946_v3, %v1878_v5  ;;  %v820_v11 = vpop.f32.mrb[43].mxu1 }
 0x139   :  { %v1357_v12 = vadd.f32 %v2618_v52, %v1216_v4  ;;  %v1219_v13 = vadd.f32 %v1218_v9, %v820_v11 }
 0x13a   :  { %v1423_v14 = vmax.f32 %v1359_v6, 0.0  ;;  %v1360_v15 = vadd.f32 %v2618_v52, %v1227_v10  ;;  %v1949_v20 = vpop.f32.mrb[44].mxu0 }
 0x13b   :  { %v1421_v16 = vmax.f32 %v1357_v12, 0.0  ;;  %v1358_v17 = vadd.f32 %v2618_v52, %v1219_v13  ;;  %v1231_v22 = vpop.f32.mrb[45].mxu0 }
 0x13c   :  { %1487 = vst [vmem:[#allocation2 + $0x150] sm:$0xff] %v1423_v14  ;;  %v1424_v18 = vmax.f32 %v1360_v15, 0.0  ;;  %v1950_v25 = vpop.f32.mrb[46].mxu0 }
 0x13d   :  { %1485 = vst [vmem:[#allocation2 + $0x140] sm:$0xff] %v1421_v16  ;;  %v1422_v19 = vmax.f32 %v1358_v17, 0.0  ;;  %v1881_v21 = vpop.f32.mrb[44].mxu1  ;;  %v1234_v29 = vpop.f32.mrb[47].mxu0 }
 0x13e   :  { %1488 = vst [vmem:[#allocation2 + $0x158] sm:$0xff] %v1424_v18  ;;  %v1240_v23 = vadd.f32 %v1949_v20, %v1881_v21  ;;  %v833_v24 = vpop.f32.mrb[45].mxu1 }
 0x13f   :  { %1486 = vst [vmem:[#allocation2 + $0x148] sm:$0xff] %v1422_v19  ;;  %v1232_v26 = vadd.f32 %v1231_v22, %v833_v24  ;;  %v1882_v27 = vpop.f32.mrb[46].mxu1 }
 0x140   :  { %v1363_v28 = vadd.f32 %v2618_v52, %v1240_v23  ;;  %v1243_v30 = vadd.f32 %v1950_v25, %v1882_v27  ;;  %v836_v31 = vpop.f32.mrb[47].mxu1 }
 0x141   :  { %v1361_v32 = vadd.f32 %v2618_v52, %v1232_v26  ;;  %v1235_v33 = vadd.f32 %v1234_v29, %v836_v31 }
 0x142   :  { %v1427_v34 = vmax.f32 %v1363_v28, 0.0  ;;  %v1364_v35 = vadd.f32 %v2618_v52, %v1243_v30  ;;  %v1953_v39 = vpop.f32.mrb[48].mxu0 }
 0x143   :  { %v1425_v36 = vmax.f32 %v1361_v32, 0.0  ;;  %v1362_v37 = vadd.f32 %v2618_v52, %v1235_v33  ;;  %v1247_v41 = vpop.f32.mrb[49].mxu0 }
 0x144   :  { %1491 = vst [vmem:[#allocation2 + $0x170] sm:$0xff] %v1427_v34  ;;  %v1428_v38 = vmax.f32 %v1364_v35, 0.0  ;;  %v1954_v44 = vpop.f32.mrb[50].mxu0 }
 0x145   :  { %1489 = vst [vmem:[#allocation2 + $0x160] sm:$0xff] %v1425_v36  ;;  %v1426_v7 = vmax.f32 %v1362_v37, 0.0  ;;  %v1885_v40 = vpop.f32.mrb[48].mxu1  ;;  %v1250_v8 = vpop.f32.mrb[51].mxu0 }
 0x146   :  { %1492 = vst [vmem:[#allocation2 + $0x178] sm:$0xff] %v1428_v38  ;;  %v1256_v42 = vadd.f32 %v1953_v39, %v1885_v40  ;;  %v849_v43 = vpop.f32.mrb[49].mxu1 }
 0x147   :  { %1490 = vst [vmem:[#allocation2 + $0x168] sm:$0xff] %v1426_v7  ;;  %v1248_v45 = vadd.f32 %v1247_v41, %v849_v43  ;;  %v1886_v46 = vpop.f32.mrb[50].mxu1 }
 0x148   :  { %v1367_v47 = vadd.f32 %v2618_v52, %v1256_v42  ;;  %v1259_v48 = vadd.f32 %v1954_v44, %v1886_v46  ;;  %v852_v49 = vpop.f32.mrb[51].mxu1 }
 0x149   :  { %v1365_v50 = vadd.f32 %v2618_v52, %v1248_v45  ;;  %v1251_v51 = vadd.f32 %v1250_v8, %v852_v49 }
 0x14a   :  { %v1431_v53 = vmax.f32 %v1367_v47, 0.0  ;;  %v1368_v54 = vadd.f32 %v2618_v52, %v1259_v48  ;;  %v1957_v59 = vpop.f32.mrb[52].mxu0 }
 0x14b   :  { %v1429_v55 = vmax.f32 %v1365_v50, 0.0  ;;  %v1366_v56 = vadd.f32 %v2618_v52, %v1251_v51  ;;  %v1263_v61 = vpop.f32.mrb[53].mxu0 }
 0x14c   :  { %1495 = vst [vmem:[#allocation2 + $0x190] sm:$0xff] %v1431_v53  ;;  %v1432_v57 = vmax.f32 %v1368_v54, 0.0  ;;  %v1958_v0 = vpop.f32.mrb[54].mxu0 }
 0x14d   :  { %1493 = vst [vmem:[#allocation2 + $0x180] sm:$0xff] %v1429_v55  ;;  %v1430_v58 = vmax.f32 %v1366_v56, 0.0  ;;  %v1889_v60 = vpop.f32.mrb[52].mxu1  ;;  %v1266_v4 = vpop.f32.mrb[55].mxu0 }
 0x14e   :  { %1496 = vst [vmem:[#allocation2 + $0x198] sm:$0xff] %v1432_v57  ;;  %v1272_v62 = vadd.f32 %v1957_v59, %v1889_v60  ;;  %v865_v63 = vpop.f32.mrb[53].mxu1 }
 0x14f   :  { %1494 = vst [vmem:[#allocation2 + $0x188] sm:$0xff] %v1430_v58  ;;  %v1264_v1 = vadd.f32 %v1263_v61, %v865_v63  ;;  %v1890_v2 = vpop.f32.mrb[54].mxu1 }
 0x150   :  { %v1371_v3 = vadd.f32 %v2618_v52, %v1272_v62  ;;  %v1275_v5 = vadd.f32 %v1958_v0, %v1890_v2  ;;  %v868_v6 = vpop.f32.mrb[55].mxu1 }
 0x151   :  { %v1369_v9 = vadd.f32 %v2618_v52, %v1264_v1  ;;  %v1267_v10 = vadd.f32 %v1266_v4, %v868_v6 }
 0x152   :  { %v1435_v11 = vmax.f32 %v1371_v3, 0.0  ;;  %v1372_v12 = vadd.f32 %v2618_v52, %v1275_v5  ;;  %v1961_v17 = vpop.f32.mrb[56].mxu0 }
 0x153   :  { %v1433_v13 = vmax.f32 %v1369_v9, 0.0  ;;  %v1370_v14 = vadd.f32 %v2618_v52, %v1267_v10  ;;  %v1279_v19 = vpop.f32.mrb[57].mxu0 }
 0x154   :  { %1499 = vst [vmem:[#allocation2 + $0x1b0] sm:$0xff] %v1435_v11  ;;  %v1436_v15 = vmax.f32 %v1372_v12, 0.0  ;;  %v1962_v22 = vpop.f32.mrb[58].mxu0 }
 0x155   :  { %1497 = vst [vmem:[#allocation2 + $0x1a0] sm:$0xff] %v1433_v13  ;;  %v1434_v16 = vmax.f32 %v1370_v14, 0.0  ;;  %v1893_v18 = vpop.f32.mrb[56].mxu1  ;;  %v1282_v26 = vpop.f32.mrb[59].mxu0 }
 0x156   :  { %1500 = vst [vmem:[#allocation2 + $0x1b8] sm:$0xff] %v1436_v15  ;;  %v1288_v20 = vadd.f32 %v1961_v17, %v1893_v18  ;;  %v881_v21 = vpop.f32.mrb[57].mxu1 }
 0x157   :  { %1498 = vst [vmem:[#allocation2 + $0x1a8] sm:$0xff] %v1434_v16  ;;  %v1280_v23 = vadd.f32 %v1279_v19, %v881_v21  ;;  %v1894_v24 = vpop.f32.mrb[58].mxu1 }
 0x158   :  { %v1375_v25 = vadd.f32 %v2618_v52, %v1288_v20  ;;  %v1291_v27 = vadd.f32 %v1962_v22, %v1894_v24  ;;  %v884_v28 = vpop.f32.mrb[59].mxu1 }
 0x159   :  { %v1373_v29 = vadd.f32 %v2618_v52, %v1280_v23  ;;  %v1283_v30 = vadd.f32 %v1282_v26, %v884_v28 }
 0x15a   :  { %v1439_v31 = vmax.f32 %v1375_v25, 0.0  ;;  %v1376_v32 = vadd.f32 %v2618_v52, %v1291_v27  ;;  %v1965_v37 = vpop.f32.mrb[60].mxu0 }
 0x15b   :  { %v1437_v33 = vmax.f32 %v1373_v29, 0.0  ;;  %v1374_v34 = vadd.f32 %v2618_v52, %v1283_v30  ;;  %v1295_v7 = vpop.f32.mrb[61].mxu0 }
 0x15c   :  { %1503 = vst [vmem:[#allocation2 + $0x1d0] sm:$0xff] %v1439_v31  ;;  %v1440_v35 = vmax.f32 %v1376_v32, 0.0  ;;  %v1966_v41 = vpop.f32.mrb[62].mxu0 }
 0x15d   :  { %1501 = vst [vmem:[#allocation2 + $0x1c0] sm:$0xff] %v1437_v33  ;;  %v1438_v36 = vmax.f32 %v1374_v34, 0.0  ;;  %v1897_v38 = vpop.f32.mrb[60].mxu1  ;;  %v1298_v45 = vpop.f32.mrb[63].mxu0 }
 0x15e   :  { %1504 = vst [vmem:[#allocation2 + $0x1d8] sm:$0xff] %v1440_v35  ;;  %v1304_v39 = vadd.f32 %v1965_v37, %v1897_v38  ;;  %v897_v40 = vpop.f32.mrb[61].mxu1 }
 0x15f   :  { %1502 = vst [vmem:[#allocation2 + $0x1c8] sm:$0xff] %v1438_v36  ;;  %v1296_v42 = vadd.f32 %v1295_v7, %v897_v40  ;;  %v1898_v43 = vpop.f32.mrb[62].mxu1 }
 0x160   :  { %v1379_v44 = vadd.f32 %v2618_v52, %v1304_v39  ;;  %v1307_v46 = vadd.f32 %v1966_v41, %v1898_v43  ;;  %v900_v47 = vpop.f32.mrb[63].mxu1 }
 0x161   :  { %v1377_v8 = vadd.f32 %v2618_v52, %v1296_v42  ;;  %v1299_v48 = vadd.f32 %v1298_v45, %v900_v47 }
 0x162   :  { %v1443_v49 = vmax.f32 %v1379_v44, 0.0  ;;  %v1380_v50 = vadd.f32 %v2618_v52, %v1307_v46 }
 0x163   :  { %v1441_v51 = vmax.f32 %v1377_v8, 0.0  ;;  %v1378_v53 = vadd.f32 %v2618_v52, %v1299_v48 }
 0x164   :  { %1507 = vst [vmem:[#allocation2 + $0x1f0] sm:$0xff] %v1443_v49  ;;  %v1444_v54 = vmax.f32 %v1380_v50, 0.0 }
 0x165   :  { %1505 = vst [vmem:[#allocation2 + $0x1e0] sm:$0xff] %v1441_v51  ;;  %v1442_v55 = vmax.f32 %v1378_v53, 0.0 }
 0x166   :  { %1508 = vst [vmem:[#allocation2 + $0x1f8] sm:$0xff] %v1444_v54 }
 0x167   :  { %1506 = vst [vmem:[#allocation2 + $0x1e8] sm:$0xff] %v1442_v55 }
 0x168   :  { %2051 = shalt.err (!%p2048_p4)
}
 0x169   :  { %s2052_s22 = scalar_lea.hbm %s2703_s7, 8192 }
 0x16a   :  { %p2053_p5 = scmp.ne.s32.totalorder %s2703_s7, %s2052_s22  ;;  %p2056_p6 = scmp.lt.u32.totalorder %s2052_s22, %s2703_s7 }
 0x16c   :  { %p2058_p7 = pnand %p2056_p6, %p2053_p5 }
 0x16e   :  { %2061 = shalt.err (!%p2058_p7)
}
 0x16f   :  { %s2065_s25 = smov 128   ;;  %s2066_s26 = smov 8  }
 0x170   :  { %1520 = dma.vmem_to_hbm [thread:$0]  %s1515_s6, 8192, %s2703_s7, [#allocation3], %s2065_s25, %s2065_s25, %s2066_s26  }
 0x171   :  { %2062 = dma.done.wait [#allocation3], 8192  }
 0x172   :  { %2063 = vsyncadd [#allocation3], 4294959104 }
 0x173   :  { %1524 = vsyncpa [#allocation3], 1 }

// kernel: _lambda_.5
= control target key start
LH: loop header
LB: loop body
LE: loop exit
PB: predicated region body
PF: predicated region fallthrough
CT: control target
= control target key end

     0   :  { %s5036_s21 = smov 0   ;;  %s5929_s0 = inlined_call_operand.vmem [shape: f32[512,64], index: 0, kind: input, shape index: {}]   ;;  %s5930_s1 = inlined_call_operand.vmem [shape: bf16[64,32], index: 1, kind: input, shape index: {}]   ;;  %s5931_s2 = inlined_call_operand.vmem [shape: f32[1,32], index: 2, kind: input, shape index: {}]   ;;  %s5932_s3 = inlined_call_operand.vmem [shape: f32[1,32], index: 3, kind: input, shape index: {}]   ;;  %s5933_s4 = inlined_call_operand.vmem [shape: bf16[9,32,32], index: 4, kind: input, shape index: {}]   ;;  %s5934_s5 = inlined_call_operand.vmem [shape: bf16[512,32], index: 5, kind: output, shape index: {0}]   ;;  %s5935_s6 = inlined_call_operand.vmem [shape: f32[2,2,32], index: 6, kind: output, shape index: {1}]  }
   0x1 LB: > { %s5042_s22 = sadd.s32 4294967295, %s4998_s21   ;;  %p3871_p0 = scmp.ge.s32.totalorder %s4998_s21, 1  ;;  %s4998_s21 = sphi %s5036_s21, %s17_s21  }
   0x2   : > { %p216_p1 = scmp.lt.s32.totalorder %s4998_s21, 3 }
   0x4   : > { %p217_p2 = pnand %p3871_p0, %p216_p1 }
   0x5   : > { %v4970_v0 = vld [vmem:[%s5930_s1] sm:$0xff] (!%p217_p2)   ;;  %s3872_s25 = sshll.u32 (!%p217_p2), %s5042_s22, 5  ;;  %v4971_v1 = vld [vmem:[%s5930_s1 + $0x8] sm:$0xff] (!%p217_p2)   ;;  %v4972_v2 = vld [vmem:[%s5930_s1 + $0x10] sm:$0xff] (!%p217_p2)   ;;  %vm347_vm0 = vcmask (!%p217_p2), 523264   ;;  %vm667_vm1 = vcmask (!%p217_p2), 261120  }
   0x6   : > { %220 = sbr.rel (%p217_p2) target bundleno = 806 (0x326), region = 40  ;;  %p251_p3 = scmp.lt.s32.totalorder (!%p217_p2), %s3872_s25, 63  ;;  %4341 = vmatprep.subr.bf16.mxu0 (!%p217_p2), %v4970_v0  ;;  %v4973_v5 = vld [vmem:[%s5930_s1 + $0x18] sm:$0xff] (!%p217_p2)   ;;  %v5000_v52 = vmov (!%p217_p2), 0.0   ;;  %vm670_vm2 = vcmask (!%p217_p2), 254976   ;;  %v4974_v53 = vld [vmem:[%s5933_s4 + $0x10] sm:$0xff] (!%p217_p2)  }
   0x7   : > { %4342 = vmatpush3.bf16.msra.mxu0 (!%p217_p2), %v4970_v0  ;;  %675 = vst.msk [vmem:[#allocation2 + $0x30] sm:$0xff] (!%p217_p2), %vm667_vm1, %v5000_v52  ;;  %676 = vst.msk [vmem:[#allocation2 + $0x38] sm:$0xff] (!%p217_p2), %vm667_vm1, %v5000_v52  ;;  %v4975_v54 = vld [vmem:[%s5933_s4 + $0x40] sm:$0xff] (!%p217_p2)   ;;  %v4976_v55 = vld [vmem:[%s5933_s4 + $0x18] sm:$0xff] (!%p217_p2)   ;;  %vm3574_vm3 = vcmask (!%p217_p2), 257024   ;;  %p262_p4 = scmp.lt.s32.totalorder (!%p217_p2), %s5042_s22, 1 }
   0x8   : > { %4343 = vmatprep.subr.bf16.mxu0 (!%p217_p2), %v4971_v1  ;;  %668 = vst.msk [vmem:[#allocation2] sm:$0xff] (!%p217_p2), %vm667_vm1, %v5000_v52  ;;  %669 = vst.msk [vmem:[#allocation2 + $0x8] sm:$0xff] (!%p217_p2), %vm667_vm1, %v5000_v52  ;;  %4525 = vmatprep.subr.bf16.mxu1 (!%p217_p2), %v4975_v54  ;;  %v4977_v56 = vld [vmem:[%s5933_s4 + $0x48] sm:$0xff] (!%p217_p2)   ;;  %v5185_v60 = vld [vmem:[%s5933_s4 + $0x50] sm:$0xff] (!%p217_p2)   ;;  %vm3777_vm4 = vcmask (!%p217_p2), 1040384  }
   0x9   : > { %672 = vst.msk [vmem:[#allocation2 + $0x18] sm:$0xff] (!%p217_p2), %vm667_vm1, %v5000_v52  ;;  %673 = vst.msk [vmem:[#allocation2 + $0x20] sm:$0xff] (!%p217_p2), %vm667_vm1, %v5000_v52  ;;  %4526 = vmatpush3.bf16.msra.mxu1 (!%p217_p2), %v4975_v54  ;;  %v5191_v61 = vld [vmem:[%s5933_s4] sm:$0xff] (!%p217_p2)  }
   0xa   : > { %678 = vst.msk [vmem:[#allocation2 + $0x48] sm:$0xff] (!%p217_p2), %vm667_vm1, %v5000_v52  ;;  %679 = vst.msk [vmem:[#allocation2 + $0x50] sm:$0xff] (!%p217_p2), %vm667_vm1, %v5000_v52  ;;  %4527 = vmatprep.subr.bf16.mxu1 (!%p217_p2), %v4977_v56  ;;  %v5197_v62 = vld [vmem:[%s5931_s2] ss:$0 sm:$0xff] (!%p217_p2) }
   0xb   : > { %4344 = vmatpush3.bf16.msra.mxu0 (!%p217_p2), %v4971_v1  ;;  %681 = vst.msk [vmem:[#allocation2 + $0x60] sm:$0xff] (!%p217_p2), %vm667_vm1, %v5000_v52  ;;  %682 = vst.msk [vmem:[#allocation2 + $0x68] sm:$0xff] (!%p217_p2), %vm667_vm1, %v5000_v52  ;;  %v5202_v0 = vld [vmem:[%s5932_s3] ss:$0 sm:$0xff] (!%p217_p2) }
   0xc   : > { %4345 = vmatprep.subr.bf16.mxu0 (!%p217_p2), %v4972_v2  ;;  %684 = vst.msk [vmem:[#allocation2 + $0x78] sm:$0xff] (!%p217_p2), %vm667_vm1, %v5000_v52  ;;  %685 = vst.msk [vmem:[#allocation2 + $0x80] sm:$0xff] (!%p217_p2), %vm667_vm1, %v5000_v52 }
   0xd   : > { %s5937_s25 = smov (!%p251_p3, %s3872_s25), 63  ;;  %687 = vst.msk [vmem:[#allocation2 + $0x90] sm:$0xff] %vm667_vm1, %v5000_v52  ;;  %688 = vst.msk [vmem:[#allocation2 + $0x98] sm:$0xff] %vm667_vm1, %v5000_v52  ;;  %4528 = vmatpush3.bf16.msra.mxu1 %v4977_v56  ;;  %s5939_s22 = smov (!%p262_p4, %s5042_s22), 1 }
   0xe   : > { %s3873_s30 = sshll.u32 %s5937_s25, 3  ;;  %690 = vst.msk [vmem:[#allocation2 + $0xa8] sm:$0xff] %vm667_vm1, %v5000_v52  ;;  %691 = vst.msk [vmem:[#allocation2 + $0xb0] sm:$0xff] %vm667_vm1, %v5000_v52  ;;  %4561 = vmatprep.subr.bf16.mxu1 %v5185_v60  ;;  %s3875_s10 = sshll.u32 %s5937_s25, 2 }
   0xf   : > { %s5062_s9 = scalar_lea.vmem %s5929_s0, %s3873_s30  ;;  %4346 = vmatpush3.bf16.msra.mxu0 %v4972_v2  ;;  %693 = vst.msk [vmem:[#allocation2 + $0xc0] sm:$0xff] %vm667_vm1, %v5000_v52  ;;  %694 = vst.msk [vmem:[#allocation2 + $0xc8] sm:$0xff] %vm667_vm1, %v5000_v52  ;;  %v808_v57 = vld [vmem:[#allocation2 + $0x1] sm:$0xff]  ;;  %s5764_s13 = scalar_lea.vmem %s5934_s5, %s3875_s10 }
  0x10   : > { %v267_v3 = vld [vmem:[%s5062_s9] sm:$0xff]  ;;  %v268_v4 = vld [vmem:[%s5062_s9 + $0x8] sm:$0xff]  ;;  %v269_v7 = vld [vmem:[%s5062_s9 + $0x10] sm:$0xff]  ;;  %4347 = vmatprep.subr.bf16.mxu0 %v4973_v5  ;;  %696 = vst.msk [vmem:[#allocation2 + $0xd8] sm:$0xff] %vm667_vm1, %v5000_v52  ;;  %s3876_s25 = sshll.u32 %s5939_s22, 1 }
  0x11   : > { %v299_v6 = vpack.c.bf16 %v268_v4, %v267_v3  ;;  %v270_v8 = vld [vmem:[%s5062_s9 + $0x18] sm:$0xff]  ;;  %v271_v9 = vld [vmem:[%s5062_s9 + $0x20] sm:$0xff]  ;;  %v272_v10 = vld [vmem:[%s5062_s9 + $0x28] sm:$0xff]  ;;  %697 = vst.msk [vmem:[#allocation2 + $0xe0] sm:$0xff] %vm667_vm1, %v5000_v52  ;;  %s265_s16 = scalar_lea.vmem %s5935_s6, %s3876_s25 }
  0x12   : > { %v300_v11 = vpack.c.bf16 %v270_v8, %v269_v7  ;;  %v301_v12 = vpack.c.bf16 %v272_v10, %v271_v9  ;;  %v273_v13 = vld [vmem:[%s5062_s9 + $0x30] sm:$0xff]  ;;  %v274_v14 = vld [vmem:[%s5062_s9 + $0x38] sm:$0xff]  ;;  %v275_v15 = vld [vmem:[%s5062_s9 + $0x40] sm:$0xff]  ;;  %699 = vst.msk [vmem:[#allocation2 + $0xf0] sm:$0xff] %vm667_vm1, %v5000_v52 }
  0x13   : > { %4349 = vmatprep.mubr.msk.bf16.mxu0 %vm347_vm0, %v299_v6  ;;  %4348 = vmatpush3.bf16.msra.mxu0 %v4973_v5  ;;  %v276_v16 = vld [vmem:[%s5062_s9 + $0x48] sm:$0xff]  ;;  %v302_v17 = vpack.c.bf16 %v274_v14, %v273_v13  ;;  %v277_v19 = vld [vmem:[%s5062_s9 + $0x50] sm:$0xff]  ;;  %v278_v20 = vld [vmem:[%s5062_s9 + $0x58] sm:$0xff]  ;;  %700 = vst.msk [vmem:[#allocation2 + $0xf8] sm:$0xff] %vm667_vm1, %v5000_v52 }
  0x14   : > { %v303_v18 = vpack.c.bf16 %v276_v16, %v275_v15  ;;  %v279_v21 = vld [vmem:[%s5062_s9 + $0x60] sm:$0xff]  ;;  %v280_v22 = vld [vmem:[%s5062_s9 + $0x68] sm:$0xff]  ;;  %v304_v23 = vpack.c.bf16 %v278_v20, %v277_v19  ;;  %v281_v25 = vld [vmem:[%s5062_s9 + $0x70] sm:$0xff]  ;;  %702 = vst.msk [vmem:[#allocation2 + $0x108] sm:$0xff] %vm667_vm1, %v5000_v52  ;;  %4381 = vmatprep.subr.bf16.mxu0 %v4974_v53 }
  0x15   : > { %v305_v24 = vpack.c.bf16 %v280_v22, %v279_v21  ;;  %v282_v26 = vld [vmem:[%s5062_s9 + $0x78] sm:$0xff]  ;;  %v283_v27 = vld [vmem:[%s5062_s9 + $0x80] sm:$0xff]  ;;  %v284_v28 = vld [vmem:[%s5062_s9 + $0x88] sm:$0xff]  ;;  %703 = vst.msk [vmem:[#allocation2 + $0x110] sm:$0xff] %vm667_vm1, %v5000_v52 }
  0x16   : > { %4350 = vmatmul.mubr.msk.bf16.vlgmr.msra.gmra.mrb[0].mxu0 %vm347_vm0, %v300_v11  ;;  %v306_v29 = vpack.c.bf16 %v282_v26, %v281_v25  ;;  %v307_v30 = vpack.c.bf16 %v284_v28, %v283_v27  ;;  %v285_v31 = vld [vmem:[%s5062_s9 + $0x90] sm:$0xff]  ;;  %v286_v32 = vld [vmem:[%s5062_s9 + $0x98] sm:$0xff]  ;;  %v287_v33 = vld [vmem:[%s5062_s9 + $0xa0] sm:$0xff]  ;;  %705 = vst.msk [vmem:[#allocation2 + $0x120] sm:$0xff] %vm667_vm1, %v5000_v52 }
  0x17   : > { %4353 = vmatprep.mubr.msk.bf16.mxu0 %vm347_vm0, %v301_v12  ;;  %v288_v34 = vld [vmem:[%s5062_s9 + $0xa8] sm:$0xff]  ;;  %v308_v35 = vpack.c.bf16 %v286_v32, %v285_v31  ;;  %v289_v37 = vld [vmem:[%s5062_s9 + $0xb0] sm:$0xff]  ;;  %v290_v38 = vld [vmem:[%s5062_s9 + $0xb8] sm:$0xff]  ;;  %706 = vst.msk [vmem:[#allocation2 + $0x128] sm:$0xff] %vm667_vm1, %v5000_v52  ;;  %4382 = vmatpush3.bf16.msra.mxu0 %v4974_v53 }
  0x18   : > { %v309_v36 = vpack.c.bf16 %v288_v34, %v287_v33  ;;  %v291_v39 = vld [vmem:[%s5062_s9 + $0xc0] sm:$0xff]  ;;  %v292_v40 = vld [vmem:[%s5062_s9 + $0xc8] sm:$0xff]  ;;  %v310_v41 = vpack.c.bf16 %v290_v38, %v289_v37  ;;  %v293_v43 = vld [vmem:[%s5062_s9 + $0xd0] sm:$0xff]  ;;  %708 = vst.msk [vmem:[#allocation2 + $0x138] sm:$0xff] %vm667_vm1, %v5000_v52  ;;  %4383 = vmatprep.subr.bf16.mxu0 %v4976_v55 }
  0x19   : > { %v311_v42 = vpack.c.bf16 %v292_v40, %v291_v39  ;;  %v294_v44 = vld [vmem:[%s5062_s9 + $0xd8] sm:$0xff]  ;;  %v295_v45 = vld [vmem:[%s5062_s9 + $0xe0] sm:$0xff]  ;;  %v296_v46 = vld [vmem:[%s5062_s9 + $0xe8] sm:$0xff]  ;;  %709 = vst.msk [vmem:[#allocation2 + $0x140] sm:$0xff] %vm667_vm1, %v5000_v52 }
  0x1a   : > { %v312_v47 = vpack.c.bf16 %v294_v44, %v293_v43  ;;  %v313_v48 = vpack.c.bf16 %v296_v46, %v295_v45  ;;  %v297_v49 = vld [vmem:[%s5062_s9 + $0xf0] sm:$0xff]  ;;  %v298_v50 = vld [vmem:[%s5062_s9 + $0xf8] sm:$0xff]  ;;  %711 = vst.msk [vmem:[#allocation2 + $0x150] sm:$0xff] %vm667_vm1, %v5000_v52  ;;  %712 = vst.msk [vmem:[#allocation2 + $0x158] sm:$0xff] %vm667_vm1, %v5000_v52 }
  0x1b   : > { %v314_v51 = vpack.c.bf16 %v298_v50, %v297_v49  ;;  %714 = vst.msk [vmem:[#allocation2 + $0x168] sm:$0xff] %vm667_vm1, %v5000_v52  ;;  %715 = vst.msk [vmem:[#allocation2 + $0x170] sm:$0xff] %vm667_vm1, %v5000_v52  ;;  %4384 = vmatpush3.bf16.msra.mxu0 %v4976_v55  ;;  %v4979_v46 = vld [vmem:[%s5933_s4 + $0x58] sm:$0xff]   ;;  %v5252_v55 = vld [vmem:[%s5933_s4 + $0x60] sm:$0xff]  }
  0x1c   : > { %717 = vst.msk [vmem:[#allocation2 + $0x180] sm:$0xff] %vm667_vm1, %v5000_v52  ;;  %718 = vst.msk [vmem:[#allocation2 + $0x188] sm:$0xff] %vm667_vm1, %v5000_v52  ;;  %4417 = vmatprep.subr.bf16.mxu0 %v5191_v61 }
  0x1d   : > { %720 = vst.msk [vmem:[#allocation2 + $0x198] sm:$0xff] %vm667_vm1, %v5000_v52  ;;  %721 = vst.msk [vmem:[#allocation2 + $0x1a0] sm:$0xff] %vm667_vm1, %v5000_v52 }
  0x1e   : > { %4354 = vmatmul.mubr.msk.bf16.gmra.mrb[4].mxu0 %vm347_vm0, %v302_v17  ;;  %677 = vst.msk [vmem:[#allocation2 + $0x40] sm:$0x3] %vm670_vm2, %v5000_v52  ;;  %671 = vst.msk [vmem:[#allocation2 + $0x10] sm:$0x3] %vm670_vm2, %v5000_v52 }
  0x1f   : > { %4357 = vmatprep.mubr.msk.bf16.mxu0 %vm347_vm0, %v303_v18  ;;  %674 = vst.msk [vmem:[#allocation2 + $0x28] sm:$0x3] %vm670_vm2, %v5000_v52  ;;  %680 = vst.msk [vmem:[#allocation2 + $0x58] sm:$0x3] %vm670_vm2, %v5000_v52 }
  0x20   : > { %683 = vst.msk [vmem:[#allocation2 + $0x70] sm:$0x3] %vm670_vm2, %v5000_v52  ;;  %686 = vst.msk [vmem:[#allocation2 + $0x88] sm:$0x3] %vm670_vm2, %v5000_v52 }
  0x21   : > { %689 = vst.msk [vmem:[#allocation2 + $0xa0] sm:$0x3] %vm670_vm2, %v5000_v52  ;;  %692 = vst.msk [vmem:[#allocation2 + $0xb8] sm:$0x3] %vm670_vm2, %v5000_v52 }
  0x22   : > { %695 = vst.msk [vmem:[#allocation2 + $0xd0] sm:$0x3] %vm670_vm2, %v5000_v52  ;;  %698 = vst.msk [vmem:[#allocation2 + $0xe8] sm:$0x3] %vm670_vm2, %v5000_v52 }
  0x23   : > { %701 = vst.msk [vmem:[#allocation2 + $0x100] sm:$0x3] %vm670_vm2, %v5000_v52  ;;  %704 = vst.msk [vmem:[#allocation2 + $0x118] sm:$0x3] %vm670_vm2, %v5000_v52 }
  0x24   : > { %707 = vst.msk [vmem:[#allocation2 + $0x130] sm:$0x3] %vm670_vm2, %v5000_v52  ;;  %710 = vst.msk [vmem:[#allocation2 + $0x148] sm:$0x3] %vm670_vm2, %v5000_v52 }
  0x25   : > { %713 = vst.msk [vmem:[#allocation2 + $0x160] sm:$0x3] %vm670_vm2, %v5000_v52  ;;  %716 = vst.msk [vmem:[#allocation2 + $0x178] sm:$0x3] %vm670_vm2, %v5000_v52  ;;  %v809_v58 = vld [vmem:[#allocation2 + $0x9] sm:$0xff] }
  0x26   : > { %4358 = vmatmul.mubr.msk.bf16.gmra.mrb[8].mxu0 %vm347_vm0, %v304_v23  ;;  %719 = vst.msk [vmem:[#allocation2 + $0x190] sm:$0x3] %vm670_vm2, %v5000_v52  ;;  %722 = vst.msk [vmem:[#allocation2 + $0x1a8] sm:$0x3] %vm670_vm2, %v5000_v52  ;;  %v840_v59 = vpack.c.bf16 %v809_v58, %v808_v57 }
  0x27   : > { %4361 = vmatprep.mubr.msk.bf16.mxu0 %vm347_vm0, %v305_v24 }
  0x2e   : > { %4362 = vmatmul.mubr.msk.bf16.gmra.mrb[12].mxu0 %vm347_vm0, %v306_v29 }
  0x2f   : > { %4365 = vmatprep.mubr.msk.bf16.mxu0 %vm347_vm0, %v307_v30 }
  0x36   : > { %4366 = vmatmul.mubr.msk.bf16.gmra.mrb[16].mxu0 %vm347_vm0, %v308_v35 }
  0x37   : > { %4369 = vmatprep.mubr.msk.bf16.mxu0 %vm347_vm0, %v309_v36 }
  0x3e   : > { %4370 = vmatmul.mubr.msk.bf16.gmra.mrb[20].mxu0 %vm347_vm0, %v310_v41 }
  0x3f   : > { %4373 = vmatprep.mubr.msk.bf16.mxu0 %vm347_vm0, %v311_v42 }
  0x46   : > { %4374 = vmatmul.mubr.msk.bf16.gmra.mrb[24].mxu0 %vm347_vm0, %v312_v47  ;;  %v4981_v47 = vld [vmem:[%s5933_s4 + $0x8] sm:$0xff]  }
  0x47   : > { %4377 = vmatprep.mubr.msk.bf16.mxu0 %vm347_vm0, %v313_v48 }
  0x4e   : > { %4378 = vmatmul.mubr.msk.bf16.gmra.mrb[28].mxu0 %vm347_vm0, %v314_v51 }
  0x4f   : > { %4385 = vmatprep.mubr.msk.bf16.mxu0 %vm667_vm1, %v840_v59 }
  0xe9   : > { %v4351_v63 = vpop.f32.mrb[0].mxu0 }
  0xea   : > { %v566_v1 = vmul.f32 %v4351_v63, %v5197_v62  ;;  %v430_v2 = vpop.f32.mrb[1].mxu0 }
  0xeb   : > { %v564_v3 = vmul.f32 %v5197_v62, %v430_v2  ;;  %v4352_v4 = vpop.f32.mrb[2].mxu0 }
  0xec   : > { %v605_v5 = vadd.f32 %v5202_v0, %v566_v1  ;;  %v567_v6 = vmul.f32 %v4352_v4, %v5197_v62  ;;  %v433_v7 = vpop.f32.mrb[3].mxu0 }
  0xed   : > { %v603_v8 = vadd.f32 %v5202_v0, %v564_v3  ;;  %v565_v9 = vmul.f32 %v5197_v62, %v433_v7 }
  0xee   : > { %v637_v10 = vmax.f32 %v605_v5, 0.0  ;;  %v606_v11 = vadd.f32 %v5202_v0, %v567_v6  ;;  %v5262_v5 = vld [vmem:[%s5933_s4 + $0x20] sm:$0xff]  }
  0xef   : > { %v635_v12 = vmax.f32 %v603_v8, 0.0  ;;  %v604_v13 = vadd.f32 %v5202_v0, %v565_v9 }
  0xf0   : > { %726 = vst.msk [vmem:[#allocation2 + $0x31] sm:$0xff] %vm667_vm1, %v637_v10  ;;  %v638_v14 = vmax.f32 %v606_v11, 0.0 }
  0xf1   : > { %724 = vst.msk [vmem:[#allocation2 + $0x19] sm:$0xff] %vm667_vm1, %v635_v12  ;;  %v636_v15 = vmax.f32 %v604_v13, 0.0  ;;  %v4355_v16 = vpop.f32.mrb[4].mxu0 }
  0xf2   : > { %727 = vst.msk [vmem:[#allocation2 + $0x39] sm:$0xff] %vm667_vm1, %v638_v14  ;;  %v570_v17 = vmul.f32 %v4355_v16, %v5197_v62  ;;  %v446_v18 = vpop.f32.mrb[5].mxu0 }
  0xf3   : > { %725 = vst.msk [vmem:[#allocation2 + $0x21] sm:$0xff] %vm667_vm1, %v636_v15  ;;  %v568_v19 = vmul.f32 %v5197_v62, %v446_v18  ;;  %v4356_v20 = vpop.f32.mrb[6].mxu0 }
  0xf4   : > { %v609_v21 = vadd.f32 %v5202_v0, %v570_v17  ;;  %v571_v22 = vmul.f32 %v4356_v20, %v5197_v62  ;;  %v449_v23 = vpop.f32.mrb[7].mxu0 }
  0xf5   : > { %v607_v24 = vadd.f32 %v5202_v0, %v568_v19  ;;  %v569_v25 = vmul.f32 %v5197_v62, %v449_v23 }
  0xf6   : > { %v641_v26 = vmax.f32 %v609_v21, 0.0  ;;  %v610_v27 = vadd.f32 %v5202_v0, %v571_v22 }
  0xf7   : > { %v639_v28 = vmax.f32 %v607_v24, 0.0  ;;  %v608_v29 = vadd.f32 %v5202_v0, %v569_v25  ;;  %v812_v41 = vld [vmem:[#allocation2 + $0x31] sm:$0xff] }
  0xf8   : > { %730 = vst.msk [vmem:[#allocation2 + $0x61] sm:$0xff] %vm667_vm1, %v641_v26  ;;  %v642_v30 = vmax.f32 %v610_v27, 0.0  ;;  %v810_v36 = vld [vmem:[#allocation2 + $0x19] sm:$0xff] }
  0xf9   : > { %728 = vst.msk [vmem:[#allocation2 + $0x49] sm:$0xff] %vm667_vm1, %v639_v28  ;;  %v640_v31 = vmax.f32 %v608_v29, 0.0  ;;  %v4359_v32 = vpop.f32.mrb[8].mxu0  ;;  %v813_v33 = vld [vmem:[#allocation2 + $0x39] sm:$0xff] }
  0xfa   : > { %731 = vst.msk [vmem:[#allocation2 + $0x69] sm:$0xff] %vm667_vm1, %v642_v30  ;;  %v574_v34 = vmul.f32 %v4359_v32, %v5197_v62  ;;  %v462_v35 = vpop.f32.mrb[9].mxu0  ;;  %v811_v37 = vld [vmem:[#allocation2 + $0x21] sm:$0xff]  ;;  %v842_v45 = vpack.c.bf16 %v813_v33, %v812_v41 }
  0xfb   : > { %729 = vst.msk [vmem:[#allocation2 + $0x51] sm:$0xff] %vm667_vm1, %v640_v31  ;;  %v572_v38 = vmul.f32 %v5197_v62, %v462_v35  ;;  %v4360_v39 = vpop.f32.mrb[10].mxu0  ;;  %v841_v40 = vpack.c.bf16 %v811_v37, %v810_v36 }
  0xfc   : > { %v613_v42 = vadd.f32 %v5202_v0, %v574_v34  ;;  %v575_v43 = vmul.f32 %v4360_v39, %v5197_v62  ;;  %v465_v44 = vpop.f32.mrb[11].mxu0 }
  0xfd   : > { %v611_v48 = vadd.f32 %v5202_v0, %v572_v38  ;;  %v573_v49 = vmul.f32 %v5197_v62, %v465_v44  ;;  %4386 = vmatmul.mubr.msk.bf16.vlgmr.msra.gmra.mrb[32].mxu0 %vm667_vm1, %v841_v40  ;;  %4529 = vmatprep.mubr.msk.bf16.mxu1 %vm667_vm1, %v841_v40 }
  0xfe   : > { %v645_v50 = vmax.f32 %v613_v42, 0.0  ;;  %v614_v51 = vadd.f32 %v5202_v0, %v575_v43  ;;  %4389 = vmatprep.mubr.msk.bf16.mxu0 %vm667_vm1, %v842_v45  ;;  %4530 = vmatmul.mubr.msk.bf16.vlgmr.msra.gmra.mrb[0].mxu1 %vm667_vm1, %v842_v45 }
  0xff   : > { %v643_v52 = vmax.f32 %v611_v48, 0.0  ;;  %v612_v53 = vadd.f32 %v5202_v0, %v573_v49  ;;  %4562 = vmatpush3.bf16.msra.mxu1 %v5185_v60  ;;  %4418 = vmatpush3.bf16.msra.mxu0 %v5191_v61  ;;  %v816_v4 = vld [vmem:[#allocation2 + $0x61] sm:$0xff] }
 0x100   : > { %734 = vst.msk [vmem:[#allocation2 + $0x91] sm:$0xff] %vm667_vm1, %v645_v50  ;;  %v646_v54 = vmax.f32 %v614_v51, 0.0  ;;  %4563 = vmatprep.subr.bf16.mxu1 %v4979_v46  ;;  %4419 = vmatprep.subr.bf16.mxu0 %v4981_v47  ;;  %v814_v61 = vld [vmem:[#allocation2 + $0x49] sm:$0xff] }
 0x101   : > { %732 = vst.msk [vmem:[#allocation2 + $0x79] sm:$0xff] %vm667_vm1, %v643_v52  ;;  %v644_v56 = vmax.f32 %v612_v53, 0.0  ;;  %v4363_v57 = vpop.f32.mrb[12].mxu0  ;;  %v817_v58 = vld [vmem:[#allocation2 + $0x69] sm:$0xff] }
 0x102   : > { %735 = vst.msk [vmem:[#allocation2 + $0x99] sm:$0xff] %vm667_vm1, %v646_v54  ;;  %v578_v59 = vmul.f32 %v4363_v57, %v5197_v62  ;;  %v478_v60 = vpop.f32.mrb[13].mxu0  ;;  %v815_v63 = vld [vmem:[#allocation2 + $0x51] sm:$0xff]  ;;  %v844_v9 = vpack.c.bf16 %v817_v58, %v816_v4 }
 0x103   : > { %733 = vst.msk [vmem:[#allocation2 + $0x81] sm:$0xff] %vm667_vm1, %v644_v56  ;;  %v576_v1 = vmul.f32 %v5197_v62, %v478_v60  ;;  %v4364_v2 = vpop.f32.mrb[14].mxu0  ;;  %v843_v3 = vpack.c.bf16 %v815_v63, %v814_v61  ;;  %4564 = vmatpush3.bf16.msra.mxu1 %v4979_v46  ;;  %4420 = vmatpush3.bf16.msra.mxu0 %v4981_v47 }
 0x104   : > { %v617_v6 = vadd.f32 %v5202_v0, %v578_v59  ;;  %v579_v7 = vmul.f32 %v4364_v2, %v5197_v62  ;;  %v481_v8 = vpop.f32.mrb[15].mxu0  ;;  %4597 = vmatprep.subr.bf16.mxu1 %v5252_v55  ;;  %4453 = vmatprep.subr.bf16.mxu0 %v5262_v5 }
 0x105   : > { %v615_v10 = vadd.f32 %v5202_v0, %v576_v1  ;;  %v577_v11 = vmul.f32 %v5197_v62, %v481_v8  ;;  %4390 = vmatmul.mubr.msk.bf16.gmra.mrb[36].mxu0 %vm667_vm1, %v843_v3  ;;  %4533 = vmatprep.mubr.msk.bf16.mxu1 %vm667_vm1, %v843_v3 }
 0x106   : > { %v649_v12 = vmax.f32 %v617_v6, 0.0  ;;  %v618_v13 = vadd.f32 %v5202_v0, %v579_v7  ;;  %4393 = vmatprep.mubr.msk.bf16.mxu0 %vm667_vm1, %v844_v9  ;;  %4534 = vmatmul.mubr.msk.bf16.gmra.mrb[4].mxu1 %vm667_vm1, %v844_v9 }
 0x107   : > { %v647_v14 = vmax.f32 %v615_v10, 0.0  ;;  %v616_v15 = vadd.f32 %v5202_v0, %v577_v11  ;;  %v820_v27 = vld [vmem:[#allocation2 + $0x91] sm:$0xff] }
 0x108   : > { %738 = vst.msk [vmem:[#allocation2 + $0xc1] sm:$0xff] %vm667_vm1, %v649_v12  ;;  %v650_v16 = vmax.f32 %v618_v13, 0.0  ;;  %v818_v22 = vld [vmem:[#allocation2 + $0x79] sm:$0xff] }
 0x109   : > { %736 = vst.msk [vmem:[#allocation2 + $0xa9] sm:$0xff] %vm667_vm1, %v647_v14  ;;  %v648_v17 = vmax.f32 %v616_v15, 0.0  ;;  %v4367_v18 = vpop.f32.mrb[16].mxu0  ;;  %v821_v19 = vld [vmem:[#allocation2 + $0x99] sm:$0xff] }
 0x10a   : > { %739 = vst.msk [vmem:[#allocation2 + $0xc9] sm:$0xff] %vm667_vm1, %v650_v16  ;;  %v582_v20 = vmul.f32 %v4367_v18, %v5197_v62  ;;  %v494_v21 = vpop.f32.mrb[17].mxu0  ;;  %v819_v23 = vld [vmem:[#allocation2 + $0x81] sm:$0xff]  ;;  %v5286_v31 = vpack.c.bf16 %v821_v19, %v820_v27 }
 0x10b   : > { %737 = vst.msk [vmem:[#allocation2 + $0xb1] sm:$0xff] %vm667_vm1, %v648_v17  ;;  %v580_v24 = vmul.f32 %v5197_v62, %v494_v21  ;;  %v4368_v25 = vpop.f32.mrb[18].mxu0  ;;  %v5282_v26 = vpack.c.bf16 %v819_v23, %v818_v22 }
 0x10c   : > { %v621_v28 = vadd.f32 %v5202_v0, %v582_v20  ;;  %v583_v29 = vmul.f32 %v4368_v25, %v5197_v62  ;;  %v497_v30 = vpop.f32.mrb[19].mxu0 }
 0x10d   : > { %v619_v32 = vadd.f32 %v5202_v0, %v580_v24  ;;  %v581_v33 = vmul.f32 %v5197_v62, %v497_v30  ;;  %4394 = vmatmul.mubr.msk.bf16.gmra.mrb[40].mxu0 %vm667_vm1, %v5282_v26  ;;  %4537 = vmatprep.mubr.msk.bf16.mxu1 %vm667_vm1, %v5282_v26 }
 0x10e   : > { %v653_v34 = vmax.f32 %v621_v28, 0.0  ;;  %v622_v35 = vadd.f32 %v5202_v0, %v583_v29  ;;  %4397 = vmatprep.mubr.msk.bf16.mxu0 %vm667_vm1, %v5286_v31  ;;  %4538 = vmatmul.mubr.msk.bf16.gmra.mrb[8].mxu1 %vm667_vm1, %v5286_v31 }
 0x10f   : > { %v651_v36 = vmax.f32 %v619_v32, 0.0  ;;  %v620_v37 = vadd.f32 %v5202_v0, %v581_v33  ;;  %v824_v49 = vld [vmem:[#allocation2 + $0xc1] sm:$0xff] }
 0x110   : > { %742 = vst.msk [vmem:[#allocation2 + $0xf1] sm:$0xff] %vm667_vm1, %v653_v34  ;;  %v654_v38 = vmax.f32 %v622_v35, 0.0  ;;  %v822_v44 = vld [vmem:[#allocation2 + $0xa9] sm:$0xff] }
 0x111   : > { %740 = vst.msk [vmem:[#allocation2 + $0xd9] sm:$0xff] %vm667_vm1, %v651_v36  ;;  %v652_v39 = vmax.f32 %v620_v37, 0.0  ;;  %v4371_v40 = vpop.f32.mrb[20].mxu0  ;;  %v825_v41 = vld [vmem:[#allocation2 + $0xc9] sm:$0xff] }
 0x112   : > { %743 = vst.msk [vmem:[#allocation2 + $0xf9] sm:$0xff] %vm667_vm1, %v654_v38  ;;  %v586_v42 = vmul.f32 %v4371_v40, %v5197_v62  ;;  %v510_v43 = vpop.f32.mrb[21].mxu0  ;;  %v823_v45 = vld [vmem:[#allocation2 + $0xb1] sm:$0xff]  ;;  %v5310_v53 = vpack.c.bf16 %v825_v41, %v824_v49 }
 0x113   : > { %741 = vst.msk [vmem:[#allocation2 + $0xe1] sm:$0xff] %vm667_vm1, %v652_v39  ;;  %v584_v46 = vmul.f32 %v5197_v62, %v510_v43  ;;  %v4372_v47 = vpop.f32.mrb[22].mxu0  ;;  %v5306_v48 = vpack.c.bf16 %v823_v45, %v822_v44 }
 0x114   : > { %v625_v50 = vadd.f32 %v5202_v0, %v586_v42  ;;  %v587_v51 = vmul.f32 %v4372_v47, %v5197_v62  ;;  %v513_v52 = vpop.f32.mrb[23].mxu0 }
 0x115   : > { %v623_v54 = vadd.f32 %v5202_v0, %v584_v46  ;;  %v585_v56 = vmul.f32 %v5197_v62, %v513_v52  ;;  %4398 = vmatmul.mubr.msk.bf16.gmra.mrb[44].mxu0 %vm667_vm1, %v5306_v48  ;;  %4541 = vmatprep.mubr.msk.bf16.mxu1 %vm667_vm1, %v5306_v48 }
 0x116   : > { %v657_v57 = vmax.f32 %v625_v50, 0.0  ;;  %v626_v58 = vadd.f32 %v5202_v0, %v587_v51  ;;  %4401 = vmatprep.mubr.msk.bf16.mxu0 %vm667_vm1, %v5310_v53  ;;  %4542 = vmatmul.mubr.msk.bf16.gmra.mrb[12].mxu1 %vm667_vm1, %v5310_v53 }
 0x117   : > { %v655_v59 = vmax.f32 %v623_v54, 0.0  ;;  %v624_v60 = vadd.f32 %v5202_v0, %v585_v56  ;;  %v828_v11 = vld [vmem:[#allocation2 + $0xf1] sm:$0xff]  ;;  %v757_v56 = vld [vmem:[#allocation2 + $0x8] sm:$0xff] }
 0x118   : > { %746 = vst.msk [vmem:[#allocation2 + $0x121] sm:$0xff] %vm667_vm1, %v657_v57  ;;  %v658_v61 = vmax.f32 %v626_v58, 0.0  ;;  %v826_v6 = vld [vmem:[#allocation2 + $0xd9] sm:$0xff] }
 0x119   : > { %744 = vst.msk [vmem:[#allocation2 + $0x109] sm:$0xff] %vm667_vm1, %v655_v59  ;;  %v656_v63 = vmax.f32 %v624_v60, 0.0  ;;  %v4375_v1 = vpop.f32.mrb[24].mxu0  ;;  %v829_v2 = vld [vmem:[#allocation2 + $0xf9] sm:$0xff] }
 0x11a   : > { %747 = vst.msk [vmem:[#allocation2 + $0x129] sm:$0xff] %vm667_vm1, %v658_v61  ;;  %v590_v3 = vmul.f32 %v4375_v1, %v5197_v62  ;;  %v526_v4 = vpop.f32.mrb[25].mxu0  ;;  %v827_v7 = vld [vmem:[#allocation2 + $0xe1] sm:$0xff]  ;;  %v5334_v15 = vpack.c.bf16 %v829_v2, %v828_v11  ;;  %v758_v11 = vld [vmem:[#allocation2 + $0x18] sm:$0xff] }
 0x11b   : > { %745 = vst.msk [vmem:[#allocation2 + $0x111] sm:$0xff] %vm667_vm1, %v656_v63  ;;  %v588_v8 = vmul.f32 %v5197_v62, %v526_v4  ;;  %v4376_v9 = vpop.f32.mrb[26].mxu0  ;;  %v5330_v10 = vpack.c.bf16 %v827_v7, %v826_v6  ;;  %v2221_v58 = vld [vmem:[#allocation2 + $0x1a] sm:$0xff]  ;;  %v2222_v61 = vld [vmem:[#allocation2 + $0x22] sm:$0xff] }
 0x11c   : > { %v629_v12 = vadd.f32 %v5202_v0, %v590_v3  ;;  %v591_v13 = vmul.f32 %v4376_v9, %v5197_v62  ;;  %v529_v14 = vpop.f32.mrb[27].mxu0  ;;  %v5396_v4 = vpack.c.bf16 %v2222_v61, %v2221_v58  ;;  %v759_v6 = vld [vmem:[#allocation2 + $0x20] sm:$0xff]  ;;  %v761_v7 = vld [vmem:[#allocation2 + $0x38] sm:$0xff] }
 0x11d   : > { %v627_v16 = vadd.f32 %v5202_v0, %v588_v8  ;;  %v589_v17 = vmul.f32 %v5197_v62, %v529_v14  ;;  %4402 = vmatmul.mubr.msk.bf16.gmra.mrb[48].mxu0 %vm667_vm1, %v5330_v10  ;;  %4545 = vmatprep.mubr.msk.bf16.mxu1 %vm667_vm1, %v5330_v10  ;;  %v2223_v8 = vld [vmem:[#allocation2 + $0x32] sm:$0xff]  ;;  %v2224_v9 = vld [vmem:[#allocation2 + $0x3a] sm:$0xff]  ;;  %v5403_v14 = vpack.c.bf16 %v759_v6, %v758_v11 }
 0x11e   : > { %v661_v18 = vmax.f32 %v629_v12, 0.0  ;;  %v630_v19 = vadd.f32 %v5202_v0, %v591_v13  ;;  %4405 = vmatprep.mubr.msk.bf16.mxu0 %vm667_vm1, %v5334_v15  ;;  %4546 = vmatmul.mubr.msk.bf16.gmra.mrb[16].mxu1 %vm667_vm1, %v5334_v15  ;;  %v2225_v12 = vld [vmem:[#allocation2 + $0x4a] sm:$0xff]  ;;  %v2226_v13 = vld [vmem:[#allocation2 + $0x52] sm:$0xff]  ;;  %v2237_v58 = vld [vmem:[#allocation2 + $0xda] sm:$0xff] }
 0x11f   : > { %v659_v20 = vmax.f32 %v627_v16, 0.0  ;;  %v628_v21 = vadd.f32 %v5202_v0, %v589_v17  ;;  %v832_v35 = vld [vmem:[#allocation2 + $0x121] sm:$0xff]  ;;  %v760_v16 = vld [vmem:[#allocation2 + $0x30] sm:$0xff] }
 0x120   : > { %750 = vst.msk [vmem:[#allocation2 + $0x151] sm:$0xff] %vm667_vm1, %v661_v18  ;;  %v662_v22 = vmax.f32 %v630_v19, 0.0  ;;  %v830_v29 = vld [vmem:[#allocation2 + $0x109] sm:$0xff]  ;;  %v5405_v17 = vpack.c.bf16 %v761_v7, %v760_v16  ;;  %v5407_v18 = vpack.c.bf16 %v2224_v9, %v2223_v8  ;;  %v772_v61 = vld [vmem:[#allocation2 + $0xc0] sm:$0xff]  ;;  %v777_v8 = vld [vmem:[#allocation2 + $0xf8] sm:$0xff] }
 0x121   : > { %748 = vst.msk [vmem:[#allocation2 + $0x139] sm:$0xff] %vm667_vm1, %v659_v20  ;;  %v660_v23 = vmax.f32 %v628_v21, 0.0  ;;  %v4379_v24 = vpop.f32.mrb[28].mxu0  ;;  %v833_v25 = vld [vmem:[#allocation2 + $0x129] sm:$0xff]  ;;  %v5414_v20 = vpack.c.bf16 %v2226_v13, %v2225_v12  ;;  %v775_v7 = vld [vmem:[#allocation2 + $0xe0] sm:$0xff]  ;;  %v2239_v9 = vld [vmem:[#allocation2 + $0xf2] sm:$0xff] }
 0x122   : > { %751 = vst.msk [vmem:[#allocation2 + $0x159] sm:$0xff] %vm667_vm1, %v662_v22  ;;  %v594_v27 = vmul.f32 %v4379_v24, %v5197_v62  ;;  %v542_v28 = vpop.f32.mrb[29].mxu0  ;;  %v831_v30 = vld [vmem:[#allocation2 + $0x111] sm:$0xff]  ;;  %v5358_v39 = vpack.c.bf16 %v833_v25, %v832_v35  ;;  %v4983_v19 = vld [vmem:[%s5933_s4 + $0x68] sm:$0xff]   ;;  %v2240_v11 = vld [vmem:[#allocation2 + $0xfa] sm:$0xff] }
 0x123   : > { %749 = vst.msk [vmem:[#allocation2 + $0x141] sm:$0xff] %vm667_vm1, %v660_v23  ;;  %v592_v32 = vmul.f32 %v5197_v62, %v542_v28  ;;  %v4380_v33 = vpop.f32.mrb[30].mxu0  ;;  %v5354_v34 = vpack.c.bf16 %v831_v30, %v830_v29  ;;  %v4985_v21 = vld [vmem:[%s5933_s4 + $0x28] sm:$0xff]   ;;  %v763_v22 = vld [vmem:[#allocation2 + $0x50] sm:$0xff]  ;;  %v2229_v29 = vld [vmem:[#allocation2 + $0x7a] sm:$0xff] }
 0x124   : > { %v633_v36 = vadd.f32 %v5202_v0, %v594_v27  ;;  %v595_v37 = vmul.f32 %v4380_v33, %v5197_v62  ;;  %v545_v38 = vpop.f32.mrb[31].mxu0  ;;  %v765_v23 = vld [vmem:[#allocation2 + $0x68] sm:$0xff]  ;;  %v5430_v24 = vld [vmem:[%s5933_s4 + $0x70] sm:$0xff]   ;;  %v764_v33 = vld [vmem:[#allocation2 + $0x60] sm:$0xff] }
 0x125   : > { %v631_v40 = vadd.f32 %v5202_v0, %v592_v32  ;;  %v593_v41 = vmul.f32 %v5197_v62, %v545_v38  ;;  %4406 = vmatmul.mubr.msk.bf16.gmra.mrb[52].mxu0 %vm667_vm1, %v5354_v34  ;;  %4549 = vmatprep.mubr.msk.bf16.mxu1 %vm667_vm1, %v5354_v34  ;;  %v2227_v25 = vld [vmem:[#allocation2 + $0x62] sm:$0xff]  ;;  %v2228_v27 = vld [vmem:[#allocation2 + $0x6a] sm:$0xff]  ;;  %v769_v38 = vld [vmem:[#allocation2 + $0x98] sm:$0xff] }
 0x126   : > { %v665_v42 = vmax.f32 %v633_v36, 0.0  ;;  %v634_v43 = vadd.f32 %v5202_v0, %v595_v37  ;;  %4409 = vmatprep.mubr.msk.bf16.mxu0 %vm667_vm1, %v5358_v39  ;;  %4550 = vmatmul.mubr.msk.bf16.gmra.mrb[20].mxu1 %vm667_vm1, %v5358_v39  ;;  %v762_v28 = vld [vmem:[#allocation2 + $0x48] sm:$0xff]  ;;  %v5441_v35 = vpack.c.bf16 %v2228_v27, %v2227_v25  ;;  %v767_v37 = vld [vmem:[#allocation2 + $0x80] sm:$0xff]  ;;  %v774_v12 = vld [vmem:[#allocation2 + $0xd8] sm:$0xff] }
 0x127   : > { %v663_v44 = vmax.f32 %v631_v40, 0.0  ;;  %v632_v45 = vadd.f32 %v5202_v0, %v593_v41  ;;  %v836_v52 = vld [vmem:[#allocation2 + $0x151] sm:$0xff]  ;;  %v756_v0 = vld [vmem:[#allocation2] sm:$0xff]  ;;  %v5437_v32 = vpack.c.bf16 %v763_v22, %v762_v28  ;;  %v781_v28 = vld [vmem:[#allocation2 + $0x128] sm:$0xff] }
 0x128   : > { %754 = vst.msk [vmem:[#allocation2 + $0x181] sm:$0xff] %vm667_vm1, %v665_v42  ;;  %v666_v62 = vmax.f32 %v634_v43, 0.0  ;;  %v834_v49 = vld [vmem:[#allocation2 + $0x139] sm:$0xff]  ;;  %v788_v63 = vpack.c.bf16 %v757_v56, %v756_v0  ;;  %v2230_v30 = vld [vmem:[#allocation2 + $0x82] sm:$0xff]  ;;  %v2233_v43 = vld [vmem:[#allocation2 + $0xaa] sm:$0xff] }
 0x129   : > { %752 = vst.msk [vmem:[#allocation2 + $0x169] sm:$0xff] %vm667_vm1, %v663_v44  ;;  %v664_v46 = vmax.f32 %v632_v45, 0.0  ;;  %v837_v47 = vld [vmem:[#allocation2 + $0x159] sm:$0xff]  ;;  %v5446_v36 = vpack.c.bf16 %v2230_v30, %v2229_v29  ;;  %v2235_v0 = vld [vmem:[#allocation2 + $0xc2] sm:$0xff]  ;;  %v2236_v56 = vld [vmem:[#allocation2 + $0xca] sm:$0xff] }
 0x12a   : > { %755 = vst.msk [vmem:[#allocation2 + $0x189] sm:$0xff] %vm667_vm1, %v666_v62  ;;  %v835_v50 = vld [vmem:[#allocation2 + $0x141] sm:$0xff]  ;;  %v5378_v54 = vpack.c.bf16 %v837_v47, %v836_v52  ;;  %v2231_v40 = vld [vmem:[#allocation2 + $0x92] sm:$0xff]  ;;  %v2241_v13 = vld [vmem:[#allocation2 + $0x10a] sm:$0xff] }
 0x12b   : > { %753 = vst.msk [vmem:[#allocation2 + $0x171] sm:$0xff] %vm667_vm1, %v664_v46  ;;  %v5376_v51 = vpack.c.bf16 %v835_v50, %v834_v49  ;;  %v2232_v41 = vld [vmem:[#allocation2 + $0x9a] sm:$0xff]  ;;  %v2234_v44 = vld [vmem:[#allocation2 + $0xb2] sm:$0xff]  ;;  %v773_v52 = vld [vmem:[#allocation2 + $0xc8] sm:$0xff] }
 0x12c   : > { %v766_v42 = vld [vmem:[#allocation2 + $0x78] sm:$0xff]  ;;  %v768_v62 = vld [vmem:[#allocation2 + $0x90] sm:$0xff]  ;;  %v5459_v47 = vpack.c.bf16 %v2232_v41, %v2231_v40  ;;  %v5463_v49 = vpack.c.bf16 %v2234_v44, %v2233_v43  ;;  %v2243_v29 = vld [vmem:[#allocation2 + $0x122] sm:$0xff] }
 0x12d   : > { %4410 = vmatmul.mubr.msk.bf16.gmra.mrb[56].mxu0 %vm667_vm1, %v5376_v51  ;;  %4553 = vmatprep.mubr.msk.bf16.mxu1 %vm667_vm1, %v5376_v51  ;;  %v5455_v45 = vpack.c.bf16 %v767_v37, %v766_v42  ;;  %v5457_v46 = vpack.c.bf16 %v769_v38, %v768_v62  ;;  %v771_v50 = vld [vmem:[#allocation2 + $0xb0] sm:$0xff]  ;;  %v2245_v37 = vld [vmem:[#allocation2 + $0x13a] sm:$0xff]  ;;  %v2246_v38 = vld [vmem:[#allocation2 + $0x142] sm:$0xff] }
 0x12e   : > { %4413 = vmatprep.mubr.msk.bf16.mxu0 %vm667_vm1, %v5378_v54  ;;  %4554 = vmatmul.mubr.msk.bf16.gmra.mrb[24].mxu1 %vm667_vm1, %v5378_v54  ;;  %v2242_v16 = vld [vmem:[#allocation2 + $0x112] sm:$0xff]  ;;  %v2244_v30 = vld [vmem:[#allocation2 + $0x12a] sm:$0xff]  ;;  %v780_v41 = vld [vmem:[#allocation2 + $0x120] sm:$0xff]  ;;  %v5511_v44 = vpack.c.bf16 %v2246_v38, %v2245_v37 }
 0x12f   : > { %v1945_v2 = vld [vmem:[#allocation2 + $0x181] sm:$0xff]  ;;  %v5495_v25 = vpack.c.bf16 %v2242_v16, %v2241_v13  ;;  %v779_v27 = vld [vmem:[#allocation2 + $0x110] sm:$0xff]  ;;  %v5505_v42 = vpack.c.bf16 %v781_v28, %v780_v41  ;;  %v5507_v43 = vpack.c.bf16 %v2244_v30, %v2243_v29  ;;  %v4989_v37 = vld [vmem:[%s5933_s4 + $0x38] sm:$0xff]  }
 0x130   : > { %v838_v59 = vld [vmem:[#allocation2 + $0x169] sm:$0xff]  ;;  %v783_v62 = vld [vmem:[#allocation2 + $0x140] sm:$0xff]  ;;  %v2558_v41 = vld [vmem:[#allocation2 + $0x198] sm:$0xff] }
 0x131   : > { %v1946_v57 = vld [vmem:[#allocation2 + $0x189] sm:$0xff] }
 0x132   : > { %v839_v60 = vld [vmem:[#allocation2 + $0x171] sm:$0xff]  ;;  %v5390_v3 = vpack.c.bf16 %v1946_v57, %v1945_v2  ;;  %v770_v57 = vld [vmem:[#allocation2 + $0xa8] sm:$0xff]  ;;  %v5475_v2 = vpack.c.bf16 %v2236_v56, %v2235_v0  ;;  %v2248_v0 = vld [vmem:[#allocation2 + $0x15a] sm:$0xff] }
 0x133   : > { %v5388_v1 = vpack.c.bf16 %v839_v60, %v838_v59  ;;  %v2238_v59 = vld [vmem:[#allocation2 + $0xe2] sm:$0xff]  ;;  %v5471_v60 = vpack.c.bf16 %v771_v50, %v770_v57  ;;  %v785_v50 = vld [vmem:[#allocation2 + $0x158] sm:$0xff]  ;;  %v2249_v57 = vld [vmem:[#allocation2 + $0x16a] sm:$0xff] }
 0x134   : > { %v5479_v6 = vpack.c.bf16 %v2238_v59, %v2237_v58  ;;  %v782_v56 = vld [vmem:[#allocation2 + $0x138] sm:$0xff]  ;;  %v787_v13 = vld [vmem:[#allocation2 + $0x170] sm:$0xff]  ;;  %v2251_v16 = vld [vmem:[#allocation2 + $0x182] sm:$0xff] }
 0x135   : > { %4414 = vmatmul.mubr.msk.bf16.gmra.mrb[60].mxu0 %vm667_vm1, %v5388_v1  ;;  %4557 = vmatprep.mubr.msk.bf16.mxu1 %vm667_vm1, %v5388_v1  ;;  %v2250_v58 = vld [vmem:[#allocation2 + $0x172] sm:$0xff]  ;;  %v5519_v59 = vpack.c.bf16 %v783_v62, %v782_v56  ;;  %v2559_v62 = vld [vmem:[#allocation2 + $0x1a0] sm:$0xff] }
 0x136   : > { %4558 = vmatmul.mubr.msk.bf16.gmra.mrb[28].mxu1 %vm667_vm1, %v5390_v3  ;;  %4421 = vmatprep.mubr.msk.bf16.mxu0 %vm667_vm1, %v788_v63  ;;  %v5473_v63 = vpack.c.bf16 %v773_v52, %v772_v61  ;;  %v2247_v52 = vld [vmem:[#allocation2 + $0x152] sm:$0xff] }
 0x137   : > { %4565 = vmatprep.mubr.msk.bf16.mxu1 %vm667_vm1, %v5396_v4  ;;  %v784_v61 = vld [vmem:[#allocation2 + $0x150] sm:$0xff] }
 0x13d   : > { %4422 = vmatmul.mubr.msk.bf16.vlgmr.msra.gmra.mrb[32].mxu0 %vm667_vm1, %v5403_v14 }
 0x13e   : > { %4425 = vmatprep.mubr.msk.bf16.mxu0 %vm667_vm1, %v5405_v17  ;;  %4566 = vmatmul.mubr.msk.bf16.vlgmr.msra.gmra.mrb[0].mxu1 %vm667_vm1, %v5407_v18 }
 0x13f   : > { %4598 = vmatpush3.bf16.msra.mxu1 %v5252_v55  ;;  %4569 = vmatprep.mubr.msk.bf16.mxu1 %vm667_vm1, %v5414_v20  ;;  %v5435_v55 = vld [vmem:[%s5933_s4 + $0x30] sm:$0xff]  }
 0x140   : > { %4599 = vmatprep.subr.bf16.mxu1 %v4983_v19  ;;  %4454 = vmatpush3.bf16.msra.mxu0 %v5262_v5  ;;  %v5439_v5 = vpack.c.bf16 %v765_v23, %v764_v33  ;;  %v5491_v23 = vpack.c.bf16 %v2240_v11, %v2239_v9  ;;  %v778_v33 = vld [vmem:[#allocation2 + $0x108] sm:$0xff]  ;;  %v5527_v9 = vpack.c.bf16 %v2250_v58, %v2249_v57  ;;  %v2837_v57 = vld [vmem:[#allocation2 + $0x51] sm:$0xff] }
 0x141   : > { %4455 = vmatprep.subr.bf16.mxu0 %v4985_v21  ;;  %v5503_v40 = vpack.c.bf16 %v779_v27, %v778_v33  ;;  %v1303_v11 = vld [vmem:[#allocation2 + $0x2] sm:$0xff]  ;;  %v4987_v33 = vld [vmem:[%s5933_s4 + $0x78] sm:$0xff]  }
 0x142   : > { %v786_v27 = vld [vmem:[#allocation2 + $0x168] sm:$0xff] }
 0x143   : > { %4600 = vmatpush3.bf16.msra.mxu1 %v4983_v19  ;;  %v5487_v19 = vpack.c.bf16 %v775_v7, %v774_v12  ;;  %v5521_v7 = vpack.c.bf16 %v785_v50, %v784_v61  ;;  %v1304_v12 = vld [vmem:[#allocation2 + $0xa] sm:$0xff]  ;;  %v5535_v29 = vpack.c.bf16 %v787_v13, %v786_v27  ;;  %v2575_v50 = vpack.c.bf16 %v2559_v62, %v2558_v41 }
 0x144   : > { %4456 = vmatpush3.bf16.msra.mxu0 %v4985_v21  ;;  %4633 = vmatprep.subr.bf16.mxu1 %v5430_v24  ;;  %v776_v21 = vld [vmem:[#allocation2 + $0xf0] sm:$0xff]  ;;  %v1335_v28 = vpack.c.bf16 %v1304_v12, %v1303_v11  ;;  %v2838_v12 = vld [vmem:[#allocation2 + $0x61] sm:$0xff] }
 0x145   : > { %4426 = vmatmul.mubr.msk.bf16.gmra.mrb[36].mxu0 %vm667_vm1, %v5437_v32  ;;  %4489 = vmatprep.subr.bf16.mxu0 %v5435_v55  ;;  %v5489_v22 = vpack.c.bf16 %v777_v8, %v776_v21  ;;  %v5523_v8 = vpack.c.bf16 %v2248_v0, %v2247_v52  ;;  %v2252_v21 = vld [vmem:[#allocation2 + $0x18a] sm:$0xff]  ;;  %v2835_v52 = vld [vmem:[#allocation2 + $0x39] sm:$0xff] }
 0x146   : > { %4429 = vmatprep.mubr.msk.bf16.mxu0 %vm667_vm1, %v5439_v5  ;;  %4570 = vmatmul.mubr.msk.bf16.gmra.mrb[4].mxu1 %vm667_vm1, %v5441_v35  ;;  %v5537_v30 = vpack.c.bf16 %v2252_v21, %v2251_v16  ;;  %v2834_v0 = vld [vmem:[#allocation2 + $0x31] sm:$0xff]  ;;  %v2839_v58 = vld [vmem:[#allocation2 + $0x69] sm:$0xff] }
 0x147   : > { %4573 = vmatprep.mubr.msk.bf16.mxu1 %vm667_vm1, %v5446_v36  ;;  %v2866_v56 = vpack.c.bf16 %v2835_v52, %v2834_v0  ;;  %v2836_v61 = vld [vmem:[#allocation2 + $0x49] sm:$0xff]  ;;  %v2868_v16 = vpack.c.bf16 %v2839_v58, %v2838_v12 }
 0x148   : > { %v2867_v11 = vpack.c.bf16 %v2837_v57, %v2836_v61  ;;  %v4991_v13 = vld [vmem:[%s5933_s4 + $0x88] sm:$0xff]  }
 0x14d   : > { %4430 = vmatmul.mubr.msk.bf16.gmra.mrb[40].mxu0 %vm667_vm1, %v5455_v45 }
 0x14e   : > { %4433 = vmatprep.mubr.msk.bf16.mxu0 %vm667_vm1, %v5457_v46  ;;  %4574 = vmatmul.mubr.msk.bf16.gmra.mrb[8].mxu1 %vm667_vm1, %v5459_v47 }
 0x14f   : > { %4577 = vmatprep.mubr.msk.bf16.mxu1 %vm667_vm1, %v5463_v49 }
 0x155   : > { %4434 = vmatmul.mubr.msk.bf16.gmra.mrb[44].mxu0 %vm667_vm1, %v5471_v60 }
 0x156   : > { %4437 = vmatprep.mubr.msk.bf16.mxu0 %vm667_vm1, %v5473_v63  ;;  %4578 = vmatmul.mubr.msk.bf16.gmra.mrb[12].mxu1 %vm667_vm1, %v5475_v2 }
 0x157   : > { %4581 = vmatprep.mubr.msk.bf16.mxu1 %vm667_vm1, %v5479_v6 }
 0x15d   : > { %4438 = vmatmul.mubr.msk.bf16.gmra.mrb[48].mxu0 %vm667_vm1, %v5487_v19 }
 0x15e   : > { %4441 = vmatprep.mubr.msk.bf16.mxu0 %vm667_vm1, %v5489_v22  ;;  %4582 = vmatmul.mubr.msk.bf16.gmra.mrb[16].mxu1 %vm667_vm1, %v5491_v23 }
 0x15f   : > { %4585 = vmatprep.mubr.msk.bf16.mxu1 %vm667_vm1, %v5495_v25 }
 0x165   : > { %4442 = vmatmul.mubr.msk.bf16.gmra.mrb[52].mxu0 %vm667_vm1, %v5503_v40 }
 0x166   : > { %4445 = vmatprep.mubr.msk.bf16.mxu0 %vm667_vm1, %v5505_v42  ;;  %4586 = vmatmul.mubr.msk.bf16.gmra.mrb[20].mxu1 %vm667_vm1, %v5507_v43 }
 0x167   : > { %4589 = vmatprep.mubr.msk.bf16.mxu1 %vm667_vm1, %v5511_v44 }
 0x16d   : > { %4446 = vmatmul.mubr.msk.bf16.gmra.mrb[56].mxu0 %vm667_vm1, %v5519_v59 }
 0x16e   : > { %4449 = vmatprep.mubr.msk.bf16.mxu0 %vm667_vm1, %v5521_v7  ;;  %4590 = vmatmul.mubr.msk.bf16.gmra.mrb[24].mxu1 %vm667_vm1, %v5523_v8 }
 0x16f   : > { %4593 = vmatprep.mubr.msk.bf16.mxu1 %vm667_vm1, %v5527_v9 }
 0x175   : > { %4450 = vmatmul.mubr.msk.bf16.gmra.mrb[60].mxu0 %vm667_vm1, %v5535_v29 }
 0x176   : > { %4594 = vmatmul.mubr.msk.bf16.gmra.mrb[28].mxu1 %vm667_vm1, %v5537_v30  ;;  %4457 = vmatprep.mubr.msk.bf16.mxu0 %vm667_vm1, %v1335_v28 }
 0x177   : > { %4601 = vmatprep.mubr.msk.bf16.mxu1 %vm667_vm1, %v5405_v17 }
 0x17d   : > { %4458 = vmatmul.mubr.msk.bf16.vlgmr.msra.gmra.mrb[32].mxu0 %vm667_vm1, %v5396_v4  ;;  %v4990_v4 = vld [vmem:[%s5933_s4 + $0x80] sm:$0xff]  }
 0x17e   : > { %4461 = vmatprep.mubr.msk.bf16.mxu0 %vm667_vm1, %v5407_v18  ;;  %4602 = vmatmul.mubr.msk.bf16.vlgmr.msra.gmra.mrb[0].mxu1 %vm667_vm1, %v5437_v32 }
 0x17f   : > { %4634 = vmatpush3.bf16.msra.mxu1 %v5430_v24  ;;  %4605 = vmatprep.mubr.msk.bf16.mxu1 %vm667_vm1, %v5439_v5  ;;  %v2557_v24 = vld [vmem:[#allocation2 + $0x188] sm:$0xff] }
 0x180   : > { %4635 = vmatprep.subr.bf16.mxu1 %v4987_v33  ;;  %4490 = vmatpush3.bf16.msra.mxu0 %v5435_v55  ;;  %v2556_v55 = vld [vmem:[#allocation2 + $0x180] sm:$0xff] }
 0x181   : > { %4491 = vmatprep.subr.bf16.mxu0 %v4989_v37  ;;  %v2574_v38 = vpack.c.bf16 %v2557_v24, %v2556_v55 }
 0x183   : > { %4636 = vmatpush3.bf16.msra.mxu1 %v4987_v33 }
 0x184   : > { %4492 = vmatpush3.bf16.msra.mxu0 %v4989_v37  ;;  %4669 = vmatprep.subr.bf16.mxu1 %v4990_v4 }
 0x185   : > { %4462 = vmatmul.mubr.msk.bf16.gmra.mrb[36].mxu0 %vm667_vm1, %v5414_v20 }
 0x186   : > { %4465 = vmatprep.mubr.msk.bf16.mxu0 %vm667_vm1, %v5441_v35  ;;  %4606 = vmatmul.mubr.msk.bf16.gmra.mrb[4].mxu1 %vm667_vm1, %v5455_v45 }
 0x187   : > { %4609 = vmatprep.mubr.msk.bf16.mxu1 %vm667_vm1, %v5457_v46 }
 0x18d   : > { %4466 = vmatmul.mubr.msk.bf16.gmra.mrb[40].mxu0 %vm667_vm1, %v5446_v36 }
 0x18e   : > { %4469 = vmatprep.mubr.msk.bf16.mxu0 %vm667_vm1, %v5459_v47  ;;  %4610 = vmatmul.mubr.msk.bf16.gmra.mrb[8].mxu1 %vm667_vm1, %v5471_v60 }
 0x18f   : > { %4613 = vmatprep.mubr.msk.bf16.mxu1 %vm667_vm1, %v5473_v63 }
 0x195   : > { %4470 = vmatmul.mubr.msk.bf16.gmra.mrb[44].mxu0 %vm667_vm1, %v5463_v49 }
 0x196   : > { %4473 = vmatprep.mubr.msk.bf16.mxu0 %vm667_vm1, %v5475_v2  ;;  %4614 = vmatmul.mubr.msk.bf16.gmra.mrb[12].mxu1 %vm667_vm1, %v5487_v19 }
 0x197   : > { %4617 = vmatprep.mubr.msk.bf16.mxu1 %vm667_vm1, %v5489_v22 }
 0x19d   : > { %4474 = vmatmul.mubr.msk.bf16.gmra.mrb[48].mxu0 %vm667_vm1, %v5479_v6 }
 0x19e   : > { %4477 = vmatprep.mubr.msk.bf16.mxu0 %vm667_vm1, %v5491_v23  ;;  %4618 = vmatmul.mubr.msk.bf16.gmra.mrb[16].mxu1 %vm667_vm1, %v5503_v40 }
 0x19f   : > { %4621 = vmatprep.mubr.msk.bf16.mxu1 %vm667_vm1, %v5505_v42 }
 0x1a5   : > { %4478 = vmatmul.mubr.msk.bf16.gmra.mrb[52].mxu0 %vm667_vm1, %v5495_v25 }
 0x1a6   : > { %4481 = vmatprep.mubr.msk.bf16.mxu0 %vm667_vm1, %v5507_v43  ;;  %4622 = vmatmul.mubr.msk.bf16.gmra.mrb[20].mxu1 %vm667_vm1, %v5519_v59 }
 0x1a7   : > { %4625 = vmatprep.mubr.msk.bf16.mxu1 %vm667_vm1, %v5521_v7 }
 0x1ad   : > { %4482 = vmatmul.mubr.msk.bf16.gmra.mrb[56].mxu0 %vm667_vm1, %v5511_v44 }
 0x1ae   : > { %4485 = vmatprep.mubr.msk.bf16.mxu0 %vm667_vm1, %v5523_v8  ;;  %4626 = vmatmul.mubr.msk.bf16.gmra.mrb[24].mxu1 %vm667_vm1, %v5535_v29 }
 0x1af   : > { %4629 = vmatprep.mubr.msk.bf16.mxu1 %vm667_vm1, %v2574_v38 }
 0x1b5   : > { %4486 = vmatmul.mubr.msk.bf16.gmra.mrb[60].mxu0 %vm667_vm1, %v5527_v9 }
 0x1b6   : > { %4493 = vmatprep.mubr.msk.bf16.mxu0 %vm667_vm1, %v5403_v14  ;;  %4630 = vmatmul.mubr.msk.bf16.gmra.mrb[28].mxu1 %vm667_vm1, %v2575_v50 }
 0x1b7   : > { %4637 = vmatprep.mubr.msk.bf16.mxu1 %vm667_vm1, %v2866_v56 }
 0x1bd   : > { %4494 = vmatmul.mubr.msk.bf16.vlgmr.msra.gmra.mrb[32].mxu0 %vm667_vm1, %v5405_v17 }
 0x1be   : > { %4497 = vmatprep.mubr.msk.bf16.mxu0 %vm667_vm1, %v5437_v32  ;;  %4638 = vmatmul.mubr.msk.bf16.vlgmr.msra.gmra.mrb[0].mxu1 %vm667_vm1, %v2867_v11 }
 0x1bf   : > { %4670 = vmatpush3.bf16.msra.mxu1 %v4990_v4  ;;  %4641 = vmatprep.mubr.msk.bf16.mxu1 %vm667_vm1, %v2868_v16 }
 0x1c0   : > { %4671 = vmatprep.subr.bf16.mxu1 %v4991_v13 }
 0x1c3   : > { %4672 = vmatpush3.bf16.msra.mxu1 %v4991_v13 }
 0x1c5   : > { %4498 = vmatmul.mubr.msk.bf16.gmra.mrb[36].mxu0 %vm667_vm1, %v5439_v5 }
 0x1c6   : > { %4501 = vmatprep.mubr.msk.bf16.mxu0 %vm667_vm1, %v5455_v45  ;;  %4642 = vmatmul.mubr.msk.bf16.gmra.mrb[4].mxu1 %vm667_vm1, %v5282_v26  ;;  %v2864_v26 = vld [vmem:[#allocation2 + $0x199] sm:$0xff] }
 0x1c7   : > { %4645 = vmatprep.mubr.msk.bf16.mxu1 %vm667_vm1, %v5286_v31  ;;  %v2865_v31 = vld [vmem:[#allocation2 + $0x1a1] sm:$0xff] }
 0x1cd   : > { %4502 = vmatmul.mubr.msk.bf16.gmra.mrb[40].mxu0 %vm667_vm1, %v5457_v46 }
 0x1ce   : > { %4505 = vmatprep.mubr.msk.bf16.mxu0 %vm667_vm1, %v5471_v60  ;;  %4646 = vmatmul.mubr.msk.bf16.gmra.mrb[8].mxu1 %vm667_vm1, %v5306_v48  ;;  %v2881_v48 = vpack.c.bf16 %v2865_v31, %v2864_v26 }
 0x1cf   : > { %4649 = vmatprep.mubr.msk.bf16.mxu1 %vm667_vm1, %v5310_v53  ;;  %v3170_v53 = vld [vmem:[#allocation2 + $0x19a] sm:$0xff] }
 0x1d5   : > { %4506 = vmatmul.mubr.msk.bf16.gmra.mrb[44].mxu0 %vm667_vm1, %v5473_v63 }
 0x1d6   : > { %4509 = vmatprep.mubr.msk.bf16.mxu0 %vm667_vm1, %v5487_v19  ;;  %4650 = vmatmul.mubr.msk.bf16.gmra.mrb[12].mxu1 %vm667_vm1, %v5330_v10  ;;  %v3171_v10 = vld [vmem:[#allocation2 + $0x1a2] sm:$0xff] }
 0x1d7   : > { %4653 = vmatprep.mubr.msk.bf16.mxu1 %vm667_vm1, %v5334_v15  ;;  %v3187_v15 = vpack.c.bf16 %v3171_v10, %v3170_v53 }
 0x1dd   : > { %4510 = vmatmul.mubr.msk.bf16.gmra.mrb[48].mxu0 %vm667_vm1, %v5489_v22 }
 0x1de   : > { %4513 = vmatprep.mubr.msk.bf16.mxu0 %vm667_vm1, %v5503_v40  ;;  %4654 = vmatmul.mubr.msk.bf16.gmra.mrb[16].mxu1 %vm667_vm1, %v5354_v34 }
 0x1df   : > { %4657 = vmatprep.mubr.msk.bf16.mxu1 %vm667_vm1, %v5358_v39 }
 0x1e5   : > { %4514 = vmatmul.mubr.msk.bf16.gmra.mrb[52].mxu0 %vm667_vm1, %v5505_v42 }
 0x1e6   : > { %4517 = vmatprep.mubr.msk.bf16.mxu0 %vm667_vm1, %v5519_v59  ;;  %4658 = vmatmul.mubr.msk.bf16.gmra.mrb[20].mxu1 %vm667_vm1, %v5376_v51 }
 0x1e7   : > { %4661 = vmatprep.mubr.msk.bf16.mxu1 %vm667_vm1, %v5378_v54 }
 0x1ed   : > { %4518 = vmatmul.mubr.msk.bf16.gmra.mrb[56].mxu0 %vm667_vm1, %v5521_v7 }
 0x1ee   : > { %4521 = vmatprep.mubr.msk.bf16.mxu0 %vm667_vm1, %v5535_v29  ;;  %4662 = vmatmul.mubr.msk.bf16.gmra.mrb[24].mxu1 %vm667_vm1, %v5388_v1 }
 0x1ef   : > { %4665 = vmatprep.mubr.msk.bf16.mxu1 %vm667_vm1, %v5390_v3 }
 0x1f5   : > { %4522 = vmatmul.mubr.msk.bf16.gmra.mrb[60].mxu0 %vm667_vm1, %v2574_v38 }
 0x1f6   : > { %4666 = vmatmul.mubr.msk.bf16.gmra.mrb[28].mxu1 %vm667_vm1, %v2881_v48 }
 0x1f7   : > { %4673 = vmatprep.mubr.msk.bf16.mxu1 %vm667_vm1, %v5407_v18 }
 0x1fe   : > { %4674 = vmatmul.mubr.msk.bf16.vlgmr.msra.gmra.mrb[0].mxu1 %vm667_vm1, %v5414_v20 }
 0x1ff   : > { %4677 = vmatprep.mubr.msk.bf16.mxu1 %vm667_vm1, %v5441_v35 }
 0x206   : > { %4678 = vmatmul.mubr.msk.bf16.gmra.mrb[4].mxu1 %vm667_vm1, %v5446_v36 }
 0x207   : > { %4681 = vmatprep.mubr.msk.bf16.mxu1 %vm667_vm1, %v5459_v47 }
 0x20e   : > { %4682 = vmatmul.mubr.msk.bf16.gmra.mrb[8].mxu1 %vm667_vm1, %v5463_v49 }
 0x20f   : > { %4685 = vmatprep.mubr.msk.bf16.mxu1 %vm667_vm1, %v5475_v2 }
 0x216   : > { %4686 = vmatmul.mubr.msk.bf16.gmra.mrb[12].mxu1 %vm667_vm1, %v5479_v6 }
 0x217   : > { %4689 = vmatprep.mubr.msk.bf16.mxu1 %vm667_vm1, %v5491_v23 }
 0x21e   : > { %4690 = vmatmul.mubr.msk.bf16.gmra.mrb[16].mxu1 %vm667_vm1, %v5495_v25 }
 0x21f   : > { %4693 = vmatprep.mubr.msk.bf16.mxu1 %vm667_vm1, %v5507_v43 }
 0x226   : > { %4694 = vmatmul.mubr.msk.bf16.gmra.mrb[20].mxu1 %vm667_vm1, %v5511_v44 }
 0x227   : > { %4697 = vmatprep.mubr.msk.bf16.mxu1 %vm667_vm1, %v5523_v8 }
 0x22e   : > { %4698 = vmatmul.mubr.msk.bf16.gmra.mrb[24].mxu1 %vm667_vm1, %v5527_v9 }
 0x22f   : > { %4701 = vmatprep.mubr.msk.bf16.mxu1 %vm667_vm1, %v5537_v30 }
 0x236   : > { %4702 = vmatmul.mubr.msk.bf16.gmra.mrb[28].mxu1 %vm667_vm1, %v3187_v15 }
 0x290   : > { %v4495_v34 = vpop.f32.mrb[32].mxu0 }
 0x291   : > { %v1756_v39 = vpop.f32.mrb[33].mxu0 }
 0x292   : > { %v4496_v51 = vpop.f32.mrb[34].mxu0 }
 0x293   : > { %v1759_v54 = vpop.f32.mrb[35].mxu0 }
 0x298   : > { %v4499_v1 = vpop.f32.mrb[36].mxu0 }
 0x299   : > { %v1772_v3 = vpop.f32.mrb[37].mxu0 }
 0x29a   : > { %v5708_v14 = vpop.f32.mrb[38].mxu0 }
 0x29b   : > { %v5710_v17 = vpop.f32.mrb[39].mxu0 }
 0x2a0   : > { %v5712_v18 = vpop.f32.mrb[40].mxu0 }
 0x2a1   : > { %v5714_v20 = vpop.f32.mrb[41].mxu0 }
 0x2a2   : > { %v5716_v32 = vpop.f32.mrb[42].mxu0 }
 0x2a3   : > { %v5718_v5 = vpop.f32.mrb[43].mxu0 }
 0x2a8   : > { %v5720_v35 = vpop.f32.mrb[44].mxu0 }
 0x2a9   : > { %v5722_v36 = vpop.f32.mrb[45].mxu0 }
 0x2aa   : > { %v5724_v45 = vpop.f32.mrb[46].mxu0 }
 0x2ab   : > { %v5726_v46 = vpop.f32.mrb[47].mxu0 }
 0x2b0   : > { %v5728_v47 = vpop.f32.mrb[48].mxu0 }
 0x2b1   : > { %v5730_v49 = vpop.f32.mrb[49].mxu0 }
 0x2b2   : > { %v5732_v60 = vpop.f32.mrb[50].mxu0 }
 0x2b3   : > { %v5734_v63 = vpop.f32.mrb[51].mxu0 }
 0x2b8   : > { %v5736_v2 = vpop.f32.mrb[52].mxu0 }
 0x2b9   : > { %v5738_v6 = vpop.f32.mrb[53].mxu0 }
 0x2ba   : > { %v5740_v19 = vpop.f32.mrb[54].mxu0 }
 0x2bb   : > { %v5742_v22 = vpop.f32.mrb[55].mxu0 }
 0x2c0   : > { %v5744_v23 = vpop.f32.mrb[56].mxu0 }
 0x2c1   : > { %v5746_v25 = vpop.f32.mrb[57].mxu0 }
 0x2c2   : > { %v5748_v40 = vpop.f32.mrb[58].mxu0 }
 0x2c3   : > { %v5750_v42 = vpop.f32.mrb[59].mxu0 }
 0x2c8   : > { %v5752_v43 = vpop.f32.mrb[60].mxu0 }
 0x2c9   : > { %v5754_v44 = vpop.f32.mrb[61].mxu0 }
 0x2ca   : > { %v5756_v59 = vpop.f32.mrb[62].mxu0 }
 0x2cb   : > { %v5758_v7 = vpop.f32.mrb[63].mxu0 }
 0x2d1   : > { %v4675_v8 = vpop.f32.mrb[0].mxu1 }
 0x2d2   : > { %v4705_v9 = vadd.f32 %v4675_v8, %v4495_v34  ;;  %v3287_v21 = vpop.f32.mrb[1].mxu1 }
 0x2d3   : > { %v4706_v27 = vadd.f32 %v3287_v21, %v1756_v39  ;;  %v4676_v28 = vpop.f32.mrb[2].mxu1 }
 0x2d4   : > { %v4129_v29 = vpack.c.bf16 %v4705_v9, %v4705_v9  ;;  %v4707_v30 = vadd.f32 %v4676_v28, %v4496_v51  ;;  %v3290_v33 = vpop.f32.mrb[3].mxu1  ;;  %v3678_v55 = vmul.f32 %v4705_v9, %v4705_v9  ;;  %v3610_v57 = vsel %vm667_vm1, %v4705_v9, 0.0 }
 0x2d5   : > { %v4127_v37 = vpack.c.bf16 %v4706_v27, %v4706_v27  ;;  %v3676_v4 = vmul.f32 %v4706_v27, %v4706_v27  ;;  %v4708_v24 = vadd.f32 %v3290_v33, %v1759_v54  ;;  %v3607_v41 = vsel %vm667_vm1, %v4706_v27, 0.0 }
 0x2d6   : > { %3577 = vst.msk [vmem:[%s5764_s13 + $0x8] sm:$0xf] %vm3574_vm3, %v4129_v29  ;;  %v4130_v38 = vpack.c.bf16 %v4707_v30, %v4707_v30  ;;  %v3679_v0 = vmul.f32 %v4707_v30, %v4707_v30  ;;  %v3711_v31 = vsel %vm667_vm1, %v3678_v55, 0.0  ;;  %v3612_v10 = vsel %vm667_vm1, %v4707_v30, 0.0 }
 0x2d7   : > { %3575 = vst.msk [vmem:[%s5764_s13] sm:$0xf] %vm3574_vm3, %v4127_v37  ;;  %v4128_v62 = vpack.c.bf16 %v4708_v24, %v4708_v24  ;;  %v3608_v50 = vsel %vm667_vm1, %v4708_v24, 0.0  ;;  %v3677_v52 = vmul.f32 %v4708_v24, %v4708_v24  ;;  %v3708_v58 = vsel %vm667_vm1, %v3676_v4, 0.0 }
 0x2d8   : > { %3578 = vst.msk [vmem:[%s5764_s13 + $0xc] sm:$0xf] %vm3574_vm3, %v4130_v38  ;;  %v3609_v56 = vadd.f32 %v3608_v50, %v3607_v41  ;;  %v3713_v15 = vsel %vm667_vm1, %v3679_v0, 0.0 }
 0x2d9   : > { %3576 = vst.msk [vmem:[%s5764_s13 + $0x4] sm:$0xf] %vm3574_vm3, %v4128_v62  ;;  %v3709_v61 = vsel %vm667_vm1, %v3677_v52, 0.0  ;;  %v4679_v11 = vpop.f32.mrb[4].mxu1 }
 0x2da   : > { %v3611_v12 = vadd.f32 %v3610_v57, %v3609_v56  ;;  %v3710_v13 = vadd.f32 %v3709_v61, %v3708_v58  ;;  %v4709_v16 = vadd.f32 %v4679_v11, %v4499_v1  ;;  %v3303_v26 = vpop.f32.mrb[5].mxu1 }
 0x2db   : > { %v4710_v48 = vadd.f32 %v3303_v26, %v1772_v3  ;;  %v4680_v53 = vpop.f32.mrb[6].mxu1 }
 0x2dc   : > { %v3712_v34 = vadd.f32 %v3711_v31, %v3710_v13  ;;  %v4133_v39 = vpack.c.bf16 %v4709_v16, %v4709_v16  ;;  %v3306_v51 = vpop.f32.mrb[7].mxu1  ;;  %v3613_v8 = vadd.f32 %v3612_v10, %v3611_v12  ;;  %v4711_v27 = vadd.f32 %v4680_v53, %v5708_v14 }
 0x2dd   : > { %v4131_v54 = vpack.c.bf16 %v4710_v48, %v4710_v48  ;;  %v3614_v9 = vsel %vm667_vm1, %v4710_v48, 0.0  ;;  %v3680_v21 = vmul.f32 %v4710_v48, %v4710_v48  ;;  %v4712_v3 = vadd.f32 %v3306_v51, %v5710_v17 }
 0x2de   : > { %3581 = vst.msk [vmem:[%s5764_s13 + $0x18] sm:$0xf] %vm3574_vm3, %v4133_v39  ;;  %v3714_v1 = vadd.f32 %v3713_v15, %v3712_v34  ;;  %v3615_v28 = vadd.f32 %v3614_v9, %v3613_v8  ;;  %v3682_v30 = vmul.f32 %v4709_v16, %v4709_v16  ;;  %v4134_v37 = vpack.c.bf16 %v4711_v27, %v4711_v27 }
 0x2df   : > { %3579 = vst.msk [vmem:[%s5764_s13 + $0x10] sm:$0xf] %vm3574_vm3, %v4131_v54  ;;  %v3715_v29 = vsel %vm667_vm1, %v3680_v21, 0.0  ;;  %v4132_v4 = vpack.c.bf16 %v4712_v3, %v4712_v3  ;;  %v3616_v24 = vsel %vm667_vm1, %v4712_v3, 0.0  ;;  %v3681_v55 = vmul.f32 %v4712_v3, %v4712_v3 }
 0x2e0   : > { %v3716_v33 = vadd.f32 %v3715_v29, %v3714_v1  ;;  %3582 = vst.msk [vmem:[%s5764_s13 + $0x1c] sm:$0xf] %vm3574_vm3, %v4134_v37  ;;  %v3617_v41 = vadd.f32 %v3616_v24, %v3615_v28  ;;  %v3618_v62 = vsel %vm667_vm1, %v4709_v16, 0.0  ;;  %v3683_v50 = vmul.f32 %v4711_v27, %v4711_v27 }
 0x2e1   : > { %v4683_v38 = vpop.f32.mrb[8].mxu1  ;;  %3580 = vst.msk [vmem:[%s5764_s13 + $0x14] sm:$0xf] %vm3574_vm3, %v4132_v4  ;;  %v3717_v52 = vsel %vm667_vm1, %v3681_v55, 0.0  ;;  %v3719_v57 = vsel %vm667_vm1, %v3682_v30, 0.0 }
 0x2e2   : > { %v4713_v14 = vadd.f32 %v4683_v38, %v5712_v18  ;;  %v3319_v17 = vpop.f32.mrb[9].mxu1  ;;  %v3619_v58 = vadd.f32 %v3618_v62, %v3617_v41  ;;  %v3718_v61 = vadd.f32 %v3717_v52, %v3716_v33  ;;  %v3620_v18 = vsel %vm667_vm1, %v4711_v27, 0.0 }
 0x2e3   : > { %v4714_v0 = vadd.f32 %v3319_v17, %v5714_v20  ;;  %v4684_v56 = vpop.f32.mrb[10].mxu1  ;;  %v3721_v10 = vsel %vm667_vm1, %v3683_v50, 0.0 }
 0x2e4   : > { %v4137_v11 = vpack.c.bf16 %v4713_v14, %v4713_v14  ;;  %v3322_v12 = vpop.f32.mrb[11].mxu1  ;;  %v3720_v31 = vadd.f32 %v3719_v57, %v3718_v61  ;;  %v3621_v48 = vadd.f32 %v3620_v18, %v3619_v58  ;;  %v4715_v20 = vadd.f32 %v4684_v56, %v5716_v32 }
 0x2e5   : > { %v4135_v13 = vpack.c.bf16 %v4714_v0, %v4714_v0  ;;  %v3622_v16 = vsel %vm667_vm1, %v4714_v0, 0.0  ;;  %v3684_v26 = vmul.f32 %v4714_v0, %v4714_v0  ;;  %v4716_v53 = vadd.f32 %v3322_v12, %v5718_v5 }
 0x2e6   : > { %3585 = vst.msk [vmem:[%s5764_s13 + $0x28] sm:$0xf] %vm3574_vm3, %v4137_v11  ;;  %v3686_v34 = vmul.f32 %v4713_v14, %v4713_v14  ;;  %v3623_v39 = vadd.f32 %v3622_v16, %v3621_v48  ;;  %v3722_v51 = vadd.f32 %v3721_v10, %v3720_v31  ;;  %v4138_v54 = vpack.c.bf16 %v4715_v20, %v4715_v20 }
 0x2e7   : > { %3583 = vst.msk [vmem:[%s5764_s13 + $0x20] sm:$0xf] %vm3574_vm3, %v4135_v13  ;;  %v3723_v15 = vsel %vm667_vm1, %v3684_v26, 0.0  ;;  %v4136_v8 = vpack.c.bf16 %v4716_v53, %v4716_v53  ;;  %v3624_v9 = vsel %vm667_vm1, %v4716_v53, 0.0  ;;  %v3685_v21 = vmul.f32 %v4716_v53, %v4716_v53 }
 0x2e8   : > { %v3724_v27 = vadd.f32 %v3723_v15, %v3722_v51  ;;  %3586 = vst.msk [vmem:[%s5764_s13 + $0x2c] sm:$0xf] %vm3574_vm3, %v4138_v54  ;;  %v3625_v32 = vadd.f32 %v3624_v9, %v3623_v39  ;;  %v3626_v28 = vsel %vm667_vm1, %v4713_v14, 0.0  ;;  %v3687_v29 = vmul.f32 %v4715_v20, %v4715_v20 }
 0x2e9   : > { %v4687_v1 = vpop.f32.mrb[12].mxu1  ;;  %3584 = vst.msk [vmem:[%s5764_s13 + $0x24] sm:$0xf] %vm3574_vm3, %v4136_v8  ;;  %v3725_v30 = vsel %vm667_vm1, %v3685_v21, 0.0  ;;  %v3727_v4 = vsel %vm667_vm1, %v3686_v34, 0.0 }
 0x2ea   : > { %v4717_v5 = vadd.f32 %v4687_v1, %v5720_v35  ;;  %v3335_v3 = vpop.f32.mrb[13].mxu1  ;;  %v3627_v24 = vadd.f32 %v3626_v28, %v3625_v32  ;;  %v3726_v55 = vadd.f32 %v3725_v30, %v3724_v27  ;;  %v3628_v35 = vsel %vm667_vm1, %v4715_v20, 0.0 }
 0x2eb   : > { %v4718_v33 = vadd.f32 %v3335_v3, %v5722_v36  ;;  %v4688_v37 = vpop.f32.mrb[14].mxu1  ;;  %v3729_v56 = vsel %vm667_vm1, %v3687_v29, 0.0 }
 0x2ec   : > { %v4141_v38 = vpack.c.bf16 %v4717_v5, %v4717_v5  ;;  %v3338_v41 = vpop.f32.mrb[15].mxu1  ;;  %v3728_v50 = vadd.f32 %v3727_v4, %v3726_v55  ;;  %v3629_v52 = vadd.f32 %v3628_v35, %v3627_v24  ;;  %v4719_v36 = vadd.f32 %v4688_v37, %v5724_v45 }
 0x2ed   : > { %v4139_v17 = vpack.c.bf16 %v4718_v33, %v4718_v33  ;;  %v3630_v14 = vsel %vm667_vm1, %v4718_v33, 0.0  ;;  %v3688_v62 = vmul.f32 %v4718_v33, %v4718_v33  ;;  %v4720_v0 = vadd.f32 %v3338_v41, %v5726_v46 }
 0x2ee   : > { %3589 = vst.msk [vmem:[%s5764_s13 + $0x38] sm:$0xf] %vm3574_vm3, %v4141_v38  ;;  %v3690_v58 = vmul.f32 %v4717_v5, %v4717_v5  ;;  %v3631_v61 = vadd.f32 %v3630_v14, %v3629_v52  ;;  %v3730_v11 = vadd.f32 %v3729_v56, %v3728_v50  ;;  %v4142_v12 = vpack.c.bf16 %v4719_v36, %v4719_v36 }
 0x2ef   : > { %3587 = vst.msk [vmem:[%s5764_s13 + $0x30] sm:$0xf] %vm3574_vm3, %v4139_v17  ;;  %v3731_v57 = vsel %vm667_vm1, %v3688_v62, 0.0  ;;  %v4140_v18 = vpack.c.bf16 %v4720_v0, %v4720_v0  ;;  %v3632_v13 = vsel %vm667_vm1, %v4720_v0, 0.0  ;;  %v3689_v16 = vmul.f32 %v4720_v0, %v4720_v0 }
 0x2f0   : > { %v3732_v31 = vadd.f32 %v3731_v57, %v3730_v11  ;;  %3590 = vst.msk [vmem:[%s5764_s13 + $0x3c] sm:$0xf] %vm3574_vm3, %v4142_v12  ;;  %v3633_v45 = vadd.f32 %v3632_v13, %v3631_v61  ;;  %v3634_v20 = vsel %vm667_vm1, %v4717_v5, 0.0  ;;  %v3691_v53 = vmul.f32 %v4719_v36, %v4719_v36 }
 0x2f1   : > { %v4691_v26 = vpop.f32.mrb[16].mxu1  ;;  %3588 = vst.msk [vmem:[%s5764_s13 + $0x34] sm:$0xf] %vm3574_vm3, %v4140_v18  ;;  %v3733_v10 = vsel %vm667_vm1, %v3689_v16, 0.0  ;;  %v3735_v39 = vsel %vm667_vm1, %v3690_v58, 0.0 }
 0x2f2   : > { %v4721_v46 = vadd.f32 %v4691_v26, %v5728_v47  ;;  %v3351_v48 = vpop.f32.mrb[17].mxu1  ;;  %v3635_v51 = vadd.f32 %v3634_v20, %v3633_v45  ;;  %v3734_v54 = vadd.f32 %v3733_v10, %v3732_v31  ;;  %v3636_v47 = vsel %vm667_vm1, %v4719_v36, 0.0 }
 0x2f3   : > { %v4722_v15 = vadd.f32 %v3351_v48, %v5730_v49  ;;  %v4692_v34 = vpop.f32.mrb[18].mxu1  ;;  %v3737_v28 = vsel %vm667_vm1, %v3691_v53, 0.0 }
 0x2f4   : > { %v4145_v8 = vpack.c.bf16 %v4721_v46, %v4721_v46  ;;  %v3354_v9 = vpop.f32.mrb[19].mxu1  ;;  %v3736_v32 = vadd.f32 %v3735_v39, %v3734_v54  ;;  %v3637_v5 = vadd.f32 %v3636_v47, %v3635_v51  ;;  %v4723_v49 = vadd.f32 %v4692_v34, %v5732_v60 }
 0x2f5   : > { %v4143_v21 = vpack.c.bf16 %v4722_v15, %v4722_v15  ;;  %v3638_v1 = vsel %vm667_vm1, %v4722_v15, 0.0  ;;  %v3692_v27 = vmul.f32 %v4722_v15, %v4722_v15  ;;  %v4724_v3 = vadd.f32 %v3354_v9, %v5734_v63 }
 0x2f6   : > { %3593 = vst.msk [vmem:[%s5764_s13 + $0x48] sm:$0xf] %vm3574_vm3, %v4145_v8  ;;  %v3694_v30 = vmul.f32 %v4721_v46, %v4721_v46  ;;  %v3639_v33 = vadd.f32 %v3638_v1, %v3637_v5  ;;  %v3738_v37 = vadd.f32 %v3737_v28, %v3736_v32  ;;  %v4146_v4 = vpack.c.bf16 %v4723_v49, %v4723_v49 }
 0x2f7   : > { %3591 = vst.msk [vmem:[%s5764_s13 + $0x40] sm:$0xf] %vm3574_vm3, %v4143_v21  ;;  %v3739_v29 = vsel %vm667_vm1, %v3692_v27, 0.0  ;;  %v4144_v24 = vpack.c.bf16 %v4724_v3, %v4724_v3  ;;  %v3640_v55 = vsel %vm667_vm1, %v4724_v3, 0.0  ;;  %v3693_v38 = vmul.f32 %v4724_v3, %v4724_v3 }
 0x2f8   : > { %v3740_v35 = vadd.f32 %v3739_v29, %v3738_v37  ;;  %3594 = vst.msk [vmem:[%s5764_s13 + $0x4c] sm:$0xf] %vm3574_vm3, %v4146_v4  ;;  %v3641_v60 = vadd.f32 %v3640_v55, %v3639_v33  ;;  %v3642_v14 = vsel %vm667_vm1, %v4721_v46, 0.0  ;;  %v3695_v62 = vmul.f32 %v4723_v49, %v4723_v49 }
 0x2f9   : > { %v4695_v41 = vpop.f32.mrb[20].mxu1  ;;  %3592 = vst.msk [vmem:[%s5764_s13 + $0x44] sm:$0xf] %vm3574_vm3, %v4144_v24  ;;  %v3741_v50 = vsel %vm667_vm1, %v3693_v38, 0.0  ;;  %v3743_v0 = vsel %vm667_vm1, %v3694_v30, 0.0 }
 0x2fa   : > { %v4725_v63 = vadd.f32 %v4695_v41, %v5736_v2  ;;  %v3367_v17 = vpop.f32.mrb[21].mxu1  ;;  %v3643_v56 = vadd.f32 %v3642_v14, %v3641_v60  ;;  %v3742_v57 = vadd.f32 %v3741_v50, %v3740_v35  ;;  %v3644_v2 = vsel %vm667_vm1, %v4723_v49, 0.0 }
 0x2fb   : > { %v4726_v52 = vadd.f32 %v3367_v17, %v5738_v6  ;;  %v4696_v36 = vpop.f32.mrb[22].mxu1  ;;  %v3745_v31 = vsel %vm667_vm1, %v3695_v62, 0.0 }
 0x2fc   : > { %v4149_v58 = vpack.c.bf16 %v4725_v63, %v4725_v63  ;;  %v3370_v61 = vpop.f32.mrb[23].mxu1  ;;  %v3744_v13 = vadd.f32 %v3743_v0, %v3742_v57  ;;  %v3645_v16 = vadd.f32 %v3644_v2, %v3643_v56  ;;  %v4727_v6 = vadd.f32 %v4696_v36, %v5740_v19 }
 0x2fd   : > { %v4147_v11 = vpack.c.bf16 %v4726_v52, %v4726_v52  ;;  %v3646_v12 = vsel %vm667_vm1, %v4726_v52, 0.0  ;;  %v3696_v18 = vmul.f32 %v4726_v52, %v4726_v52  ;;  %v4728_v26 = vadd.f32 %v3370_v61, %v5742_v22 }
 0x2fe   : > { %3597 = vst.msk [vmem:[%s5764_s13 + $0x58] sm:$0xf] %vm3574_vm3, %v4149_v58  ;;  %v3698_v46 = vmul.f32 %v4725_v63, %v4725_v63  ;;  %v3647_v48 = vadd.f32 %v3646_v12, %v3645_v16  ;;  %v3746_v20 = vadd.f32 %v3745_v31, %v3744_v13  ;;  %v4150_v53 = vpack.c.bf16 %v4727_v6, %v4727_v6 }
 0x2ff   : > { %3595 = vst.msk [vmem:[%s5764_s13 + $0x50] sm:$0xf] %vm3574_vm3, %v4147_v11  ;;  %v3747_v45 = vsel %vm667_vm1, %v3696_v18, 0.0  ;;  %v4148_v10 = vpack.c.bf16 %v4728_v26, %v4728_v26  ;;  %v3648_v15 = vsel %vm667_vm1, %v4728_v26, 0.0  ;;  %v3697_v34 = vmul.f32 %v4728_v26, %v4728_v26 }
 0x300   : > { %v3748_v51 = vadd.f32 %v3747_v45, %v3746_v20  ;;  %3598 = vst.msk [vmem:[%s5764_s13 + $0x5c] sm:$0xf] %vm3574_vm3, %v4150_v53  ;;  %v3649_v19 = vadd.f32 %v3648_v15, %v3647_v48  ;;  %v3650_v8 = vsel %vm667_vm1, %v4725_v63, 0.0  ;;  %v3699_v9 = vmul.f32 %v4727_v6, %v4727_v6 }
 0x301   : > { %v4699_v39 = vpop.f32.mrb[24].mxu1  ;;  %3596 = vst.msk [vmem:[%s5764_s13 + $0x54] sm:$0xf] %vm3574_vm3, %v4148_v10  ;;  %v3749_v47 = vsel %vm667_vm1, %v3697_v34, 0.0  ;;  %v3751_v27 = vsel %vm667_vm1, %v3698_v46, 0.0 }
 0x302   : > { %v4729_v22 = vadd.f32 %v4699_v39, %v5744_v23  ;;  %v3383_v54 = vpop.f32.mrb[25].mxu1  ;;  %v3651_v32 = vadd.f32 %v3650_v8, %v3649_v19  ;;  %v3750_v5 = vadd.f32 %v3749_v47, %v3748_v51  ;;  %v3652_v23 = vsel %vm667_vm1, %v4727_v6, 0.0 }
 0x303   : > { %v4730_v21 = vadd.f32 %v3383_v54, %v5746_v25  ;;  %v4700_v1 = vpop.f32.mrb[26].mxu1  ;;  %v3753_v24 = vsel %vm667_vm1, %v3699_v9, 0.0 }
 0x304   : > { %v4153_v49 = vpack.c.bf16 %v4729_v22, %v4729_v22  ;;  %v3386_v3 = vpop.f32.mrb[27].mxu1  ;;  %v3752_v33 = vadd.f32 %v3751_v27, %v3750_v5  ;;  %v3653_v37 = vadd.f32 %v3652_v23, %v3651_v32  ;;  %v4731_v25 = vadd.f32 %v4700_v1, %v5748_v40 }
 0x305   : > { %v4151_v28 = vpack.c.bf16 %v4730_v21, %v4730_v21  ;;  %v3654_v29 = vsel %vm667_vm1, %v4730_v21, 0.0  ;;  %v3700_v30 = vmul.f32 %v4730_v21, %v4730_v21  ;;  %v4732_v4 = vadd.f32 %v3386_v3, %v5750_v42 }
 0x306   : > { %3601 = vst.msk [vmem:[%s5764_s13 + $0x68] sm:$0xf] %vm3574_vm3, %v4153_v49  ;;  %v3702_v38 = vmul.f32 %v4729_v22, %v4729_v22  ;;  %v3655_v41 = vadd.f32 %v3654_v29, %v3653_v37  ;;  %v3754_v35 = vadd.f32 %v3753_v24, %v3752_v33  ;;  %v4154_v60 = vpack.c.bf16 %v4731_v25, %v4731_v25 }
 0x307   : > { %3599 = vst.msk [vmem:[%s5764_s13 + $0x60] sm:$0xf] %vm3574_vm3, %v4151_v28  ;;  %v3755_v55 = vsel %vm667_vm1, %v3700_v30, 0.0  ;;  %v4152_v63 = vpack.c.bf16 %v4732_v4, %v4732_v4  ;;  %v3656_v17 = vsel %vm667_vm1, %v4732_v4, 0.0  ;;  %v3701_v14 = vmul.f32 %v4732_v4, %v4732_v4 }
 0x308   : > { %v3756_v50 = vadd.f32 %v3755_v55, %v3754_v35  ;;  %3602 = vst.msk [vmem:[%s5764_s13 + $0x6c] sm:$0xf] %vm3574_vm3, %v4154_v60  ;;  %v3657_v40 = vadd.f32 %v3656_v17, %v3655_v41  ;;  %v3658_v36 = vsel %vm667_vm1, %v4729_v22, 0.0  ;;  %v3703_v0 = vmul.f32 %v4731_v25, %v4731_v25 }
 0x309   : > { %v4703_v62 = vpop.f32.mrb[28].mxu1  ;;  %3600 = vst.msk [vmem:[%s5764_s13 + $0x64] sm:$0xf] %vm3574_vm3, %v4152_v63  ;;  %v3757_v56 = vsel %vm667_vm1, %v3701_v14, 0.0  ;;  %v3759_v61 = vsel %vm667_vm1, %v3702_v38, 0.0 }
 0x30a   : > { %v4733_v42 = vadd.f32 %v4703_v62, %v5752_v43  ;;  %v3399_v52 = vpop.f32.mrb[29].mxu1  ;;  %v3659_v2 = vadd.f32 %v3658_v36, %v3657_v40  ;;  %v3758_v11 = vadd.f32 %v3757_v56, %v3756_v50  ;;  %v3660_v43 = vsel %vm667_vm1, %v4731_v25, 0.0 }
 0x30b   : > { %v4734_v57 = vadd.f32 %v3399_v52, %v5754_v44  ;;  %v4704_v58 = vpop.f32.mrb[30].mxu1  ;;  %v3761_v46 = vsel %vm667_vm1, %v3703_v0, 0.0 }
 0x30c   : > { %v4157_v12 = vpack.c.bf16 %v4733_v42, %v4733_v42  ;;  %v3402_v18 = vpop.f32.mrb[31].mxu1  ;;  %v3760_v26 = vadd.f32 %v3759_v61, %v3758_v11  ;;  %v3661_v31 = vadd.f32 %v3660_v43, %v3659_v2  ;;  %v4735_v44 = vadd.f32 %v4704_v58, %v5756_v59 }
 0x30d   : > { %v4155_v13 = vpack.c.bf16 %v4734_v57, %v4734_v57  ;;  %v3662_v16 = vsel %vm667_vm1, %v4734_v57, 0.0  ;;  %v3704_v6 = vmul.f32 %v4734_v57, %v4734_v57  ;;  %v4736_v45 = vadd.f32 %v3402_v18, %v5758_v7 }
 0x30e   : > { %3605 = vst.msk [vmem:[%s5764_s13 + $0x78] sm:$0xf] %vm3574_vm3, %v4157_v12  ;;  %v3663_v20 = vadd.f32 %v3662_v16, %v3661_v31  ;;  %v3762_v53 = vadd.f32 %v3761_v46, %v3760_v26  ;;  %v4158_v10 = vpack.c.bf16 %v4735_v44, %v4735_v44  ;;  %v3706_v15 = vmul.f32 %v4733_v42, %v4733_v42 }
 0x30f   : > { %3603 = vst.msk [vmem:[%s5764_s13 + $0x70] sm:$0xf] %vm3574_vm3, %v4155_v13  ;;  %v3763_v48 = vsel %vm667_vm1, %v3704_v6, 0.0  ;;  %v4156_v34 = vpack.c.bf16 %v4736_v45, %v4736_v45  ;;  %v3664_v39 = vsel %vm667_vm1, %v4736_v45, 0.0  ;;  %v3705_v51 = vmul.f32 %v4736_v45, %v4736_v45 }
 0x310   : > { %v3764_v19 = vadd.f32 %v3763_v48, %v3762_v53  ;;  %3606 = vst.msk [vmem:[%s5764_s13 + $0x7c] sm:$0xf] %vm3574_vm3, %v4158_v10  ;;  %v3665_v59 = vadd.f32 %v3664_v39, %v3663_v20  ;;  %v3666_v7 = vsel %vm667_vm1, %v4733_v42, 0.0  ;;  %v3707_v22 = vmul.f32 %v4735_v44, %v4735_v44 }
 0x311   : > { %3604 = vst.msk [vmem:[%s5764_s13 + $0x74] sm:$0xf] %vm3574_vm3, %v4156_v34  ;;  %v3765_v54 = vsel %vm667_vm1, %v3705_v51, 0.0  ;;  %v3767_v47 = vsel %vm667_vm1, %v3706_v15, 0.0  ;;  %v3668_v21 = vsel %vm667_vm1, %v4735_v44, 0.0 }
 0x312   : > { %v3667_v8 = vadd.f32 %v3666_v7, %v3665_v59  ;;  %v3766_v9 = vadd.f32 %v3765_v54, %v3764_v19  ;;  %v3769_v32 = vsel %vm667_vm1, %v3707_v22, 0.0 }
 0x314   : > { %v3669_v1 = vadd.f32 %v3668_v21, %v3667_v8  ;;  %v3768_v27 = vadd.f32 %v3767_v47, %v3766_v9 }
 0x316   : > { %v3670_v5 = vrot.slane %v3669_v1, 4  ;;  %v3770_v49 = vadd.f32 %v3769_v32, %v3768_v27 }
 0x318   : > { %v3671_v3 = vadd.f32 %v3670_v5, %v3669_v1  ;;  %v3771_v23 = vrot.slane %v3770_v49, 4 }
 0x31a   : > { %v3672_v28 = vrot.slane %v3671_v3, 2  ;;  %v3772_v29 = vadd.f32 %v3771_v23, %v3770_v49 }
 0x31c   : > { %v3673_v30 = vadd.f32 %v3672_v28, %v3671_v3  ;;  %v3773_v33 = vrot.slane %v3772_v29, 2 }
 0x31e   : > { %v3674_v37 = vrot.slane %v3673_v30, 1  ;;  %v3774_v25 = vadd.f32 %v3773_v33, %v3772_v29 }
 0x320   : > { %v3775_v4 = vrot.slane %v3774_v25, 1  ;;  %v3675_v24 = vadd.f32 %v3674_v37, %v3673_v30 }
 0x322   : > { %v3776_v55 = vadd.f32 %v3775_v4, %v3774_v25 }
 0x324   : > { %v3778_v38 = vsel %vm3777_vm4, %v3675_v24, %v3776_v55 }
 0x325   : > { %3779 = vst.msk [vmem:[%s265_s16] sm:$0x3] %vm670_vm2, %v3778_v38 }
 0x326 PF: > { %s17_s21 = sadd.s32 1, %s4998_s21  }
 0x327   : > { %p14_p5 = scmp.ge.s32.totalorder %s17_s21, 4  }
 0x329   :  { %16 = sbr.rel (!%p14_p5) target bundleno = 1 (0x1), region = 92 }

</bundles_post_ra>
